<compile_context>
chip_gen: v5e
topology: v5e:2x2
jax: 0.10.0
libtpu: 0.0.40
codegen_flags: <defaults>
</compile_context>

<pallas_src>
import functools

import jax
import jax.numpy as jnp
from jax.experimental import pallas as pl
from jax.experimental.pallas import tpu as pltpu


def ppe_conv_kernel(x_ref, adj_ref, w1_ref, b1_ref, w2_ref, b2_ref,
                    w3_ref, b3_ref, x_out_ref, adj_out_ref):
    F = x_ref.shape[1]

    x = x_ref[...]                                    # (tile, F) f32
    a = adj_ref[...] + x                              # adj = adj + x
    adj_out_ref[...] = a

    # lin1 (eval-mode BatchNorm already folded into w1/b1): one MXU launch produces
    # the (tile, 2F) slab; the chunk split is a free 128-aligned lane slice.
    adj2 = jnp.dot(a.astype(jnp.bfloat16), w1_ref[...],
                   preferred_element_type=jnp.float32) + b1_ref[...]
    x1 = adj2[:, :F]
    x2 = adj2[:, F:]

    # lin2 on the first half.
    x1 = jnp.dot(x1.astype(jnp.bfloat16), w2_ref[...],
                 preferred_element_type=jnp.float32) + b2_ref[...]

    # Exact (erf-based) GELU in f32, matching nn.GELU() default approximate='none'.
    x2 = 0.5 * x2 * (1.0 + jax.lax.erf(x2 * 0.7071067811865476))
    # TODO(synk): Dropout(0.1) is identity in eval mode; training-mode RNG dropout not implemented.

    h = (x1 * x2).astype(jnp.bfloat16)
    out = (jnp.dot(h, w3_ref[...], preferred_element_type=jnp.float32)
           + b3_ref[...] + x)                         # bias + residual in f32
    x_out_ref[...] = out


def _choose_tile(n, tn_max):
    """Row tile: multiple of 8 (f32 sublane), <= tn_max.  Aim for ~4 grid steps
    (2 per TensorCore on dual-TC v7x, extra pipeline depth on single-TC v5e/v6e)
    with a 256-row floor so per-step DMA stays near the HBM roofline."""
    full = ((n + 7) // 8) * 8            # whole problem in one (padded) step
    if full <= 256:
        return max(8, full)
    t = ((pl.cdiv(n, 4) + 7) // 8) * 8   # ~4 steps
    return max(256, min(t, tn_max, full))


@functools.partial(jax.jit, static_argnames=("tn",), donate_argnums=(0, 1))
def ppe_conv(x, adj, w1, b1, w2, b2, w3, b3, *, tn=512):
    N, F = x.shape
    tile = _choose_tile(N, tn)
    grid = (pl.cdiv(N, tile),)           # ragged tail handled by Pallas write-masking

    row_spec = pl.BlockSpec((tile, F), lambda i: (i, 0))     # tiled over nodes
    w1_spec = pl.BlockSpec((F, 2 * F), lambda i: (0, 0))     # grid-invariant weights
    b1_spec = pl.BlockSpec((1, 2 * F), lambda i: (0, 0))
    wff = pl.BlockSpec((F, F), lambda i: (0, 0))
    vecF = pl.BlockSpec((1, F), lambda i: (0, 0))

    weight_bytes = sum(a.size * a.dtype.itemsize for a in (w1, b1, w2, b2, w3, b3))
    cost = pl.CostEstimate(
        flops=8 * N * F * F,                                  # lin1(2F) + lin2(F) + lin3(F)
        transcendentals=N * F,                                # erf-GELU
        bytes_accessed=4 * N * F * x.dtype.itemsize + weight_bytes,
    )

    out_x, out_adj = pl.pallas_call(
        ppe_conv_kernel,
        out_shape=(jax.ShapeDtypeStruct((N, F), x.dtype),
                   jax.ShapeDtypeStruct((N, F), x.dtype)),
        grid_spec=pltpu.PrefetchScalarGridSpec(
            num_scalar_prefetch=0,
            grid=grid,
            in_specs=[row_spec, row_spec,                     # x, adj
                      w1_spec, b1_spec,                       # lin1 (BN folded)
                      wff, vecF,                              # lin2
                      wff, vecF],                             # lin3
            out_specs=[row_spec, row_spec],
        ),
        input_output_aliases={0: 0, 1: 1},                    # x->x_out, adj->adj_out in place
        cost_estimate=cost,
        compiler_params=pltpu.CompilerParams(
            dimension_semantics=("parallel",)),
    )(x, adj, w1, b1, w2, b2, w3, b3)

    return out_x, out_adj


def fold_params(p, eps=1e-5):
    """Host-side prep: fold eval-mode BatchNorm1d into lin1, cast weights to bf16."""
    F = p["W2"].shape[0]
    g = p["gamma"] / jnp.sqrt(p["rv"] + eps)                  # per-feature scale
    bta = p["beta"] - p["rm"] * g                             # per-feature shift
    w1 = (g[:, None] * p["W1"])                               # (F, 2F)
    b1 = p["b1"] + bta @ p["W1"]                              # (2F,)
    return (w1.astype(jnp.bfloat16),
            b1.reshape(1, 2 * F).astype(jnp.float32),
            p["W2"].astype(jnp.bfloat16),
            p["b2"].reshape(1, F).astype(jnp.float32),
            p["W3"].astype(jnp.bfloat16),
            p["b3"].reshape(1, F).astype(jnp.float32))


def ref_forward(x, adj, p, eps=1e-5):
    """Pure-JAX f32 reference of PPE_Conv.forward (eval mode)."""
    F = x.shape[1]
    a = adj + x
    a_bn = (a - p["rm"]) / jnp.sqrt(p["rv"] + eps) * p["gamma"] + p["beta"]
    adj2 = a_bn @ p["W1"] + p["b1"]
    x1, x2 = adj2[:, :F], adj2[:, F:]
    x1 = x1 @ p["W2"] + p["b2"]
    x2 = jax.nn.gelu(x2, approximate=False)
    out = (x1 * x2) @ p["W3"] + p["b3"] + x
    return out, a


if __name__ == "__main__":
    N, F = 1000, 128        # node count deliberately NOT a multiple of the row tile
    key = jax.random.PRNGKey(0)
    ks = jax.random.split(key, 12)

    x = jax.random.normal(ks[0], (N, F), jnp.float32)
    adj = jax.random.normal(ks[1], (N, F), jnp.float32)

    scale = 0.05
    p = dict(
        W1=jax.random.normal(ks[2], (F, 2 * F), jnp.float32) * scale,   # = torch lin1.weight.T
        b1=jax.random.normal(ks[3], (2 * F,), jnp.float32) * scale,
        W2=jax.random.normal(ks[4], (F, F), jnp.float32) * scale,
        b2=jax.random.normal(ks[5], (F,), jnp.float32) * scale,
        W3=jax.random.normal(ks[6], (F, F), jnp.float32) * scale,
        b3=jax.random.normal(ks[7], (F,), jnp.float32) * scale,
        gamma=1.0 + 0.1 * jax.random.normal(ks[8], (F,), jnp.float32),
        beta=0.1 * jax.random.normal(ks[9], (F,), jnp.float32),
        rm=0.1 * jax.random.normal(ks[10], (F,), jnp.float32),          # running_mean
        rv=1.0 + 0.1 * jax.random.uniform(ks[11], (F,), jnp.float32),   # running_var
    )

    kernel_params = fold_params(p)

    # Reference first: x / adj are donated (aliased into the kernel outputs) and
    # may not be reused after the pallas call.
    ref_x, ref_adj = ref_forward(x, adj, p)
    jax.block_until_ready((ref_x, ref_adj))

    out_x, out_adj = ppe_conv(x, adj, *kernel_params)
    jax.block_until_ready((out_x, out_adj))

    # adj path is pure f32 addition -> tight tolerance.
    assert jnp.allclose(out_adj, ref_adj, rtol=1e-5, atol=1e-5)
    # x path uses bf16 MXU inputs with f32 accumulation -> looser tolerance vs f32 ref.
    assert jnp.allclose(out_x, ref_x, rtol=5e-2, atol=5e-2)

    print("KERNEL_OK")
</pallas_src>

<mosaic_0001>
module attributes {stable_mosaic.version = 11 : i64} {
  func.func @ppe_conv_kernel(%arg0: i32, %arg1: memref<256x128xf32, #tpu.memory_space<vmem>>, %arg2: memref<256x128xf32, #tpu.memory_space<vmem>>, %arg3: memref<128x256xbf16, #tpu.memory_space<vmem>>, %arg4: memref<1x256xf32, #tpu.memory_space<vmem>>, %arg5: memref<128x128xbf16, #tpu.memory_space<vmem>>, %arg6: memref<1x128xf32, #tpu.memory_space<vmem>>, %arg7: memref<128x128xbf16, #tpu.memory_space<vmem>>, %arg8: memref<1x128xf32, #tpu.memory_space<vmem>>, %arg9: memref<256x128xf32, #tpu.memory_space<vmem>>, %arg10: memref<256x128xf32, #tpu.memory_space<vmem>>) attributes {dimension_semantics = [#tpu.dimension_semantics<parallel>], iteration_bounds = array<i64: 4>, scalar_prefetch = 0 : i64, scratch_operands = 0 : i64, tpu.core_type = #tpu.core_type<tc>, window_params = [{transform_indices = @transform_0, window_bounds = array<i64: 256, 128>}, {transform_indices = @transform_1, window_bounds = array<i64: 256, 128>}, {pipeline_mode = #tpu.pipeline_mode<synchronous>, transform_indices = @transform_2, window_bounds = array<i64: 128, 256>}, {pipeline_mode = #tpu.pipeline_mode<synchronous>, transform_indices = @transform_3, window_bounds = array<i64: 1, 256>}, {pipeline_mode = #tpu.pipeline_mode<synchronous>, transform_indices = @transform_4, window_bounds = array<i64: 128, 128>}, {pipeline_mode = #tpu.pipeline_mode<synchronous>, transform_indices = @transform_5, window_bounds = array<i64: 1, 128>}, {pipeline_mode = #tpu.pipeline_mode<synchronous>, transform_indices = @transform_6, window_bounds = array<i64: 128, 128>}, {pipeline_mode = #tpu.pipeline_mode<synchronous>, transform_indices = @transform_7, window_bounds = array<i64: 1, 128>}, {transform_indices = @transform_8, window_bounds = array<i64: 256, 128>}, {transform_indices = @transform_9, window_bounds = array<i64: 256, 128>}]} {
    %c0 = arith.constant 0 : index
    %c0_0 = arith.constant 0 : index
    %0 = vector.load %arg1[%c0, %c0_0] : memref<256x128xf32, #tpu.memory_space<vmem>>, vector<256x128xf32>
    %c0_1 = arith.constant 0 : index
    %c0_2 = arith.constant 0 : index
    %1 = vector.load %arg2[%c0_1, %c0_2] : memref<256x128xf32, #tpu.memory_space<vmem>>, vector<256x128xf32>
    %2 = arith.addf %1, %0 : vector<256x128xf32>
    %c0_3 = arith.constant 0 : index
    %c0_4 = arith.constant 0 : index
    %3 = vector.load %arg10[%c0_3, %c0_4] : memref<256x128xf32, #tpu.memory_space<vmem>>, vector<256x128xf32>
    tpu.vector_store %arg10[%c0_3, %c0_4], %2 {strides = array<i32>} : memref<256x128xf32, #tpu.memory_space<vmem>>, vector<256x128xf32>,
    %4 = arith.truncf %2 : vector<256x128xf32> to vector<256x128xbf16>
    %c0_5 = arith.constant 0 : index
    %c0_6 = arith.constant 0 : index
    %5 = vector.load %arg3[%c0_5, %c0_6] : memref<128x256xbf16, #tpu.memory_space<vmem>>, vector<128x256xbf16>
    %cst = arith.constant dense<0.000000e+00> : vector<256x256xf32>
    %6 = tpu.matmul %4, %5, %cst {dimension_numbers = #tpu.dot_dimension_numbers<[1], [0], [0], [1], [0, 0, 1, 1], [], []>} : vector<256x128xbf16>, vector<128x256xbf16>, vector<256x256xf32> -> vector<256x256xf32>
    %c0_7 = arith.constant 0 : index
    %c0_8 = arith.constant 0 : index
    %7 = vector.load %arg4[%c0_7, %c0_8] : memref<1x256xf32, #tpu.memory_space<vmem>>, vector<1x256xf32>
    %8 = vector.broadcast %7 : vector<1x256xf32> to vector<256x256xf32>
    %9 = arith.addf %6, %8 : vector<256x256xf32>
    %10 = vector.extract_strided_slice %9 {offsets = [0, 0], sizes = [256, 128], strides = [1, 1]} : vector<256x256xf32> to vector<256x128xf32>
    %11 = vector.extract_strided_slice %9 {offsets = [0, 128], sizes = [256, 128], strides = [1, 1]} : vector<256x256xf32> to vector<256x128xf32>
    %12 = arith.truncf %10 : vector<256x128xf32> to vector<256x128xbf16>
    %c0_9 = arith.constant 0 : index
    %c0_10 = arith.constant 0 : index
    %13 = vector.load %arg5[%c0_9, %c0_10] : memref<128x128xbf16, #tpu.memory_space<vmem>>, vector<128x128xbf16>
    %cst_11 = arith.constant dense<0.000000e+00> : vector<256x128xf32>
    %14 = tpu.matmul %12, %13, %cst_11 {dimension_numbers = #tpu.dot_dimension_numbers<[1], [0], [0], [1], [0, 0, 1, 1], [], []>} : vector<256x128xbf16>, vector<128x128xbf16>, vector<256x128xf32> -> vector<256x128xf32>
    %c0_12 = arith.constant 0 : index
    %c0_13 = arith.constant 0 : index
    %15 = vector.load %arg6[%c0_12, %c0_13] : memref<1x128xf32, #tpu.memory_space<vmem>>, vector<1x128xf32>
    %16 = vector.broadcast %15 : vector<1x128xf32> to vector<256x128xf32>
    %17 = arith.addf %14, %16 : vector<256x128xf32>
    %cst_14 = arith.constant 5.000000e-01 : f32
    %18 = vector.broadcast %cst_14 : f32 to vector<256x128xf32>
    %19 = arith.mulf %18, %11 : vector<256x128xf32>
    %cst_15 = arith.constant 0.707106769 : f32
    %20 = vector.broadcast %cst_15 : f32 to vector<256x128xf32>
    %21 = arith.mulf %11, %20 : vector<256x128xf32>
    %22 = math.erf %21 : vector<256x128xf32>
    %cst_16 = arith.constant 1.000000e+00 : f32
    %23 = vector.broadcast %cst_16 : f32 to vector<256x128xf32>
    %24 = arith.addf %23, %22 : vector<256x128xf32>
    %25 = arith.mulf %19, %24 : vector<256x128xf32>
    %26 = arith.mulf %17, %25 : vector<256x128xf32>
    %27 = arith.truncf %26 : vector<256x128xf32> to vector<256x128xbf16>
    %c0_17 = arith.constant 0 : index
    %c0_18 = arith.constant 0 : index
    %28 = vector.load %arg7[%c0_17, %c0_18] : memref<128x128xbf16, #tpu.memory_space<vmem>>, vector<128x128xbf16>
    %cst_19 = arith.constant dense<0.000000e+00> : vector<256x128xf32>
    %29 = tpu.matmul %27, %28, %cst_19 {dimension_numbers = #tpu.dot_dimension_numbers<[1], [0], [0], [1], [0, 0, 1, 1], [], []>} : vector<256x128xbf16>, vector<128x128xbf16>, vector<256x128xf32> -> vector<256x128xf32>
    %c0_20 = arith.constant 0 : index
    %c0_21 = arith.constant 0 : index
    %30 = vector.load %arg8[%c0_20, %c0_21] : memref<1x128xf32, #tpu.memory_space<vmem>>, vector<1x128xf32>
    %31 = vector.broadcast %30 : vector<1x128xf32> to vector<256x128xf32>
    %32 = arith.addf %29, %31 : vector<256x128xf32>
    %33 = arith.addf %32, %0 : vector<256x128xf32>
    %c0_22 = arith.constant 0 : index
    %c0_23 = arith.constant 0 : index
    %34 = vector.load %arg9[%c0_22, %c0_23] : memref<256x128xf32, #tpu.memory_space<vmem>>, vector<256x128xf32>
    tpu.vector_store %arg9[%c0_22, %c0_23], %33 {strides = array<i32>} : memref<256x128xf32, #tpu.memory_space<vmem>>, vector<256x128xf32>,
    return
  }
  func.func @transform_0(%arg0: i32) -> (i32, i32) {
    %c0_i32 = arith.constant 0 : i32
    %c0_i32_0 = arith.constant 0 : i32
    return %arg0, %c0_i32 : i32, i32
  }
  func.func @transform_1(%arg0: i32) -> (i32, i32) {
    %c0_i32 = arith.constant 0 : i32
    %c0_i32_0 = arith.constant 0 : i32
    return %arg0, %c0_i32 : i32, i32
  }
  func.func @transform_2(%arg0: i32) -> (i32, i32) {
    %c0_i32 = arith.constant 0 : i32
    %c0_i32_0 = arith.constant 0 : i32
    %c0_i32_1 = arith.constant 0 : i32
    return %c0_i32, %c0_i32_0 : i32, i32
  }
  func.func @transform_3(%arg0: i32) -> (i32, i32) {
    %c0_i32 = arith.constant 0 : i32
    %c0_i32_0 = arith.constant 0 : i32
    %c0_i32_1 = arith.constant 0 : i32
    return %c0_i32, %c0_i32_0 : i32, i32
  }
  func.func @transform_4(%arg0: i32) -> (i32, i32) {
    %c0_i32 = arith.constant 0 : i32
    %c0_i32_0 = arith.constant 0 : i32
    %c0_i32_1 = arith.constant 0 : i32
    return %c0_i32, %c0_i32_0 : i32, i32
  }
  func.func @transform_5(%arg0: i32) -> (i32, i32) {
    %c0_i32 = arith.constant 0 : i32
    %c0_i32_0 = arith.constant 0 : i32
    %c0_i32_1 = arith.constant 0 : i32
    return %c0_i32, %c0_i32_0 : i32, i32
  }
  func.func @transform_6(%arg0: i32) -> (i32, i32) {
    %c0_i32 = arith.constant 0 : i32
    %c0_i32_0 = arith.constant 0 : i32
    %c0_i32_1 = arith.constant 0 : i32
    return %c0_i32, %c0_i32_0 : i32, i32
  }
  func.func @transform_7(%arg0: i32) -> (i32, i32) {
    %c0_i32 = arith.constant 0 : i32
    %c0_i32_0 = arith.constant 0 : i32
    %c0_i32_1 = arith.constant 0 : i32
    return %c0_i32, %c0_i32_0 : i32, i32
  }
  func.func @transform_8(%arg0: i32) -> (i32, i32) {
    %c0_i32 = arith.constant 0 : i32
    %c0_i32_0 = arith.constant 0 : i32
    return %arg0, %c0_i32 : i32, i32
  }
  func.func @transform_9(%arg0: i32) -> (i32, i32) {
    %c0_i32 = arith.constant 0 : i32
    %c0_i32_0 = arith.constant 0 : i32
    return %arg0, %c0_i32 : i32, i32
  }
}

</mosaic_0001>

<bundles_post_ra>
// kernel: ppe_conv.1
= control target key start
LH: loop header
LB: loop body
LE: loop exit
PB: predicated region body
PF: predicated region fallthrough
CT: control target
= control target key end

     0   :  { %s6237_s0 = inlined_call_operand.hbm [shape: f32[1000,128], index: 0, kind: input, shape index: {}, may-alias: {0,8}]   ;;  %s6238_s1 = inlined_call_operand.hbm [shape: f32[1000,128], index: 1, kind: input, shape index: {}, may-alias: {1,9}]   ;;  %s6239_s2 = inlined_call_operand.hbm [shape: bf16[128,256], index: 2, kind: input, shape index: {}]   ;;  %s6240_s3 = inlined_call_operand.vmem [shape: f32[1,256], index: 3, kind: input, shape index: {}]   ;;  %s6241_s4 = inlined_call_operand.hbm [shape: bf16[128,128], index: 4, kind: input, shape index: {}]   ;;  %s6242_s5 = inlined_call_operand.vmem [shape: f32[1,128], index: 5, kind: input, shape index: {}]   ;;  %s6243_s6 = inlined_call_operand.hbm [shape: bf16[128,128], index: 6, kind: input, shape index: {}]   ;;  %s6244_s7 = inlined_call_operand.vmem [shape: f32[1,128], index: 7, kind: input, shape index: {}]   ;;  %s6245_s8 = inlined_call_operand.hbm [shape: f32[1000,128], index: 8, kind: output, shape index: {0}, may-alias: {0,8}]   ;;  %s6246_s9 = inlined_call_operand.hbm [shape: f32[1000,128], index: 9, kind: output, shape index: {1}, may-alias: {1,9}]  }
   0x1   :  { %6257 = sst [smem:[#allocation29_spill]] %s6241_s4 }
   0x2   :  { %6258 = sst [smem:[#allocation30_spill]] %s6246_s9 }
   0x3   :  { %15 = vsyncpa [#allocation3], 0 }
   0x4   :  { %17 = vsyncpa [#allocation3 + $0x1], 0 }
   0x5   :  { %18 = vsyncpa [#allocation6], 0 }
   0x6   :  { %20 = vsyncpa [#allocation6 + $0x1], 0 }
   0x7   :  { %21 = vsyncpa [#allocation9], 0 }
   0x8   :  { %22 = vsyncpa [#allocation4], 0 }
   0x9   :  { %24 = vsyncpa [#allocation4 + $0x1], 0 }
   0xa   :  { %25 = vsyncpa [#allocation13], 0 }
   0xb   :  { %27 = vsyncpa [#allocation13 + $0x1], 0  ;;  %s3770_s30 = smov 0   ;;  %s3772_s10 = smov 0  }
   0xc   :  { %s3774_s11 = smov 0   ;;  %s3776_s12 = smov 0  }
   0xd LB: > { %6259 = sst [smem:[#allocation20_spill]] %s3687_s30  ;;  %s3791_s13 = sadd.s32 4294967295, %s3699_s12   ;;  %s3699_s12 = sphi %s3776_s12, %s6422_s12   ;;  %s3695_s11 = sphi %s3774_s11, %s6426_s11   ;;  %s3691_s10 = sphi %s3772_s10, %s6425_s10   ;;  %s3687_s30 = sphi %s3770_s30, %s6424_s30  }
   0xe   : > { %s2972_s14 = sadd.s32 4294967294, %s3699_s12   ;;  %s3795_s15 = sadd.s32 1, %s3699_s12  }
   0xf   : > { %6260 = sst [smem:[#allocation21_spill]] %s3795_s15  ;;  %s40_s16 = sadd.s32 1, %s3695_s11 }
  0x10   : > { %s37_s17 = ssub.s32 %s3699_s12, %s3795_s15  ;;  %p47_p0 = scmp.ne.s32.totalorder %s3695_s11, %s3691_s10 }
  0x11   : > { %p38_p1 = scmp.eq.s32.totalorder %s37_s17, 0  ;;  %p48_p2 = scmp.eq.s32.totalorder %s3699_s12, 0 }
  0x12   : > { %p53_p3 = scmp.ne.s32.totalorder %s3691_s10, %s3687_s30  ;;  %p6253_p4 = scmp.eq.s32.totalorder %s3791_s13, 0 }
  0x13   : > { %s3807_s18 = scalar_select %p38_p1, %s3695_s11, %s40_s16  }
  0x14   : > { %p3809_p5 = por %p48_p2, %p47_p0  ;;  %p3815_p6 = por %p6253_p4, %p53_p3 }
  0x15   : > { %6261 = sst [smem:[#allocation22_spill]] %s3807_s18  ;;  %p229_p7 = scmp.eq.s32.totalorder %s3791_s13, 3 }
  0x16   : > { %p235_p8 = scmp.eq.s32.totalorder %s2972_s14, 3  ;;  %p2973_p9 = scmp.ge.s32.totalorder %s3699_s12, 1 }
  0x17   : > { %p268_p10 = scmp.lt.s32.totalorder %s3699_s12, 5  ;;  %p3822_p11 = por %p229_p7, %p47_p0 }
  0x18   : > { %p3826_p12 = por %p235_p8, %p53_p3  ;;  %s6268_s4 = sld [smem:[#allocation29_spill]] }
  0x19   : > { %s6264_s21 = scalar_select %p3822_p11, 1, 0 }
  0x1a   : > { %s6265_s22 = scalar_select %p3826_p12, 1, 0 }
  0x1b   : > { %p3830_p13 = pnand %p2973_p9, %p268_p10  ;;  %s3701_s27 = smov [#allocation8]  }
  0x1c   : > { %6266 = sst [smem:[#allocation23_spill]] %s6265_s22  ;;  %s298_s28 = sshll.u32 %s3701_s27, 4  ;;  %s299_s28 = int_to_ptr.vmem [resolvable:$true] %s298_s28 }
  0x1d   : > { %p3228_p1 = pneg %p3830_p13  ;;  %s279_s17 = sshll.u32 %s6239_s2, 4  ;;  %s280_s17 = int_to_ptr.hbm [resolvable:$true] %s279_s17 }
  0x1e   : > { %s296_s26 = sshll.u32 %s6268_s4, 4  ;;  %s3702_s24 = smov 64   ;;  %s297_s26 = int_to_ptr.hbm [resolvable:$true] %s296_s26 }
  0x1f   : > { %p3841_p0 = pnand %p3228_p1, %p6253_p4  ;;  %s3703_s25 = smov 4  }
  0x20   : > { %s3704_s4 = smov [#allocation7]   ;;  %s313_s22 = sshll.u32 %s6243_s6, 4  ;;  %s314_s22 = int_to_ptr.hbm [resolvable:$true] %s313_s22 }
  0x21   : > { %3234 = dma.hbm_to_vmem [thread:$0]  (!%p3841_p0), %s297_s26, 1024, %s299_s28, [#allocation9], %s3702_s24, %s3702_s24, %s3703_s25  }
  0x22   : > { %s281_s27 = sshll.u32 %s3704_s4, 4  ;;  %s3705_s30 = smov 128   ;;  %s282_s27 = int_to_ptr.vmem [resolvable:$true] %s281_s27 }
  0x23   : > { %s3706_s9 = smov 8   ;;  %s3707_s14 = smov [#allocation10]  }
  0x24   : > { %3231 = dma.hbm_to_vmem [thread:$0]  (!%p3841_p0), %s280_s17, 2048, %s282_s27, [#allocation6], %s3705_s30, %s3705_s30, %s3706_s9  }
  0x25   : > { %s315_s16 = sshll.u32 %s3707_s14, 4  ;;  %p2977_p2 = scmp.ge.s32.totalorder %s3699_s12, 4  ;;  %s316_s16 = int_to_ptr.vmem [resolvable:$true] %s315_s16 }
  0x26   : > { %3237 = dma.hbm_to_vmem [thread:$0]  (!%p3841_p0), %s314_s22, 1024, %s316_s16, [#allocation9], %s3702_s24, %s3702_s24, %s3703_s25  }
  0x27   : > { %328 = sbr.rel (%p2977_p2) target bundleno = 117 (0x75), region = 40 }
  0x2c   : > { %331 = sbr.rel (!%p3809_p5) target bundleno = 81 (0x51), region = 44  ;;  %s332_s4 = sand.u32 (%p3809_p5), 1, %s3695_s11  }
  0x2d   : > { %s2979_s15 = sshll.u32 (%p3809_p5), %s3699_s12, 5  ;;  %s2978_s18 = sshll.u32 (%p3809_p5), %s332_s4, 8 }
  0x2e   : > { %s338_s26 = ssub.s32 (%p3809_p5), 125, %s2979_s15  ;;  %s3865_s22 = scalar_lea.sflag (%p3809_p5), [#allocation3], %s332_s4 }
  0x2f   : > { %p339_p3 = scmp.lt.s32.totalorder (%p3809_p5), %s338_s26, 32  ;;  %s336_s29 = scalar_lea.vmem (%p3809_p5), [#allocation2], %s2978_s18 }
  0x31   : > { %s6428_s26 = smov (!%p339_p3, %s338_s26), 32 }
  0x32   : > { %s2980_s9 = sshll.u32 %s6428_s26, 3 }
  0x33   : > { %s342_s30 = ssub.s32 256, %s2980_s9 }
  0x34   : > { %s343_s28 = sshll.u32 %s342_s30, 4 }
  0x35   : > { %344 = vsyncadd %s3865_s22, %s343_s28  ;;  %p3868_p7 = scmp.ne.s32.totalorder %s2980_s9, 0  ;;  %s3176_s24 = sshll.u32 %s3699_s12, 8 }
  0x36   : > { %s347_s14 = scalar_lea.hbm %s6237_s0, %s3176_s24  ;;  %s3876_s16 = sshll.u32 %s336_s29, 4  ;;  %s352_s16 = int_to_ptr.vmem [resolvable:$true] %s3876_s16 }
  0x37   : > { %s349_s4 = sshll.u32 %s347_s14, 4  ;;  %s6252_s15 = sshll.u32 %s6428_s26, 7  ;;  %s3879_s4 = int_to_ptr.hbm [resolvable:$true] %s349_s4 }
  0x38   : > { %s3489_s18 = sshra.s32 %s3879_s4, 4  ;;  %s3491_s9 = sshrl.u32 %s6252_s15, 4  ;;  %s3490_s18 = int_to_ptr.hbm [resolvable:$true] %s3489_s18 }
  0x39   : > { %s3496_s30 = scalar_lea.hbm %s3490_s18, %s3491_s9  ;;  %s3500_s29 = scalar_lea.hbm %s6237_s0, 1000 }
  0x3a   : > { %p3497_p8 = scmp.ne.s32.totalorder %s3490_s18, %s3496_s30  ;;  %p3501_p1 = scmp.lt.s32.totalorder %s3490_s18, %s6237_s0 }
  0x3b   : > { %p3502_p0 = scmp.lt.s32.totalorder %s3500_s29, %s3496_s30 }
  0x3c   : > { %p3498_p9 = pnand %p3497_p8, %p3868_p7 }
  0x3d   : > { %p3503_p2 = por %p3502_p0, %p3501_p1 }
  0x3e   : > { %p3499_p10 = pneg %p3498_p9 }
  0x40   : > { %p3504_p3 = pnand %p3503_p2, %p3499_p10 }
  0x42   : > { %3507 = shalt.err (!%p3504_p3)
}
  0x43   : > { %s3508_s14 = sshra.s32 %s352_s16, 4  ;;  %s3708_s28 = smov [#allocation2]   ;;  %s3509_s14 = int_to_ptr.vmem [resolvable:$true] %s3508_s14 }
  0x44   : > { %s3515_s15 = scalar_lea.vmem %s3509_s14, %s3491_s9  ;;  %s3519_s24 = scalar_lea.vmem %s3708_s28, 512 }
  0x45   : > { %p3516_p8 = scmp.ne.s32.totalorder %s3509_s14, %s3515_s15  ;;  %p3521_p12 = scmp.lt.s32.totalorder %s3519_s24, %s3515_s15 }
  0x47   : > { %p3517_p9 = pnand %p3516_p8, %p3868_p7 }
  0x49   : > { %p3518_p4 = pneg %p3517_p9 }
  0x4b   : > { %p3523_p11 = pnand %p3521_p12, %p3518_p4 }
  0x4d   : > { %3526 = shalt.err (!%p3523_p11)
}
  0x4e   : > { %s3709_s18 = smov 128   ;;  %s3710_s30 = smov 8  }
  0x4f   : > { %s6271_s29 = sshll.u32 %s6428_s26, 7 }
  0x50   : > { %357 = dma.hbm_to_vmem [thread:$0]  (%p3868_p7), %s3879_s4, %s6271_s29, %s352_s16, %s3865_s22, %s3709_s18, %s3709_s18, %s3710_s30  }
  0x51 PF: > { %360 = sbr.rel (!%p3809_p5) target bundleno = 117 (0x75), region = 48  ;;  %s361_s15 = sand.u32 (%p3809_p5), 1, %s3699_s12  }
  0x52   : > { %s363_s9 = sand.u32 (%p3809_p5), 1, %s3695_s11   ;;  %s2986_s27 = sshll.u32 (%p3809_p5), %s3699_s12, 5 }
  0x53   : > { %s2985_s25 = sshll.u32 (%p3809_p5), %s363_s9, 8  ;;  %s367_s14 = ssub.s32 (%p3809_p5), 125, %s2986_s27 }
  0x54   : > { %p368_p4 = scmp.lt.s32.totalorder (%p3809_p5), %s367_s14, 32  ;;  %s3913_s22 = scalar_lea.sflag (%p3809_p5), [#allocation6], %s361_s15 }
  0x55   : > { %s365_s19 = scalar_lea.vmem (%p3809_p5), [#allocation5], %s2985_s25 }
  0x56   : > { %s6430_s14 = smov (!%p368_p4, %s367_s14), 32 }
  0x57   : > { %s2987_s17 = sshll.u32 %s6430_s14, 3 }
  0x58   : > { %s371_s28 = ssub.s32 256, %s2987_s17 }
  0x59   : > { %s372_s26 = sshll.u32 %s371_s28, 4 }
  0x5a   : > { %373 = vsyncadd %s3913_s22, %s372_s26  ;;  %p3916_p5 = scmp.ne.s32.totalorder %s2987_s17, 0  ;;  %s3177_s4 = sshll.u32 %s3699_s12, 8 }
  0x5b   : > { %s376_s30 = scalar_lea.hbm %s6238_s1, %s3177_s4  ;;  %s3924_s29 = sshll.u32 %s365_s19, 4  ;;  %s381_s29 = int_to_ptr.vmem [resolvable:$true] %s3924_s29 }
  0x5c   : > { %s378_s15 = sshll.u32 %s376_s30, 4  ;;  %s2991_s9 = sshll.u32 %s6430_s14, 7  ;;  %s3927_s15 = int_to_ptr.hbm [resolvable:$true] %s378_s15 }
  0x5d   : > { %s3528_s25 = sshra.s32 %s3927_s15, 4  ;;  %s3530_s27 = sshrl.u32 %s2991_s9, 4  ;;  %s3529_s25 = int_to_ptr.hbm [resolvable:$true] %s3528_s25 }
  0x5e   : > { %s3535_s17 = scalar_lea.hbm %s3529_s25, %s3530_s27  ;;  %s3539_s19 = scalar_lea.hbm %s6238_s1, 1000 }
  0x5f   : > { %p3536_p11 = scmp.ne.s32.totalorder %s3529_s25, %s3535_s17  ;;  %p3540_p10 = scmp.lt.s32.totalorder %s3529_s25, %s6238_s1 }
  0x60   : > { %p3541_p1 = scmp.lt.s32.totalorder %s3539_s19, %s3535_s17 }
  0x61   : > { %p3537_p12 = pnand %p3536_p11, %p3916_p5 }
  0x62   : > { %p3542_p0 = por %p3541_p1, %p3540_p10 }
  0x63   : > { %p3538_p7 = pneg %p3537_p12 }
  0x65   : > { %p3543_p2 = pnand %p3542_p0, %p3538_p7 }
  0x67   : > { %3546 = shalt.err (!%p3543_p2)
}
  0x68   : > { %s3547_s18 = sshra.s32 %s381_s29, 4  ;;  %s3711_s28 = smov [#allocation5]   ;;  %s3548_s18 = int_to_ptr.vmem [resolvable:$true] %s3547_s18 }
  0x69   : > { %s3554_s30 = scalar_lea.vmem %s3548_s18, %s3530_s27  ;;  %s3558_s26 = scalar_lea.vmem %s3711_s28, 512 }
  0x6a   : > { %p3555_p3 = scmp.ne.s32.totalorder %s3548_s18, %s3554_s30  ;;  %p3560_p4 = scmp.lt.s32.totalorder %s3558_s26, %s3554_s30 }
  0x6c   : > { %p3556_p8 = pnand %p3555_p3, %p3916_p5 }
  0x6e   : > { %p3557_p9 = pneg %p3556_p8 }
  0x70   : > { %p3562_p11 = pnand %p3560_p4, %p3557_p9 }
  0x72   : > { %3565 = shalt.err (!%p3562_p11)
}
  0x73   : > { %s3712_s25 = smov 128   ;;  %s3713_s17 = smov 8  }
  0x74   : > { %386 = dma.hbm_to_vmem [thread:$0]  (%p3916_p5), %s3927_s15, %s2991_s9, %s381_s29, %s3913_s22, %s3712_s25, %s3712_s25, %s3713_s17  }
  0x75 PF: > { %392 = sbr.rel (%p3830_p13) target bundleno = 986 (0x3da), region = 52 }
  0x7a   : > { %s3956_s27 = sand.u32 1, %s3691_s10  }
  0x7b   : > { %s3959_s19 = sshll.u32 %s3956_s27, 8  ;;  %s395_s4 = scalar_lea.sflag [#allocation3], %s3956_s27 }
  0x7c   : > { %s3963_s24 = scalar_lea.vmem [#allocation2], %s3959_s19 }
  0x7d   : > { %3662 = dma.done.wait (%p3815_p6), %s395_s4, 4096  }
  0x7e   : > { %3664 = vsyncadd (%p3815_p6), %s395_s4, 4294963200  ;;  %s404_s23 = sand.u32 1, %s3791_s13   ;;  %s3971_s22 = scalar_lea.vmem [#allocation5], %s3959_s19 }
  0x7f   : > { %s405_s14 = scalar_lea.sflag [#allocation6], %s404_s23 }
  0x80   : > { %3666 = dma.done.wait (%p3815_p6), %s405_s14, 4096  }
  0x81   : > { %3668 = vsyncadd (%p3815_p6), %s405_s14, 4294963200  ;;  %p6273_p13 = scmp.eq.s32.totalorder %s3791_s13, 0 }
  0x83   : > { %3670 = dma.done.wait (%p6273_p13), [#allocation6], 2048   ;;  %p6274_p5 = pmov %p6273_p13 }
  0x85   : > { %3672 = vsyncadd (%p6274_p5), [#allocation6], 4294965248  ;;  %p6275_p12 = pmov %p6274_p5 }
  0x86   : > { %p6276_p7 = pmov %p6274_p5 }
  0x87   : > { %3674 = dma.done.wait (%p6275_p12), [#allocation9], 2048  }
  0x88   : > { %3676 = vsyncadd (%p6276_p7), [#allocation9], 4294965248  ;;  %v3058_v0 = vld [vmem:[#allocation7 + $0x70] sm:$0xf]  ;;  %v3193_v1 = vld [vmem:[#allocation7 + $0x74] sm:$0xf0] }
  0x89   : > { %v3050_v2 = vld [vmem:[#allocation7 + $0x60] sm:$0xf]  ;;  %v3059_v3 = vor.u32 %v3193_v1, %v3058_v0  ;;  %v3191_v4 = vld [vmem:[#allocation7 + $0x64] sm:$0xf0]  ;;  %v3042_v6 = vld [vmem:[#allocation7 + $0x50] sm:$0xf] }
  0x8a   : > { %v3051_v5 = vor.u32 %v3191_v4, %v3050_v2  ;;  %v3189_v7 = vld [vmem:[#allocation7 + $0x54] sm:$0xf0]  ;;  %v489_v8 = vld [vmem:[%s3963_s24] sm:$0xff]  ;;  %v490_v9 = vld [vmem:[%s3963_s24 + $0x8] sm:$0xff]  ;;  %s3993_s20 = scalar_lea.vmem [#allocation12], %s3959_s19  ;;  %s5666_s25 = scalar_lea.vmem [#allocation11], %s3959_s19 }
  0x8b   : > { %735 = vmatpush.bf16.msra.mxu0 %v3059_v3  ;;  %v521_v10 = vld [vmem:[%s3971_s22] sm:$0xff]  ;;  %v522_v11 = vld [vmem:[%s3971_s22 + $0x8] sm:$0xff]  ;;  %v3192_v12 = vld [vmem:[#allocation7 + $0x74] sm:$0xf]  ;;  %v3043_v13 = vor.u32 %v3189_v7, %v3042_v6  ;;  %s2764_s4 = scalar_lea.sflag [#allocation4], %s3956_s27  ;;  %p6411_p6 = scmp.ne.s32.totalorder %s6264_s21, 0 }
  0x8c   : > { %v3989_v14 = vadd.f32 %v521_v10, %v489_v8  ;;  %v3060_v15 = vld [vmem:[#allocation7 + $0x78] sm:$0xf0]  ;;  %v3190_v16 = vld [vmem:[#allocation7 + $0x64] sm:$0xf]  ;;  %v3052_v17 = vld [vmem:[#allocation7 + $0x68] sm:$0xf0]  ;;  %v554_v20 = vadd.f32 %v522_v11, %v490_v9 }
  0x8d   : > { %v3034_v18 = vld [vmem:[#allocation7 + $0x40] sm:$0xf]  ;;  %v3187_v19 = vld [vmem:[#allocation7 + $0x44] sm:$0xf0]  ;;  %v3063_v21 = vor.u32 %v3192_v12, %v3060_v15  ;;  %v491_v22 = vld [vmem:[%s3963_s24 + $0x10] sm:$0xff]  ;;  %v3055_v26 = vor.u32 %v3190_v16, %v3052_v17  ;;  %s3162_s14 = sshll.u32 (%p6411_p6), %s3791_s13, 5 }
  0x8e   : > { %585 = vst [vmem:[%s3993_s20] sm:$0xff] %v3989_v14  ;;  %v492_v23 = vld [vmem:[%s3963_s24 + $0x18] sm:$0xff]  ;;  %v523_v24 = vld [vmem:[%s3971_s22 + $0x10] sm:$0xff]  ;;  %v3035_v28 = vor.u32 %v3187_v19, %v3034_v18  ;;  %v3018_v36 = vld [vmem:[#allocation7 + $0x20] sm:$0xf]  ;;  %v617_v62 = vpack.c.bf16 %v554_v20, %v3989_v14 }
  0x8f   : > { %736 = vmatpush.bf16.msra.mxu0 %v3051_v5  ;;  %v524_v25 = vld [vmem:[%s3971_s22 + $0x18] sm:$0xff]  ;;  %586 = vst [vmem:[%s3993_s20 + $0x8] sm:$0xff] %v554_v20  ;;  %824 = vmatpush.bf16.msra.mxu1 %v3063_v21  ;;  %v4001_v27 = vadd.f32 %v523_v24, %v491_v22  ;;  %v3188_v29 = vld [vmem:[#allocation7 + $0x54] sm:$0xf]  ;;  %v3026_v32 = vld [vmem:[#allocation7 + $0x30] sm:$0xf] }
  0x90   : > { %v3044_v30 = vld [vmem:[#allocation7 + $0x58] sm:$0xf0]  ;;  %v556_v31 = vadd.f32 %v524_v25, %v492_v23  ;;  %v3185_v33 = vld [vmem:[#allocation7 + $0x34] sm:$0xf0]  ;;  %v3183_v37 = vld [vmem:[#allocation7 + $0x24] sm:$0xf0] }
  0x91   : > { %587 = vst [vmem:[%s3993_s20 + $0x10] sm:$0xff] %v4001_v27  ;;  %v3047_v34 = vor.u32 %v3188_v29, %v3044_v30  ;;  %v3027_v35 = vor.u32 %v3185_v33, %v3026_v32  ;;  %v3186_v38 = vld [vmem:[#allocation7 + $0x44] sm:$0xf]  ;;  %v3036_v39 = vld [vmem:[#allocation7 + $0x48] sm:$0xf0]  ;;  %v3019_v40 = vor.u32 %v3183_v37, %v3018_v36  ;;  %v495_v2 = vld [vmem:[%s3963_s24 + $0x30] sm:$0xff] }
  0x92   : > { %588 = vst [vmem:[%s3993_s20 + $0x18] sm:$0xff] %v556_v31  ;;  %v3039_v41 = vor.u32 %v3186_v38, %v3036_v39  ;;  %v3184_v42 = vld [vmem:[#allocation7 + $0x34] sm:$0xf]  ;;  %v3028_v43 = vld [vmem:[#allocation7 + $0x38] sm:$0xf0]  ;;  %v493_v46 = vld [vmem:[%s3963_s24 + $0x20] sm:$0xff]  ;;  %v618_v9 = vpack.c.bf16 %v556_v31, %v4001_v27 }
  0x93   : > { %737 = vmatpush.bf16.msra.mxu0 %v3043_v13  ;;  %825 = vmatpush.bf16.msra.mxu1 %v3055_v26  ;;  %v3010_v44 = vld [vmem:[#allocation7 + $0x10] sm:$0xf]  ;;  %v3181_v45 = vld [vmem:[#allocation7 + $0x14] sm:$0xf0]  ;;  %v494_v47 = vld [vmem:[%s3963_s24 + $0x28] sm:$0xff]  ;;  %v3031_v50 = vor.u32 %v3184_v42, %v3028_v43 }
  0x94   : > { %v525_v48 = vld [vmem:[%s3971_s22 + $0x20] sm:$0xff]  ;;  %v526_v49 = vld [vmem:[%s3971_s22 + $0x28] sm:$0xff]  ;;  %v3011_v52 = vor.u32 %v3181_v45, %v3010_v44  ;;  %v3180_v60 = vld [vmem:[#allocation7 + $0x14] sm:$0xf] }
  0x95   : > { %v557_v51 = vadd.f32 %v525_v48, %v493_v46  ;;  %v3182_v53 = vld [vmem:[#allocation7 + $0x24] sm:$0xf]  ;;  %v3020_v54 = vld [vmem:[#allocation7 + $0x28] sm:$0xf0]  ;;  %v558_v55 = vadd.f32 %v526_v49, %v494_v47  ;;  %v3002_v56 = vld [vmem:[#allocation7] sm:$0xf] }
  0x96   : > { %v3179_v57 = vld [vmem:[#allocation7 + $0x4] sm:$0xf0]  ;;  %v3023_v58 = vor.u32 %v3182_v53, %v3020_v54  ;;  %v3012_v61 = vld [vmem:[#allocation7 + $0x18] sm:$0xf0]  ;;  %v3178_v0 = vld [vmem:[#allocation7 + $0x4] sm:$0xf] }
  0x97   : > { %738 = vmatpush.bf16.msra.mxu0 %v3035_v28  ;;  %826 = vmatpush.bf16.msra.mxu1 %v3047_v34  ;;  %589 = vst [vmem:[%s3993_s20 + $0x20] sm:$0xff] %v557_v51  ;;  %v3003_v59 = vor.u32 %v3179_v57, %v3002_v56  ;;  %v3015_v63 = vor.u32 %v3180_v60, %v3012_v61  ;;  %v3004_v1 = vld [vmem:[#allocation7 + $0x8] sm:$0xf0]  ;;  %v496_v4 = vld [vmem:[%s3963_s24 + $0x38] sm:$0xff]  ;;  %v527_v5 = vld [vmem:[%s3971_s22 + $0x30] sm:$0xff] }
  0x98   : > { %590 = vst [vmem:[%s3993_s20 + $0x28] sm:$0xff] %v558_v55  ;;  %v3007_v3 = vor.u32 %v3178_v0, %v3004_v1  ;;  %v528_v6 = vld [vmem:[%s3971_s22 + $0x38] sm:$0xff]  ;;  %v559_v7 = vadd.f32 %v527_v5, %v495_v2  ;;  %v497_v10 = vld [vmem:[%s3963_s24 + $0x40] sm:$0xff]  ;;  %v498_v11 = vld [vmem:[%s3963_s24 + $0x48] sm:$0xff]  ;;  %v619_v16 = vpack.c.bf16 %v558_v55, %v557_v51 }
  0x99   : > { %v560_v8 = vadd.f32 %v528_v6, %v496_v4  ;;  %v529_v12 = vld [vmem:[%s3971_s22 + $0x40] sm:$0xff]  ;;  %v530_v13 = vld [vmem:[%s3971_s22 + $0x48] sm:$0xff]  ;;  %v499_v17 = vld [vmem:[%s3963_s24 + $0x50] sm:$0xff] }
  0x9a   : > { %591 = vst [vmem:[%s3993_s20 + $0x30] sm:$0xff] %v559_v7  ;;  %v561_v14 = vadd.f32 %v529_v12, %v497_v10  ;;  %v562_v15 = vadd.f32 %v530_v13, %v498_v11  ;;  %v500_v18 = vld [vmem:[%s3963_s24 + $0x58] sm:$0xff]  ;;  %v531_v19 = vld [vmem:[%s3971_s22 + $0x50] sm:$0xff]  ;;  %v501_v24 = vld [vmem:[%s3963_s24 + $0x60] sm:$0xff] }
  0x9b   : > { %739 = vmatpush.bf16.msra.mxu0 %v3027_v35  ;;  %827 = vmatpush.bf16.msra.mxu1 %v3039_v41  ;;  %592 = vst [vmem:[%s3993_s20 + $0x38] sm:$0xff] %v560_v8  ;;  %v532_v20 = vld [vmem:[%s3971_s22 + $0x58] sm:$0xff]  ;;  %v563_v21 = vadd.f32 %v531_v19, %v499_v17  ;;  %v620_v23 = vpack.c.bf16 %v560_v8, %v559_v7  ;;  %v502_v25 = vld [vmem:[%s3963_s24 + $0x68] sm:$0xff]  ;;  %v533_v26 = vld [vmem:[%s3971_s22 + $0x60] sm:$0xff] }
  0x9c   : > { %593 = vst [vmem:[%s3993_s20 + $0x40] sm:$0xff] %v561_v14  ;;  %v564_v22 = vadd.f32 %v532_v20, %v500_v18  ;;  %v534_v27 = vld [vmem:[%s3971_s22 + $0x68] sm:$0xff]  ;;  %v565_v28 = vadd.f32 %v533_v26, %v501_v24  ;;  %v621_v30 = vpack.c.bf16 %v562_v15, %v561_v14  ;;  %v3201_v31 = vld [vmem:[#allocation8 + $0x38] sm:$0xff]  ;;  %v503_v32 = vld [vmem:[%s3963_s24 + $0x70] sm:$0xff] }
  0x9d   : > { %594 = vst [vmem:[%s3993_s20 + $0x48] sm:$0xff] %v562_v15  ;;  %v566_v29 = vadd.f32 %v534_v27, %v502_v25  ;;  %v504_v33 = vld [vmem:[%s3963_s24 + $0x78] sm:$0xff]  ;;  %v535_v34 = vld [vmem:[%s3971_s22 + $0x70] sm:$0xff]  ;;  %997 = vmatpush.bf16.msra.mxu2 %v3201_v31  ;;  %v3198_v41 = vld [vmem:[#allocation8 + $0x20] sm:$0xff] }
  0x9e   : > { %595 = vst [vmem:[%s3993_s20 + $0x50] sm:$0xff] %v563_v21  ;;  %v536_v35 = vld [vmem:[%s3971_s22 + $0x78] sm:$0xff]  ;;  %v3200_v36 = vld [vmem:[#allocation8 + $0x30] sm:$0xff]  ;;  %v567_v37 = vadd.f32 %v535_v34, %v503_v32  ;;  %v622_v39 = vpack.c.bf16 %v564_v22, %v563_v21  ;;  %v505_v43 = vld [vmem:[%s3963_s24 + $0x80] sm:$0xff] }
  0x9f   : > { %740 = vmatpush.bf16.msra.mxu0 %v3019_v40  ;;  %828 = vmatpush.bf16.msra.mxu1 %v3031_v50  ;;  %596 = vst [vmem:[%s3993_s20 + $0x58] sm:$0xff] %v564_v22  ;;  %v568_v38 = vadd.f32 %v536_v35, %v504_v33  ;;  %v3199_v40 = vld [vmem:[#allocation8 + $0x28] sm:$0xff]  ;;  %v3197_v42 = vld [vmem:[#allocation8 + $0x18] sm:$0xff]  ;;  %v537_v45 = vld [vmem:[%s3971_s22 + $0x80] sm:$0xff]  ;;  %v623_v46 = vpack.c.bf16 %v566_v29, %v565_v28 }
  0xa0   : > { %597 = vst [vmem:[%s3993_s20 + $0x60] sm:$0xff] %v565_v28  ;;  %v506_v44 = vld [vmem:[%s3963_s24 + $0x88] sm:$0xff]  ;;  %v569_v48 = vadd.f32 %v537_v45, %v505_v43  ;;  %v3196_v49 = vld [vmem:[#allocation8 + $0x10] sm:$0xff]  ;;  %v508_v54 = vld [vmem:[%s3963_s24 + $0x98] sm:$0xff] }
  0xa1   : > { %598 = vst [vmem:[%s3993_s20 + $0x68] sm:$0xff] %v566_v29  ;;  %998 = vmatpush.bf16.msra.mxu2 %v3200_v36  ;;  %v538_v47 = vld [vmem:[%s3971_s22 + $0x88] sm:$0xff]  ;;  %v507_v53 = vld [vmem:[%s3963_s24 + $0x90] sm:$0xff]  ;;  %v624_v56 = vpack.c.bf16 %v568_v38, %v567_v37  ;;  %v540_v57 = vld [vmem:[%s3971_s22 + $0x98] sm:$0xff] }
  0xa2   : > { %599 = vst [vmem:[%s3993_s20 + $0x70] sm:$0xff] %v567_v37  ;;  %v570_v50 = vadd.f32 %v538_v47, %v506_v44  ;;  %v3195_v51 = vld [vmem:[#allocation8 + $0x8] sm:$0xff]  ;;  %v539_v55 = vld [vmem:[%s3971_s22 + $0x90] sm:$0xff]  ;;  %v509_v60 = vld [vmem:[%s3963_s24 + $0xa0] sm:$0xff] }
  0xa3   : > { %741 = vmatpush.bf16.msra.mxu0 %v3011_v52  ;;  %829 = vmatpush.bf16.msra.mxu1 %v3023_v58  ;;  %600 = vst [vmem:[%s3993_s20 + $0x78] sm:$0xff] %v568_v38  ;;  %v3194_v52 = vld [vmem:[#allocation8] sm:$0xff]  ;;  %v571_v58 = vadd.f32 %v539_v55, %v507_v53  ;;  %v510_v61 = vld [vmem:[%s3963_s24 + $0xa8] sm:$0xff]  ;;  %v511_v10 = vld [vmem:[%s3963_s24 + $0xb0] sm:$0xff] }
  0xa4   : > { %601 = vst [vmem:[%s3993_s20 + $0x80] sm:$0xff] %v569_v48  ;;  %v542_v0 = vld [vmem:[%s3971_s22 + $0xa8] sm:$0xff]  ;;  %v649_v4 = vld [vmem:[%s6240_s3] sm:$0x3]  ;;  %v512_v11 = vld [vmem:[%s3963_s24 + $0xb8] sm:$0xff] }
  0xa5   : > { %999 = vmatpush.bf16.msra.mxu2 %v3199_v40  ;;  %602 = vst [vmem:[%s3993_s20 + $0x88] sm:$0xff] %v570_v50  ;;  %v4065_v5 = vperm.slane %v649_v4, 0  ;;  %v543_v12 = vld [vmem:[%s3971_s22 + $0xb0] sm:$0xff]  ;;  %v544_v14 = vld [vmem:[%s3971_s22 + $0xb8] sm:$0xff]  ;;  %v545_v24 = vld [vmem:[%s3971_s22 + $0xc0] sm:$0xff]  ;;  %v4085_v34 = vperm.slane %v649_v4, 1 }
  0xa6   : > { %603 = vst [vmem:[%s3993_s20 + $0x90] sm:$0xff] %v571_v58  ;;  %v575_v15 = vadd.f32 %v543_v12, %v511_v10  ;;  %v576_v17 = vadd.f32 %v544_v14, %v512_v11  ;;  %v514_v26 = vld [vmem:[%s3963_s24 + $0xc8] sm:$0xff]  ;;  %v547_v40 = vld [vmem:[%s3971_s22 + $0xd0] sm:$0xff]  ;;  %v516_v44 = vld [vmem:[%s3963_s24 + $0xd8] sm:$0xff] }
  0xa7   : > { %742 = vmatpush.bf16.msra.mxu0 %v3003_v59  ;;  %830 = vmatpush.bf16.msra.mxu1 %v3015_v63  ;;  %v572_v59 = vadd.f32 %v540_v57, %v508_v54  ;;  %v625_v63 = vpack.c.bf16 %v570_v50, %v569_v48  ;;  %v546_v27 = vld [vmem:[%s3971_s22 + $0xc8] sm:$0xff]  ;;  %v548_v45 = vld [vmem:[%s3971_s22 + $0xd8] sm:$0xff] }
  0xa8   : > { %607 = vst [vmem:[%s3993_s20 + $0xb0] sm:$0xff] %v575_v15  ;;  %v578_v29 = vadd.f32 %v546_v27, %v514_v26  ;;  %v628_v37 = vpack.c.bf16 %v576_v17, %v575_v15  ;;  %v580_v47 = vadd.f32 %v548_v45, %v516_v44 }
  0xa9   : > { %1000 = vmatpush.bf16.msra.mxu2 %v3198_v41  ;;  %604 = vst [vmem:[%s3993_s20 + $0x98] sm:$0xff] %v572_v59  ;;  %v626_v13 = vpack.c.bf16 %v572_v59, %v571_v58 }
  0xaa   : > { %743 = vmatmul.bf16.vlgmr.msra.gmra.mxu0 %v617_v62  ;;  %608 = vst [vmem:[%s3993_s20 + $0xb8] sm:$0xff] %v576_v17 }
  0xab   : > { %831 = vmatpush.bf16.msra.mxu1 %v3007_v3  ;;  %v574_v3 = vadd.f32 %v542_v0, %v510_v61  ;;  %610 = vst [vmem:[%s3993_s20 + $0xc8] sm:$0xff] %v578_v29 }
  0xac   : > { %612 = vst [vmem:[%s3993_s20 + $0xd8] sm:$0xff] %v580_v47 }
  0xad   : > { %1001 = vmatpush.bf16.msra.mxu2 %v3197_v42  ;;  %606 = vst [vmem:[%s3993_s20 + $0xa8] sm:$0xff] %v574_v3 }
  0xae   : > { %832 = vmatmul.bf16.vlgmr.msra.gmra.mxu1 %v617_v62  ;;  %v541_v62 = vld [vmem:[%s3971_s22 + $0xa0] sm:$0xff] }
  0xaf   : > { %v573_v1 = vadd.f32 %v541_v62, %v509_v60  ;;  %v517_v62 = vld [vmem:[%s3963_s24 + $0xe0] sm:$0xff] }
  0xb1   : > { %1002 = vmatpush.bf16.msra.mxu2 %v3196_v49  ;;  %605 = vst [vmem:[%s3993_s20 + $0xa0] sm:$0xff] %v573_v1  ;;  %v627_v22 = vpack.c.bf16 %v574_v3, %v573_v1 }
  0xb5   : > { %1003 = vmatpush.bf16.msra.mxu2 %v3195_v51 }
  0xb9   : > { %1004 = vmatpush.bf16.msra.mxu2 %v3194_v52 }
  0xba   : > { %748 = vmatmul.bf16.gmra.mxu0 %v618_v9 }
  0xbe   : > { %837 = vmatmul.bf16.gmra.mxu1 %v618_v9 }
  0xca   : > { %753 = vmatmul.bf16.gmra.mxu0 %v619_v16 }
  0xce   : > { %842 = vmatmul.bf16.gmra.mxu1 %v619_v16 }
  0xda   : > { %758 = vmatmul.bf16.gmra.mxu0 %v620_v23 }
  0xde   : > { %847 = vmatmul.bf16.gmra.mxu1 %v620_v23  ;;  %v513_v23 = vld [vmem:[%s3963_s24 + $0xc0] sm:$0xff] }
  0xdf   : > { %v577_v28 = vadd.f32 %v545_v24, %v513_v23  ;;  %v518_v24 = vld [vmem:[%s3963_s24 + $0xe8] sm:$0xff] }
  0xe1   : > { %609 = vst [vmem:[%s3993_s20 + $0xc0] sm:$0xff] %v577_v28  ;;  %v629_v57 = vpack.c.bf16 %v578_v29, %v577_v28 }
  0xea   : > { %763 = vmatmul.bf16.gmra.mxu0 %v621_v30 }
  0xee   : > { %852 = vmatmul.bf16.gmra.mxu1 %v621_v30 }
  0xfa   : > { %768 = vmatmul.bf16.gmra.mxu0 %v622_v39 }
  0xfe   : > { %857 = vmatmul.bf16.gmra.mxu1 %v622_v39  ;;  %v515_v39 = vld [vmem:[%s3963_s24 + $0xd0] sm:$0xff] }
  0xff   : > { %v579_v43 = vadd.f32 %v547_v40, %v515_v39 }
 0x101   : > { %611 = vst [vmem:[%s3993_s20 + $0xd0] sm:$0xff] %v579_v43 }
 0x10a   : > { %773 = vmatmul.bf16.gmra.mxu0 %v623_v46 }
 0x10e   : > { %862 = vmatmul.bf16.gmra.mxu1 %v623_v46 }
 0x11a   : > { %778 = vmatmul.bf16.gmra.mxu0 %v624_v56 }
 0x11e   : > { %867 = vmatmul.bf16.gmra.mxu1 %v624_v56 }
 0x127   : > { %v744_v2 = vpop.f32.mrf.mxu0 }
 0x128   : > { %v745_v7 = vadd.f32 %v744_v2, %v4065_v5 }
 0x12a   : > { %783 = vmatmul.bf16.gmra.mxu0 %v625_v63 }
 0x12b   : > { %v833_v30 = vpop.f32.mrf.mxu1 }
 0x12c   : > { %v4088_v36 = vadd.f32 %v833_v30, %v4085_v34 }
 0x12e   : > { %872 = vmatmul.bf16.gmra.mxu1 %v625_v63  ;;  %v4093_v42 = vmul.f32 0.70710677, %v4088_v36  ;;  %v549_v63 = vld [vmem:[%s3971_s22 + $0xe0] sm:$0xff] }
 0x12f   : > { %v746_v6 = vpop.f32.mrf.mxu0  ;;  %v581_v3 = vadd.f32 %v549_v63, %v517_v62 }
 0x130   : > { %v747_v8 = vadd.f32 %v746_v6, %v4065_v5  ;;  %v1150_v46 = vmul.f32 %v4093_v42, %v4093_v42 }
 0x131   : > { %613 = vst [vmem:[%s3993_s20 + $0xe0] sm:$0xff] %v581_v3 }
 0x132   : > { %v913_v9 = vpack.c.bf16 %v747_v8, %v745_v7  ;;  %v4106_v52 = vmin.f32 %v1150_v46, 16.0 }
 0x133   : > { %v835_v41 = vpop.f32.mrf.mxu1 }
 0x134   : > { %1005 = vmatmul.bf16.vlgmr.msra.gmra.mxu2 %v913_v9  ;;  %v4101_v48 = vadd.f32 %v835_v41, %v4085_v34  ;;  %v1163_v56 = vmul.f32 3.8918573e-05, %v4106_v52 }
 0x136   : > { %v4109_v55 = vmul.f32 0.70710677, %v4101_v48  ;;  %v1164_v60 = vadd.f32 0.001143296, %v1163_v56 }
 0x137   : > { %v749_v16 = vpop.f32.mrf.mxu0 }
 0x138   : > { %v750_v19 = vadd.f32 %v749_v16, %v4065_v5  ;;  %v1190_v58 = vmul.f32 %v4109_v55, %v4109_v55  ;;  %v1165_v2 = vmul.f32 %v1164_v60, %v4106_v52 }
 0x13a   : > { %788 = vmatmul.bf16.gmra.mxu0 %v626_v13  ;;  %v4114_v61 = vmin.f32 %v1190_v58, 16.0  ;;  %v1166_v11 = vadd.f32 0.014752088, %v1165_v2 }
 0x13b   : > { %v838_v53 = vpop.f32.mrf.mxu1 }
 0x13c   : > { %v4119_v0 = vadd.f32 %v838_v53, %v4085_v34  ;;  %v1203_v4 = vmul.f32 3.8918573e-05, %v4114_v61  ;;  %v1167_v16 = vmul.f32 %v1166_v11, %v4106_v52  ;;  %v1192_v44 = vmul.f32 2.1237322e-06, %v4114_v61 }
 0x13e   : > { %877 = vmatmul.bf16.gmra.mxu1 %v626_v13  ;;  %v4124_v7 = vmul.f32 0.70710677, %v4119_v0  ;;  %v1204_v13 = vadd.f32 0.001143296, %v1203_v4  ;;  %v1168_v26 = vadd.f32 0.112945676, %v1167_v16 }
 0x13f   : > { %v751_v18 = vpop.f32.mrf.mxu0  ;;  %v1193_v62 = vadd.f32 0.00028619796, %v1192_v44  ;;  %v3209_v16 = vld [vmem:[#allocation10 + $0x38] sm:$0xff]  ;;  %v3207_v44 = vld [vmem:[#allocation10 + $0x28] sm:$0xff] }
 0x140   : > { %v752_v20 = vadd.f32 %v751_v18, %v4065_v5  ;;  %v1230_v14 = vmul.f32 %v4124_v7, %v4124_v7  ;;  %v630_v18 = vpack.c.bf16 %v580_v47, %v579_v43  ;;  %2610 = vmatpush.bf16.msra.mxu3 %v3209_v16 }
 0x142   : > { %v914_v21 = vpack.c.bf16 %v752_v20, %v750_v19  ;;  %v1205_v19 = vmul.f32 %v1204_v13, %v4114_v61 }
 0x143   : > { %v840_v1 = vpop.f32.mrf.mxu1 }
 0x144   : > { %1010 = vmatmul.bf16.gmra.mxu2 %v914_v21  ;;  %v4130_v10 = vadd.f32 %v840_v1, %v4085_v34  ;;  %v4139_v21 = vmin.f32 %v1230_v14, 16.0  ;;  %v1206_v27 = vadd.f32 0.014752088, %v1205_v19  ;;  %v1194_v14 = vmul.f32 %v1193_v62, %v4114_v61 }
 0x146   : > { %v4135_v15 = vmul.f32 0.70710677, %v4130_v10  ;;  %v1243_v28 = vmul.f32 3.8918573e-05, %v4139_v21 }
 0x147   : > { %v754_v25 = vpop.f32.mrf.mxu0 }
 0x148   : > { %v755_v32 = vadd.f32 %v754_v25, %v4065_v5  ;;  %v1270_v23 = vmul.f32 %v4135_v15, %v4135_v15  ;;  %v550_v25 = vld [vmem:[%s3971_s22 + $0xe8] sm:$0xff] }
 0x149   : > { %v582_v29 = vadd.f32 %v550_v25, %v518_v24  ;;  %v1195_v24 = vadd.f32 0.0036580483, %v1194_v14 }
 0x14a   : > { %793 = vmatmul.bf16.gmra.mxu0 %v627_v22 }
 0x14b   : > { %v843_v17 = vpop.f32.mrf.mxu1  ;;  %614 = vst [vmem:[%s3993_s20 + $0xe8] sm:$0xff] %v582_v29  ;;  %v631_v1 = vpack.c.bf16 %v582_v29, %v581_v3 }
 0x14e   : > { %882 = vmatmul.bf16.gmra.mxu1 %v627_v22  ;;  %v1152_v22 = vmul.f32 2.1237322e-06, %v4106_v52 }
 0x14f   : > { %v756_v31 = vpop.f32.mrf.mxu0 }
 0x150   : > { %v757_v33 = vadd.f32 %v756_v31, %v4065_v5  ;;  %v1153_v30 = vadd.f32 0.00028619796, %v1152_v22  ;;  %v4147_v31 = vmin.f32 %v1270_v23, 16.0 }
 0x152   : > { %v915_v35 = vpack.c.bf16 %v757_v33, %v755_v32  ;;  %v1169_v32 = vmul.f32 %v1168_v26, %v4106_v52  ;;  %v4151_v33 = vadd.f32 %v843_v17, %v4085_v34  ;;  %v1154_v43 = vmul.f32 %v1153_v30, %v4106_v52  ;;  %v3208_v26 = vld [vmem:[#allocation10 + $0x30] sm:$0xff] }
 0x153   : > { %v845_v39 = vpop.f32.mrf.mxu1  ;;  %v1283_v45 = vmul.f32 3.8918573e-05, %v4147_v31  ;;  %2611 = vmatpush.bf16.msra.mxu3 %v3208_v26  ;;  %v1272_v16 = vmul.f32 2.1237322e-06, %v4147_v31 }
 0x154   : > { %1015 = vmatmul.bf16.gmra.mxu2 %v915_v35  ;;  %v1207_v35 = vmul.f32 %v1206_v27, %v4114_v61  ;;  %v1170_v46 = vadd.f32 0.4994258, %v1169_v32  ;;  %v4161_v47 = vmul.f32 0.70710677, %v4151_v33 }
 0x155   : > { %v1284_v58 = vadd.f32 0.001143296, %v1283_v45 }
 0x156   : > { %v1208_v53 = vadd.f32 0.112945676, %v1207_v35  ;;  %v1171_v60 = vmul.f32 %v1170_v46, %v4106_v52  ;;  %v1310_v63 = vmul.f32 %v4161_v47, %v4161_v47 }
 0x157   : > { %v759_v38 = vpop.f32.mrf.mxu0  ;;  %2612 = vmatpush.bf16.msra.mxu3 %v3207_v44 }
 0x158   : > { %v760_v50 = vadd.f32 %v759_v38, %v4065_v5  ;;  %v1244_v38 = vadd.f32 0.001143296, %v1243_v28  ;;  %v1209_v2 = vmul.f32 %v1208_v53, %v4114_v61  ;;  %v4183_v13 = vadd.f32 1.0, %v1171_v60 }
 0x159   : > { %v4186_v3 = vmin.f32 %v1310_v63, 16.0  ;;  %v520_v63 = vld [vmem:[%s3963_s24 + $0xf8] sm:$0xff] }
 0x15a   : > { %798 = vmatmul.bf16.gmra.mxu0 %v628_v37  ;;  %v1245_v56 = vmul.f32 %v1244_v38, %v4139_v21  ;;  %v1210_v17 = vadd.f32 0.4994258, %v1209_v2  ;;  %3301 = vrcp.f32 %v4183_v13  ;;  %v3206_v2 = vld [vmem:[#allocation10 + $0x20] sm:$0xff]  ;;  %vm1178_vm0 = vweird.f32 %v4183_v13 }
 0x15b   : > { %v1323_v25 = vmul.f32 3.8918573e-05, %v4186_v3  ;;  %v848_v35 = vpop.f32.mrf.mxu1  ;;  %2613 = vmatpush.bf16.msra.mxu3 %v3206_v2 }
 0x15c   : > { %v1211_v27 = vmul.f32 %v1210_v17, %v4114_v61 }
 0x15e   : > { %887 = vmatmul.bf16.gmra.mxu1 %v628_v37  ;;  %v4202_v45 = vadd.f32 1.0, %v1211_v27 }
 0x15f   : > { %v761_v49 = vpop.f32.mrf.mxu0 }
 0x160   : > { %v762_v51 = vadd.f32 %v761_v49, %v4065_v5  ;;  %3303 = vrcp.f32 %v4202_v45  ;;  %vm1218_vm4 = vweird.f32 %v4202_v45 }
 0x162   : > { %v916_v54 = vpack.c.bf16 %v762_v51, %v760_v50  ;;  %v519_v50 = vld [vmem:[%s3963_s24 + $0xf0] sm:$0xff] }
 0x163   : > { %v551_v51 = vld [vmem:[%s3971_s22 + $0xf0] sm:$0xff] }
 0x164   : > { %1020 = vmatmul.bf16.gmra.mxu2 %v916_v54  ;;  %v4166_v54 = vadd.f32 %v845_v39, %v4085_v34  ;;  %v1196_v39 = vmul.f32 %v1195_v24, %v4114_v61 }
 0x166   : > { %v4176_v4 = vmul.f32 0.70710677, %v4166_v54  ;;  %v1197_v60 = vadd.f32 0.05243302, %v1196_v39 }
 0x167   : > { %v764_v59 = vpop.f32.mrf.mxu0 }
 0x168   : > { %v765_v8 = vadd.f32 %v764_v59, %v4065_v5  ;;  %v4169_v59 = vadd.f32 %v551_v51, %v519_v50  ;;  %v4208_v50 = vpop.eup %3301 }
 0x169   : > { %vm1179_vm1 = vweird.f32 %v4208_v50 }
 0x16a   : > { %803 = vmatmul.bf16.gmra.mxu0 %v629_v57  ;;  %615 = vst [vmem:[%s3993_s20 + $0xf0] sm:$0xff] %v4169_v59  ;;  %vm4272_vm2 = vmor %vm1178_vm0, %vm1179_vm1 }
 0x16e   : > { %892 = vmatmul.bf16.gmra.mxu1 %v629_v57  ;;  %v1155_v57 = vadd.f32 0.0036580483, %v1154_v43 }
 0x16f   : > { %v766_v6 = vpop.f32.mrf.mxu0 }
 0x170   : > { %v767_v9 = vadd.f32 %v766_v6, %v4065_v5  ;;  %v1156_v11 = vmul.f32 %v1155_v57, %v4106_v52 }
 0x172   : > { %v917_v12 = vpack.c.bf16 %v767_v9, %v765_v8  ;;  %v1232_v8 = vmul.f32 2.1237322e-06, %v4139_v21  ;;  %v1246_v9 = vadd.f32 0.014752088, %v1245_v56  ;;  %v1157_v22 = vadd.f32 0.05243302, %v1156_v11 }
 0x174   : > { %1025 = vmatmul.bf16.gmra.mxu2 %v917_v12  ;;  %v1285_v12 = vmul.f32 %v1284_v58, %v4147_v31  ;;  %v1233_v19 = vadd.f32 0.00028619796, %v1232_v8 }
 0x176   : > { %v1286_v23 = vadd.f32 0.014752088, %v1285_v12  ;;  %v1234_v30 = vmul.f32 %v1233_v19, %v4139_v21 }
 0x177   : > { %v769_v20 = vpop.f32.mrf.mxu0 }
 0x178   : > { %v770_v40 = vadd.f32 %v769_v20, %v4065_v5  ;;  %v1247_v20 = vmul.f32 %v1246_v9, %v4139_v21  ;;  %v1287_v38 = vmul.f32 %v1286_v23, %v4147_v31  ;;  %v1235_v51 = vadd.f32 0.0036580483, %v1234_v30  ;;  %v850_v23 = vpop.f32.mrf.mxu1 }
 0x179   : > { %v4240_v39 = vadd.f32 %v850_v23, %v4085_v34 }
 0x17a   : > { %808 = vmatmul.bf16.gmra.mxu0 %v630_v18  ;;  %v1248_v32 = vadd.f32 0.112945676, %v1247_v20  ;;  %v1288_v58 = vadd.f32 0.112945676, %v1287_v38  ;;  %v1236_v12 = vmul.f32 %v1235_v51, %v4139_v21  ;;  %v1198_v20 = vmul.f32 %v1197_v60, %v4114_v61 }
 0x17b   : > { %v1312_v60 = vmul.f32 2.1237322e-06, %v4186_v3 }
 0x17c   : > { %v1249_v53 = vmul.f32 %v1248_v32, %v4139_v21  ;;  %v1289_v17 = vmul.f32 %v1288_v58, %v4147_v31  ;;  %v1273_v32 = vadd.f32 0.00028619796, %v1272_v16 }
 0x17e   : > { %897 = vmatmul.bf16.gmra.mxu1 %v630_v18  ;;  %v1350_v18 = vmul.f32 %v4176_v4, %v4176_v4  ;;  %v1250_v14 = vadd.f32 0.4994258, %v1249_v53  ;;  %v1290_v38 = vadd.f32 0.4994258, %v1289_v17 }
 0x17f   : > { %v771_v37 = vpop.f32.mrf.mxu0 }
 0x180   : > { %v772_v41 = vadd.f32 %v771_v37, %v4065_v5  ;;  %v4194_v28 = vmin.f32 %v1350_v18, 16.0  ;;  %v1158_v37 = vmul.f32 %v1157_v22, %v4106_v52  ;;  %v1251_v30 = vmul.f32 %v1250_v14, %v4139_v21 }
 0x181   : > { %v1291_v58 = vmul.f32 %v1290_v38, %v4147_v31 }
 0x182   : > { %v918_v49 = vpack.c.bf16 %v772_v41, %v770_v40  ;;  %v1324_v40 = vadd.f32 0.001143296, %v1323_v25  ;;  %v1363_v46 = vmul.f32 3.8918573e-05, %v4194_v28  ;;  %v1159_v57 = vadd.f32 0.18741608, %v1158_v37 }
 0x183   : > { %v4237_v37 = vmul.f32 0.5, %v4101_v48 }
 0x184   : > { %1030 = vmatmul.bf16.gmra.mxu2 %v918_v49  ;;  %v4206_v49 = vadd.f32 %v848_v35, %v4085_v34  ;;  %v1325_v62 = vmul.f32 %v1324_v40, %v4186_v3  ;;  %v1364_v8 = vadd.f32 0.001143296, %v1363_v46  ;;  %v1160_v19 = vmul.f32 %v1159_v57, %v4106_v52  ;;  %v4231_v35 = vpop.eup %3303 }
 0x185   : > { %v4234_v52 = vmul.f32 0.5, %v4088_v36  ;;  %v1214_v51 = vmul.f32 %v4231_v35, %v4202_v45  ;;  %v1182_v57 = vand.u32 2147483647, %v4183_v13  ;;  %vm1219_vm5 = vweird.f32 %v4231_v35 }
 0x186   : > { %v4218_v9 = vmul.f32 0.70710677, %v4206_v49  ;;  %v1326_v22 = vadd.f32 0.014752088, %v1325_v62  ;;  %v1365_v25 = vmul.f32 %v1364_v8, %v4194_v28  ;;  %v1161_v40 = vadd.f32 1.1283791, %v1160_v19  ;;  %vm4316_vm7 = vmor %vm1218_vm4, %vm1219_vm5 }
 0x187   : > { %v774_v6 = vpop.f32.mrf.mxu0  ;;  %v4260_v62 = vmul.f32 0.70710677, %v4240_v39  ;;  %v1215_v16 = vsub.f32 1.0, %v1214_v51  ;;  %vm4282_vm3 = vcmp.eq.f32.partialorder %v1182_v57, 8.507059e+37 }
 0x188   : > { %v775_v41 = vadd.f32 %v774_v6, %v4065_v5  ;;  %v1174_v6 = vmul.f32 %v4208_v50, %v4183_v13  ;;  %v1390_v26 = vmul.f32 %v4218_v9, %v4218_v9  ;;  %v1366_v36 = vadd.f32 0.014752088, %v1365_v25 }
 0x18a   : > { %813 = vmatmul.bf16.gmra.mxu0 %v631_v1  ;;  %v1175_v24 = vsub.f32 1.0, %v1174_v6  ;;  %v4248_v46 = vmin.f32 %v1390_v26, 16.0  ;;  %v1367_v8 = vmul.f32 %v1366_v36, %v4194_v28 }
 0x18c   : > { %v1176_v44 = vmul.f32 %v4208_v50, %v1175_v24  ;;  %v1162_v24 = vmul.f32 %v1161_v40, %v4093_v42  ;;  %v1216_v42 = vmul.f32 %v4231_v35, %v1215_v16  ;;  %v4324_v16 = vmul.f32 0.5, %v4151_v33 }
 0x18e   : > { %902 = vmatmul.bf16.gmra.mxu1 %v631_v1  ;;  %v552_v1 = vld [vmem:[%s3971_s22 + $0xf8] sm:$0xff]  ;;  %v1177_v6 = vadd.f32 %v4208_v50, %v1176_v44  ;;  %s2777_s22 = ssub.s32 (%p6411_p6), 125, %s3162_s14 }
 0x18f   : > { %v776_v29 = vpop.f32.mrf.mxu0  ;;  %v584_v18 = vadd.f32 %v552_v1, %v520_v63  ;;  %v1184_v63 = vand.u32 2147483648, %v4183_v13  ;;  %p2778_p10 = scmp.lt.s32.totalorder (%p6411_p6), %s2777_s22, 32 }
 0x190   : > { %v777_v43 = vadd.f32 %v776_v29, %v4065_v5  ;;  %v1237_v29 = vadd.f32 0.05243302, %v1236_v12  ;;  %v1403_v12 = vmul.f32 3.8918573e-05, %v4248_v46 }
 0x191   : > { %616 = vst [vmem:[%s3993_s20 + $0xf8] sm:$0xff] %v584_v18  ;;  %v632_v27 = vpack.c.bf16 %v584_v18, %v4169_v59  ;;  %v4243_v59 = vmul.f32 0.5, %v4119_v0  ;;  %v1274_v0 = vmul.f32 %v1273_v32, %v4147_v31  ;;  %v1185_v26 = vor.u32 1.1754944e-38, %v1184_v63  ;;  %v853_v32 = vpop.f32.mrf.mxu1 }
 0x192   : > { %v919_v56 = vpack.c.bf16 %v777_v43, %v775_v41  ;;  %v1199_v41 = vadd.f32 0.18741608, %v1198_v20  ;;  %v1327_v43 = vmul.f32 %v1326_v22, %v4186_v3  ;;  %v1238_v53 = vmul.f32 %v1237_v29, %v4139_v21 }
 0x193   : > { %v1275_v18 = vadd.f32 0.0036580483, %v1274_v0  ;;  %v1313_v20 = vadd.f32 0.00028619796, %v1312_v60  ;;  %v1430_v22 = vmul.f32 %v4260_v62, %v4260_v62  ;;  %v1368_v29 = vadd.f32 0.112945676, %v1367_v8 }
 0x194   : > { %1035 = vmatmul.bf16.gmra.mxu2 %v919_v56  ;;  %v4253_v56 = vadd.f32 1.0, %v1251_v30  ;;  %v1200_v1 = vmul.f32 %v1199_v41, %v4114_v61  ;;  %v1328_v2 = vadd.f32 0.112945676, %v1327_v43  ;;  %v1239_v17 = vadd.f32 0.18741608, %v1238_v53 }
 0x195   : > { %v4276_v61 = vadd.f32 1.0, %v1291_v58  ;;  %v1404_v30 = vadd.f32 0.001143296, %v1403_v12  ;;  %v1276_v40 = vmul.f32 %v1275_v18, %v4147_v31  ;;  %v1314_v36 = vmul.f32 %v1313_v20, %v4186_v3 }
 0x196   : > { %3305 = vrcp.f32 %v4253_v56  ;;  %v1329_v13 = vmul.f32 %v1328_v2, %v4186_v3  ;;  %v1201_v43 = vadd.f32 1.1283791, %v1200_v1  ;;  %v1240_v44 = vmul.f32 %v1239_v17, %v4139_v21 }
 0x197   : > { %v779_v11 = vpop.f32.mrf.mxu0  ;;  %3307 = vrcp.f32 %v4276_v61  ;;  %v4308_v21 = vmul.f32 0.5, %v4130_v10  ;;  %v1369_v57 = vmul.f32 %v1368_v29, %v4194_v28  ;;  %v1405_v58 = vmul.f32 %v1404_v30, %v4248_v46 }
 0x198   : > { %v780_v23 = vadd.f32 %v779_v11, %v4065_v5  ;;  %v1181_v11 = vsel %vm4272_vm2, %v4208_v50, %v1177_v6  ;;  %v1224_v50 = vand.u32 2147483648, %v4202_v45  ;;  %v1330_v53 = vadd.f32 0.4994258, %v1329_v13 }
 0x199   : > { %v1186_v60 = vsel %vm4282_vm3, %v1185_v26, %v1181_v11  ;;  %v1217_v63 = vadd.f32 %v4231_v35, %v1216_v42  ;;  %v1277_v1 = vadd.f32 0.05243302, %v1276_v40  ;;  %v1241_v6 = vadd.f32 1.1283791, %v1240_v44  ;;  %v855_v11 = vpop.f32.mrf.mxu1 }
 0x19a   : > { %818 = vmatmul.bf16.gmra.mxu0 %v632_v27  ;;  %v1315_v8 = vadd.f32 0.0036580483, %v1314_v36  ;;  %v1331_v17 = vmul.f32 %v1330_v53, %v4186_v3  ;;  %v4328_v18 = vadd.f32 %v853_v32, %v4085_v34  ;;  %v4333_v20 = vmul.f32 %v1201_v43, %v4109_v55 }
 0x19b   : > { %v1406_v25 = vadd.f32 0.014752088, %v1405_v58  ;;  %v4336_v13 = vmul.f32 %v1186_v60, %v1162_v24  ;;  %v1221_v33 = vsel %vm4316_vm7, %v4231_v35, %v1217_v63  ;;  %v4343_v30 = vmul.f32 %v1241_v6, %v4124_v7 }
 0x19c   : > { %v4298_v51 = vpop.eup %3305  ;;  %v1316_v55 = vmul.f32 %v1315_v8, %v4186_v3  ;;  %v4348_v24 = vadd.f32 1.0, %v1331_v17  ;;  %v4351_v42 = vmul.f32 0.70710677, %v4328_v18  ;;  %vm1258_vm8 = vweird.f32 %v4253_v56 }
 0x19d   : > { %v1254_v10 = vmul.f32 %v4298_v51, %v4253_v56  ;;  %v4330_v19 = vpop.eup %3307  ;;  %v1407_v36 = vmul.f32 %v1406_v25, %v4248_v46  ;;  %vm1259_vm9 = vweird.f32 %v4298_v51  ;;  %vm1298_vm12 = vweird.f32 %v4276_v61 }
 0x19e   : > { %907 = vmatmul.bf16.gmra.mxu1 %v632_v27  ;;  %v1222_v27 = vand.u32 2147483647, %v4202_v45  ;;  %v1352_v45 = vmul.f32 2.1237322e-06, %v4194_v28  ;;  %v1294_v43 = vmul.f32 %v4330_v19, %v4276_v61  ;;  %3309 = vrcp.f32 %v4348_v24  ;;  %vm4389_vm11 = vmor %vm1258_vm8, %vm1259_vm9 }
 0x19f   : > { %v781_v48 = vpop.f32.mrf.mxu0  ;;  %v1255_v32 = vsub.f32 1.0, %v1254_v10  ;;  %v1470_v2 = vmul.f32 %v4351_v42, %v4351_v42  ;;  %vm1299_vm13 = vweird.f32 %v4330_v19  ;;  %vm1338_vm0 = vweird.f32 %v4348_v24 }
 0x1a0   : > { %v782_v14 = vadd.f32 %v781_v48, %v4065_v5  ;;  %v4296_v48 = vmin.f32 %v1430_v22, 16.0  ;;  %vm4303_vm6 = vcmp.eq.f32.partialorder %v1222_v27, 8.507059e+37  ;;  %v1370_v22 = vadd.f32 0.4994258, %v1369_v57  ;;  %vm4417_vm14 = vmor %vm1298_vm12, %vm1299_vm13 }
 0x1a1   : > { %v1278_v27 = vmul.f32 %v1277_v1, %v4147_v31  ;;  %v1353_v29 = vadd.f32 0.00028619796, %v1352_v45  ;;  %v4361_v57 = vadd.f32 %v855_v11, %v4085_v34  ;;  %v1256_v60 = vmul.f32 %v4298_v51, %v1255_v32 }
 0x1a2   : > { %v920_v38 = vpack.c.bf16 %v782_v14, %v780_v23  ;;  %v1443_v12 = vmul.f32 3.8918573e-05, %v4296_v48  ;;  %v1225_v14 = vor.u32 1.1754944e-38, %v1224_v50  ;;  %v1392_v23 = vmul.f32 2.1237322e-06, %v4248_v46 }
 0x1a3   : > { %v1371_v7 = vmul.f32 %v1370_v22, %v4194_v28  ;;  %v1262_v50 = vand.u32 2147483647, %v4253_v56  ;;  %v1354_v53 = vmul.f32 %v1353_v29, %v4194_v28  ;;  %v1279_v63 = vadd.f32 0.18741608, %v1278_v27 }
 0x1a4   : > { %1040 = vmatmul.bf16.gmra.mxu2 %v920_v38  ;;  %v1444_v38 = vadd.f32 0.001143296, %v1443_v12  ;;  %v1226_v40 = vsel %vm4303_vm6, %v1225_v14, %v1221_v33  ;;  %v1393_v44 = vadd.f32 0.00028619796, %v1392_v23  ;;  %v1317_v1 = vadd.f32 0.05243302, %v1316_v55 }
 0x1a5   : > { %v1295_v45 = vsub.f32 1.0, %v1294_v43  ;;  %v4369_v10 = vadd.f32 1.0, %v1371_v7  ;;  %v1408_v12 = vadd.f32 0.112945676, %v1407_v36  ;;  %v1355_v14 = vadd.f32 0.0036580483, %v1354_v53  ;;  %v858_v43 = vpop.f32.mrf.mxu1 }
 0x1a6   : > { %v1445_v0 = vmul.f32 %v1444_v38, %v4296_v48  ;;  %v1394_v8 = vmul.f32 %v1393_v44, %v4248_v46  ;;  %v4376_v17 = vmul.f32 0.70710677, %v4361_v57  ;;  %vm4378_vm10 = vcmp.eq.f32.partialorder %v1262_v50, 8.507059e+37 }
 0x1a7   : > { %v784_v41 = vpop.f32.mrf.mxu0  ;;  %v1264_v23 = vand.u32 2147483648, %v4253_v56  ;;  %v1318_v25 = vmul.f32 %v1317_v1, %v4186_v3  ;;  %v1257_v33 = vadd.f32 %v4298_v51, %v1256_v60  ;;  %v1280_v27 = vmul.f32 %v1279_v63, %v4147_v31 }
 0x1a8   : > { %v785_v58 = vadd.f32 %v784_v41, %v4065_v5  ;;  %v1432_v41 = vmul.f32 2.1237322e-06, %v4296_v48  ;;  %v1296_v29 = vmul.f32 %v4330_v19, %v1295_v45  ;;  %v4387_v32 = vmin.f32 %v1470_v2, 16.0 }
 0x1a9   : > { %3311 = vrcp.f32 %v4369_v10  ;;  %v1395_v38 = vadd.f32 0.0036580483, %v1394_v8  ;;  %v1409_v56 = vmul.f32 %v1408_v12, %v4248_v46  ;;  %v1302_v31 = vand.u32 2147483647, %v4276_v61  ;;  %v3205_v12 = vld [vmem:[#allocation10 + $0x18] sm:$0xff] }
 0x1aa   : > { %v1433_v11 = vadd.f32 0.00028619796, %v1432_v41  ;;  %v1356_v7 = vmul.f32 %v1355_v14, %v4194_v28  ;;  %v1510_v44 = vmul.f32 %v4376_v17, %v4376_v17  ;;  %v1304_v36 = vand.u32 2147483648, %v4276_v61  ;;  %2614 = vmatpush.bf16.msra.mxu3 %v3205_v12 }
 0x1ab   : > { %v1319_v50 = vadd.f32 0.18741608, %v1318_v25  ;;  %v1265_v60 = vor.u32 1.1754944e-38, %v1264_v23  ;;  %v1281_v63 = vadd.f32 1.1283791, %v1280_v27  ;;  %v1396_v45 = vmul.f32 %v1395_v38, %v4248_v46 }
 0x1ac   : > { %v1483_v1 = vmul.f32 3.8918573e-05, %v4387_v32  ;;  %v1410_v2 = vadd.f32 0.4994258, %v1409_v56  ;;  %v4413_v8 = vmul.f32 %v1226_v40, %v4333_v20  ;;  %v1357_v41 = vadd.f32 0.05243302, %v1356_v7 }
 0x1ad   : > { %v4423_v14 = vmin.f32 %v1510_v44, 16.0  ;;  %vm4427_vm15 = vcmp.eq.f32.partialorder %v1302_v31, 8.507059e+37  ;;  %v1305_v20 = vor.u32 1.1754944e-38, %v1304_v36  ;;  %v1320_v40 = vmul.f32 %v1319_v50, %v4186_v3  ;;  %v860_v36 = vpop.f32.mrf.mxu1 }
 0x1ae   : > { %v4436_v27 = vmul.f32 0.5, %v4166_v54  ;;  %v1397_v38 = vadd.f32 0.05243302, %v1396_v45  ;;  %v1411_v56 = vmul.f32 %v1410_v2, %v4248_v46  ;;  %v1358_v3 = vmul.f32 %v1357_v41, %v4194_v28 }
 0x1af   : > { %v786_v26 = vpop.f32.mrf.mxu0  ;;  %v1321_v7 = vadd.f32 1.1283791, %v1320_v40  ;;  %v4450_v44 = vmul.f32 0.5, %v4206_v49  ;;  %vm1378_vm4 = vweird.f32 %v4369_v10  ;;  %v4540_v25 = vmul.f32 0.5, %v4240_v39 }
 0x1b0   : > { %v787_v35 = vadd.f32 %v786_v26, %v4065_v5  ;;  %v1446_v26 = vadd.f32 0.014752088, %v1445_v0  ;;  %v1297_v0 = vadd.f32 %v4330_v19, %v1296_v29  ;;  %v1484_v29 = vadd.f32 0.001143296, %v1483_v1 }
 0x1b1   : > { %v1472_v1 = vmul.f32 2.1237322e-06, %v4387_v32  ;;  %v1359_v45 = vadd.f32 0.18741608, %v1358_v3  ;;  %v1382_v3 = vand.u32 2147483647, %v4369_v10  ;;  %v1322_v12 = vmul.f32 %v1321_v7, %v4161_v47 }
 0x1b2   : > { %v921_v6 = vpack.c.bf16 %v787_v35, %v785_v58  ;;  %v4395_v35 = vpop.eup %3309  ;;  %v1447_v53 = vmul.f32 %v1446_v26, %v4296_v48  ;;  %v1261_v58 = vsel %vm4389_vm11, %v4298_v51, %v1257_v33  ;;  %v1282_v33 = vmul.f32 %v1281_v63, %v4135_v15 }
 0x1b3   : > { %v1334_v51 = vmul.f32 %v4395_v35, %v4348_v24  ;;  %v4425_v23 = vpop.eup %3311  ;;  %v1266_v26 = vsel %vm4378_vm10, %v1265_v60, %v1261_v58  ;;  %v1301_v55 = vsel %vm4417_vm14, %v4330_v19, %v1297_v0  ;;  %v1523_v15 = vmul.f32 3.8918573e-05, %v4423_v14 }
 0x1b4   : > { %1045 = vmatmul.bf16.gmra.mxu2 %v921_v6  ;;  %v1434_v6 = vmul.f32 %v1433_v11, %v4296_v48  ;;  %v1448_v61 = vadd.f32 0.112945676, %v1447_v53  ;;  %v1374_v22 = vmul.f32 %v4425_v23, %v4369_v10  ;;  %v4447_v54 = vmul.f32 %v1266_v26, %v4343_v30 }
 0x1b5   : > { %v1335_v31 = vsub.f32 1.0, %v1334_v51  ;;  %v1306_v50 = vsel %vm4427_vm15, %v1305_v20, %v1301_v55  ;;  %v1342_v53 = vand.u32 2147483647, %v4348_v24  ;;  %v1485_v58 = vmul.f32 %v1484_v29, %v4387_v32 }
 0x1b6   : > { %v1435_v11 = vadd.f32 0.0036580483, %v1434_v6  ;;  %v1449_v19 = vmul.f32 %v1448_v61, %v4296_v48  ;;  %v4458_v60 = vadd.f32 %v858_v43, %v4085_v34  ;;  %v1398_v30 = vmul.f32 %v1397_v38, %v4248_v46  ;;  %v3204_v61 = vld [vmem:[#allocation10 + $0x10] sm:$0xff] }
 0x1b7   : > { %v4461_v63 = vadd.f32 1.0, %v1411_v56  ;;  %v1336_v0 = vmul.f32 %v4395_v35, %v1335_v31  ;;  %v1375_v2 = vsub.f32 1.0, %v1374_v22  ;;  %v1524_v6 = vadd.f32 0.001143296, %v1523_v15  ;;  %2615 = vmatpush.bf16.msra.mxu3 %v3204_v61  ;;  %v789_v47 = vpop.f32.mrf.mxu0  ;;  %v1006_v7 = vpop.f32.mrf.mxu2 }
 0x1b8   : > { %v1436_v49 = vmul.f32 %v1435_v11, %v4296_v48  ;;  %v4466_v51 = vmul.f32 %v1306_v50, %v1282_v33  ;;  %v1344_v43 = vand.u32 2147483648, %v4348_v24  ;;  %v1450_v41 = vadd.f32 0.4994258, %v1449_v19 }
 0x1b9   : > { %vm1339_vm1 = vweird.f32 %v4395_v35  ;;  %vm4471_vm2 = vcmp.eq.f32.partialorder %v1342_v53, 8.507059e+37  ;;  %v1486_v20 = vadd.f32 0.014752088, %v1485_v58  ;;  %v4476_v40 = vmul.f32 0.70710677, %v4458_v60 }
 0x1ba   : > { %v1399_v26 = vadd.f32 0.18741608, %v1398_v30  ;;  %3313 = vrcp.f32 %v4461_v63  ;;  %v1437_v33 = vadd.f32 0.05243302, %v1436_v49  ;;  %v1473_v29 = vadd.f32 0.00028619796, %v1472_v1  ;;  %vm4485_vm3 = vmor %vm1338_vm0, %vm1339_vm1  ;;  %v863_v49 = vpop.f32.mrf.mxu1 }
 0x1bb   : > { %v1337_v55 = vadd.f32 %v4395_v35, %v1336_v0  ;;  %v1360_v38 = vmul.f32 %v1359_v45, %v4194_v28  ;;  %v1376_v56 = vmul.f32 %v4425_v23, %v1375_v2  ;;  %v1525_v11 = vmul.f32 %v1524_v6, %v4423_v14 }
 0x1bc   : > { %v1451_v22 = vmul.f32 %v1450_v41, %v4296_v48  ;;  %v1512_v15 = vmul.f32 2.1237322e-06, %v4423_v14  ;;  %vm1379_vm5 = vweird.f32 %v4425_v23  ;;  %v1384_v28 = vand.u32 2147483648, %v4369_v10 }
 0x1bd   : > { %v1487_v19 = vmul.f32 %v1486_v20, %v4387_v32  ;;  %v1550_v24 = vmul.f32 %v4476_v40, %v4476_v40  ;;  %v1345_v50 = vor.u32 1.1754944e-38, %v1344_v43  ;;  %v1400_v53 = vmul.f32 %v1399_v26, %v4248_v46  ;;  %vm4515_vm6 = vmor %vm1378_vm4, %vm1379_vm5  ;;  %v3203_v20 = vld [vmem:[#allocation10 + $0x8] sm:$0xff] }
 0x1be   : > { %v1438_v58 = vmul.f32 %v1437_v33, %v4296_v48  ;;  %v1474_v30 = vmul.f32 %v1473_v29, %v4387_v32  ;;  %v1341_v1 = vsel %vm4485_vm3, %v4395_v35, %v1337_v55  ;;  %v1377_v0 = vadd.f32 %v4425_v23, %v1376_v56  ;;  %2616 = vmatpush.bf16.msra.mxu3 %v3203_v20 }
 0x1bf   : > { %v1526_v45 = vadd.f32 0.014752088, %v1525_v11  ;;  %v4506_v2 = vadd.f32 %v860_v36, %v4085_v34  ;;  %v1361_v46 = vadd.f32 1.1283791, %v1360_v38  ;;  %v4519_v35 = vadd.f32 1.0, %v1451_v22 }
 0x1c0   : > { %v4508_v6 = vpop.eup %3313  ;;  %v1513_v41 = vadd.f32 0.00028619796, %v1512_v15  ;;  %vm4521_vm7 = vcmp.eq.f32.partialorder %v1382_v3, 8.507059e+37  ;;  %v1385_v36 = vor.u32 1.1754944e-38, %v1384_v28  ;;  %v1488_v61 = vadd.f32 0.112945676, %v1487_v19 }
 0x1c1   : > { %v4525_v26 = vmin.f32 %v1550_v24, 16.0  ;;  %v1346_v10 = vsel %vm4471_vm2, %v1345_v50, %v1341_v1  ;;  %v1401_v33 = vadd.f32 1.1283791, %v1400_v53  ;;  %v1439_v29 = vadd.f32 0.18741608, %v1438_v58 }
 0x1c2   : > { %v1475_v55 = vadd.f32 0.0036580483, %v1474_v30  ;;  %v1381_v38 = vsel %vm4515_vm6, %v4425_v23, %v1377_v0  ;;  %v1414_v56 = vmul.f32 %v4508_v6, %v4461_v63  ;;  %v1527_v11 = vmul.f32 %v1526_v45, %v4423_v14  ;;  %v865_v45 = vpop.f32.mrf.mxu1 }
 0x1c3   : > { %v4536_v31 = vmul.f32 0.70710677, %v4506_v2  ;;  %v1362_v3 = vmul.f32 %v1361_v46, %v4176_v4  ;;  %3315 = vrcp.f32 %v4519_v35  ;;  %v1514_v22 = vmul.f32 %v1513_v41, %v4423_v14 }
 0x1c4   : > { %v1424_v15 = vand.u32 2147483648, %v4461_v63  ;;  %v4546_v23 = vmul.f32 0.5, %v4328_v18  ;;  %v1489_v28 = vmul.f32 %v1488_v61, %v4387_v32  ;;  %v1563_v19 = vmul.f32 3.8918573e-05, %v4525_v26 }
 0x1c5   : > { %v4550_v24 = vmul.f32 %v1346_v10, %v1322_v12  ;;  %v1386_v4 = vsel %vm4521_vm7, %v1385_v36, %v1381_v38  ;;  %v1440_v39 = vmul.f32 %v1439_v29, %v4296_v48  ;;  %v1476_v50 = vmul.f32 %v1475_v55, %v4387_v32 }
 0x1c6   : > { %6301 = vst [vmem:[#allocation24_spill] sm:$0xff] %v4546_v23  ;;  %v4557_v53 = vmul.f32 %v1401_v33, %v4218_v9  ;;  %v1415_v58 = vsub.f32 1.0, %v1414_v56  ;;  %v1528_v30 = vadd.f32 0.112945676, %v1527_v11  ;;  %v1590_v18 = vmul.f32 %v4536_v31, %v4536_v31  ;;  %v791_v56 = vpop.f32.mrf.mxu0  ;;  %v1008_v11 = vpop.f32.mrf.mxu2 }
 0x1c7   : > { %v1422_v1 = vand.u32 2147483647, %v4461_v63  ;;  %v1515_v0 = vadd.f32 0.0036580483, %v1514_v22  ;;  %v3096_v12 = vclamps-f32 %v4336_v13, 1.0  ;;  %v3097_v46 = vclamps-f32 %v4413_v8, 1.0 }
 0x1c8   : > { %v4564_v43 = vmul.f32 %v1386_v4, %v1362_v3  ;;  %v4566_v48 = vor.u32 1.1754944e-38, %v1424_v15  ;;  %v1490_v41 = vadd.f32 0.4994258, %v1489_v28  ;;  %v1564_v9 = vadd.f32 0.001143296, %v1563_v19  ;;  %v3202_v3 = vld [vmem:[#allocation10] sm:$0xff] }
 0x1c9   : > { %v4568_v36 = vpop.eup %3315  ;;  %vm1418_vm8 = vweird.f32 %v4461_v63  ;;  %v4571_v61 = vadd.f32 1.1283791, %v1440_v39  ;;  %v1477_v10 = vadd.f32 0.05243302, %v1476_v50  ;;  %v4574_v33 = vadd.f32 %v863_v49, %v4085_v34  ;;  %v4579_v13 = vld [vmem:[%s6242_s5] ss:$0 sm:$0xff]  ;;  %2617 = vmatpush.bf16.msra.mxu3 %v3202_v3 }
 0x1ca   : > { %v1416_v8 = vmul.f32 %v4508_v6, %v1415_v58  ;;  %v1529_v29 = vmul.f32 %v1528_v30, %v4423_v14  ;;  %v4583_v55 = vmin.f32 %v1590_v18, 16.0  ;;  %v4586_v38 = vadd.f32 %v865_v45, %v4085_v34 }
 0x1cb   : > { %v790_v49 = vadd.f32 %v789_v47, %v4065_v5  ;;  %v2430_v22 = vadd.f32 1.0, %v3096_v12  ;;  %v792_v15 = vadd.f32 %v791_v56, %v4065_v5  ;;  %v2431_v28 = vadd.f32 1.0, %v3097_v46 }
 0x1cc   : > { %v1454_v19 = vmul.f32 %v4568_v36, %v4519_v35  ;;  %v1491_v4 = vmul.f32 %v1490_v41, %v4387_v32  ;;  %v1516_v39 = vmul.f32 %v1515_v0, %v4423_v14  ;;  %v1565_v50 = vmul.f32 %v1564_v9, %v4525_v26 }
 0x1cd   : > { %vm4595_vm9 = vcmp.eq.f32.partialorder %v1422_v1, 8.507059e+37  ;;  %v4600_v30 = vmul.f32 0.70710677, %v4574_v33  ;;  %v1007_v47 = vadd.f32 %v4579_v13, %v1006_v7  ;;  %v1009_v18 = vadd.f32 %v4579_v13, %v1008_v11 }
 0x1ce   : > { %v922_v45 = vpack.c.bf16 %v792_v15, %v790_v49  ;;  %vm1419_vm10 = vweird.f32 %v4508_v6  ;;  %vm1458_vm11 = vweird.f32 %v4519_v35  ;;  %v1530_v12 = vadd.f32 0.4994258, %v1529_v29 }
 0x1cf   : > { %v1603_v0 = vmul.f32 3.8918573e-05, %v4583_v55  ;;  %v4608_v1 = vmul.f32 0.70710677, %v4586_v38  ;;  %v1417_v46 = vadd.f32 %v4508_v6, %v1416_v8  ;;  %v1478_v41 = vmul.f32 %v1477_v10, %v4387_v32  ;;  %vm4623_vm12 = vmor %vm1418_vm8, %vm1419_vm10 }
 0x1d0   : > { %v2462_v7 = vmul.f32 %v2430_v22, %v4234_v52  ;;  %1050 = vmatmul.bf16.gmra.mxu2 %v922_v45  ;;  %v2463_v9 = vmul.f32 %v2431_v28, %v4237_v37  ;;  %v1455_v20 = vsub.f32 1.0, %v1454_v19  ;;  %v4614_v56 = vadd.f32 1.0, %v1491_v4 }
 0x1d1   : > { %v1552_v29 = vmul.f32 2.1237322e-06, %v4525_v26  ;;  %v1566_v11 = vadd.f32 0.014752088, %v1565_v50  ;;  %v1517_v49 = vadd.f32 0.05243302, %v1516_v39  ;;  %v1630_v15 = vmul.f32 %v4600_v30, %v4600_v30 }
 0x1d2   : > { %v2494_v3 = vmul.f32 %v2462_v7, %v1007_v47  ;;  %v2495_v23 = vmul.f32 %v2463_v9, %v1009_v18  ;;  %v1462_v37 = vand.u32 2147483647, %v4519_v35  ;;  %v1531_v10 = vmul.f32 %v1530_v12, %v4423_v14  ;;  %v1011_v7 = vpop.f32.mrf.mxu2 }
 0x1d3   : > { %v1604_v8 = vadd.f32 0.001143296, %v1603_v0  ;;  %v1670_v22 = vmul.f32 %v4608_v1, %v4608_v1  ;;  %v1464_v28 = vand.u32 2147483648, %v4519_v35  ;;  %v1479_v19 = vadd.f32 0.18741608, %v1478_v41  ;;  %v794_v41 = vpop.f32.mrf.mxu0 }
 0x1d4   : > { %v4633_v4 = vmul.f32 0.5, %v4361_v57  ;;  %v2526_v39 = vpack.c.bf16 %v2495_v23, %v2494_v3  ;;  %v1456_v63 = vmul.f32 %v4568_v36, %v1455_v20  ;;  %3317 = vrcp.f32 %v4614_v56 }
 0x1d5   : > { %v1553_v50 = vadd.f32 0.00028619796, %v1552_v29  ;;  %v1567_v47 = vmul.f32 %v1566_v11, %v4525_v26  ;;  %v1421_v18 = vsel %vm4623_vm12, %v4508_v6, %v1417_v46  ;;  %vm1459_vm13 = vweird.f32 %v4568_v36 }
 0x1d6   : > { %v1518_v45 = vmul.f32 %v1517_v49, %v4423_v14  ;;  %v4643_v12 = vmin.f32 %v1630_v15, 16.0  ;;  %2618 = vmatmul.bf16.vlgmr.msra.gmra.mxu3 %v2526_v39  ;;  %v4645_v57 = vadd.f32 1.0, %v1531_v10  ;;  %v1605_v23 = vmul.f32 %v1604_v8, %v4583_v55  ;;  %vm4668_vm15 = vmor %vm1458_vm11, %vm1459_vm13 }
 0x1d7   : > { %v4648_v0 = vmin.f32 %v1670_v22, 16.0  ;;  %v3098_v9 = vclamps-f32 %v4447_v54, 1.0  ;;  %vm4651_vm14 = vcmp.eq.f32.partialorder %v1462_v37, 8.507059e+37  ;;  %v1465_v6 = vor.u32 1.1754944e-38, %v1464_v28  ;;  %v868_v22 = vpop.f32.mrf.mxu1 }
 0x1d8   : > { %v1480_v46 = vmul.f32 %v1479_v19, %v4387_v32  ;;  %v3099_v29 = vclamps-f32 %v4466_v51, 1.0  ;;  %v1426_v11 = vsel %vm4595_vm9, %v4566_v48, %v1421_v18  ;;  %v1457_v49 = vadd.f32 %v4568_v36, %v1456_v63 }
 0x1d9   : > { %v1554_v15 = vmul.f32 %v1553_v50, %v4525_v26  ;;  %v1568_v3 = vadd.f32 0.112945676, %v1567_v47  ;;  %v1442_v54 = vmul.f32 %v4571_v61, %v4260_v62  ;;  %v1519_v51 = vadd.f32 0.18741608, %v1518_v45 }
 0x1da   : > { %v1592_v58 = vmul.f32 2.1237322e-06, %v4583_v55  ;;  %v1643_v48 = vmul.f32 3.8918573e-05, %v4643_v12  ;;  %v4674_v52 = vpop.eup %3317  ;;  %3319 = vrcp.f32 %v4645_v57  ;;  %v1606_v37 = vadd.f32 0.014752088, %v1605_v23 }
 0x1db   : > { %v1683_v62 = vmul.f32 3.8918573e-05, %v4648_v0  ;;  %v2432_v61 = vadd.f32 1.0, %v3098_v9  ;;  %v4679_v10 = vmul.f32 %v1426_v11, %v4557_v53  ;;  %v1481_v35 = vadd.f32 1.1283791, %v1480_v46  ;;  %v796_v46 = vpop.f32.mrf.mxu0 }
 0x1dc   : > { %v4682_v8 = vmul.f32 0.5, %v4458_v60  ;;  %v2433_v28 = vadd.f32 1.0, %v3099_v29  ;;  %v1461_v19 = vsel %vm4668_vm15, %v4568_v36, %v1457_v49  ;;  %v1555_v39 = vadd.f32 0.0036580483, %v1554_v15  ;;  %v1013_v29 = vpop.f32.mrf.mxu2 }
 0x1dd   : > { %v1569_v63 = vmul.f32 %v1568_v3, %v4525_v26  ;;  %v4689_v50 = vadd.f32 %v868_v22, %v4085_v34  ;;  %v1494_v53 = vmul.f32 %v4674_v52, %v4614_v56  ;;  %v1520_v47 = vmul.f32 %v1519_v51, %v4423_v14 }
 0x1de   : > { %v1644_v18 = vadd.f32 0.001143296, %v1643_v48  ;;  %v1012_v60 = vadd.f32 %v4579_v13, %v1011_v7  ;;  %v1593_v45 = vadd.f32 0.00028619796, %v1592_v58  ;;  %v1607_v23 = vmul.f32 %v1606_v37, %v4583_v55 }
 0x1df   : > { %v1684_v9 = vadd.f32 0.001143296, %v1683_v62  ;;  %v2464_v36 = vmul.f32 %v2432_v61, %v4243_v59  ;;  %v795_v11 = vadd.f32 %v794_v41, %v4065_v5  ;;  %v797_v49 = vadd.f32 %v796_v46, %v4065_v5 }
 0x1e0   : > { %v1014_v15 = vadd.f32 %v4579_v13, %v1013_v29  ;;  %v2465_v3 = vmul.f32 %v2433_v28, %v4308_v21  ;;  %v4701_v14 = vpop.eup %3319  ;;  %v1466_v7 = vsel %vm4651_vm14, %v1465_v6, %v1461_v19  ;;  %v1556_v32 = vmul.f32 %v1555_v39, %v4525_v26 }
 0x1e1   : > { %v1570_v51 = vadd.f32 0.4994258, %v1569_v63  ;;  %v4707_v59 = vmul.f32 0.70710677, %v4689_v50  ;;  %v1645_v58 = vmul.f32 %v1644_v18, %v4643_v12  ;;  %v2496_v41 = vmul.f32 %v2464_v36, %v1012_v60 }
 0x1e2   : > { %v923_v48 = vpack.c.bf16 %v797_v49, %v795_v11  ;;  %v2497_v37 = vmul.f32 %v2465_v3, %v1014_v15  ;;  %v1504_v62 = vand.u32 2147483648, %v4614_v56  ;;  %v1594_v21 = vmul.f32 %v1593_v45, %v4583_v55 }
 0x1e3   : > { %v1608_v61 = vadd.f32 0.112945676, %v1607_v23  ;;  %v1685_v22 = vmul.f32 %v1684_v9, %v4648_v0  ;;  %v1495_v20 = vsub.f32 1.0, %v1494_v53  ;;  %v1521_v6 = vadd.f32 1.1283791, %v1520_v47  ;;  %v870_v23 = vpop.f32.mrf.mxu1  ;;  %v799_v46 = vpop.f32.mrf.mxu0 }
 0x1e4   : > { %v1534_v28 = vmul.f32 %v4701_v14, %v4645_v57  ;;  %1055 = vmatmul.bf16.gmra.mxu2 %v923_v48  ;;  %v2527_v19 = vpack.c.bf16 %v2497_v37, %v2496_v41  ;;  %v4716_v39 = vmul.f32 %v1481_v35, %v4351_v42  ;;  %v1571_v63 = vmul.f32 %v1570_v51, %v4525_v26  ;;  %v1016_v29 = vpop.f32.mrf.mxu2 }
 0x1e5   : > { %v1632_v18 = vmul.f32 2.1237322e-06, %v4643_v12  ;;  %v1710_v60 = vmul.f32 %v4707_v59, %v4707_v59  ;;  %vm1498_vm0 = vweird.f32 %v4614_v56  ;;  %v1502_v53 = vand.u32 2147483647, %v4614_v56 }
 0x1e6   : > { %v1557_v47 = vadd.f32 0.05243302, %v1556_v32  ;;  %v1646_v45 = vadd.f32 0.014752088, %v1645_v58  ;;  %2623 = vmatmul.bf16.gmra.mxu3 %v2527_v19  ;;  %v4724_v9 = vmul.f32 %v1466_v7, %v1442_v54  ;;  %v1595_v36 = vadd.f32 0.0036580483, %v1594_v21 }
 0x1e7   : > { %v1609_v42 = vmul.f32 %v1608_v61, %v4583_v55  ;;  %v1686_v35 = vadd.f32 0.014752088, %v1685_v22  ;;  %v1496_v11 = vmul.f32 %v4674_v52, %v1495_v20  ;;  %v4728_v49 = vor.u32 1.1754944e-38, %v1504_v62 }
 0x1e8   : > { %v4731_v15 = vmul.f32 %v1521_v6, %v4376_v17  ;;  %v1535_v3 = vsub.f32 1.0, %v1534_v28  ;;  %v4733_v32 = vadd.f32 1.0, %v1571_v63  ;;  %v1633_v51 = vadd.f32 0.00028619796, %v1632_v18 }
 0x1e9   : > { %v4735_v58 = vmin.f32 %v1710_v60, 16.0  ;;  %v3101_v54 = vclamps-f32 %v4564_v43, 1.0  ;;  %v1542_v7 = vand.u32 2147483647, %v4645_v57  ;;  %v1558_v41 = vmul.f32 %v1557_v47, %v4525_v26 }
 0x1ea   : > { %v1647_v48 = vmul.f32 %v1646_v45, %v4643_v12  ;;  %v3100_v37 = vclamps-f32 %v4550_v24, 1.0  ;;  %vm1499_vm1 = vweird.f32 %v4674_v52  ;;  %v1596_v17 = vmul.f32 %v1595_v36, %v4583_v55 }
 0x1eb   : > { %v1610_v62 = vadd.f32 0.4994258, %v1609_v42  ;;  %v1687_v21 = vmul.f32 %v1686_v35, %v4648_v0  ;;  %v4746_v61 = vadd.f32 %v4674_v52, %v1496_v11  ;;  %v1536_v43 = vmul.f32 %v4701_v14, %v1535_v3  ;;  %v873_v11 = vpop.f32.mrf.mxu1  ;;  %vm4775_vm6 = vmor %vm1498_vm0, %vm1499_vm1 }
 0x1ec   : > { %vm1538_vm2 = vweird.f32 %v4645_v57  ;;  %v1544_v22 = vand.u32 2147483648, %v4645_v57  ;;  %3321 = vrcp.f32 %v4733_v32  ;;  %v1634_v24 = vmul.f32 %v1633_v51, %v4643_v12  ;;  %v1018_v35 = vpop.f32.mrf.mxu2 }
 0x1ed   : > { %v1723_v20 = vmul.f32 3.8918573e-05, %v4735_v58  ;;  %v2435_v6 = vadd.f32 1.0, %v3101_v54  ;;  %vm4754_vm3 = vcmp.eq.f32.partialorder %v1502_v53, 8.507059e+37  ;;  %vm1539_vm4 = vweird.f32 %v4701_v14  ;;  %v801_v53 = vpop.f32.mrf.mxu0 }
 0x1ee   : > { %vm4759_vm5 = vcmp.eq.f32.partialorder %v1542_v7, 8.507059e+37  ;;  %v1559_v63 = vadd.f32 0.18741608, %v1558_v41  ;;  %v1648_v18 = vadd.f32 0.112945676, %v1647_v48  ;;  %v2434_v60 = vadd.f32 1.0, %v3100_v37  ;;  %vm4785_vm7 = vmor %vm1538_vm2, %vm1539_vm4 }
 0x1ef   : > { %v1597_v47 = vadd.f32 0.05243302, %v1596_v17  ;;  %v1611_v45 = vmul.f32 %v1610_v62, %v4583_v55  ;;  %v1688_v36 = vadd.f32 0.112945676, %v1687_v21  ;;  %v4765_v42 = vadd.f32 %v870_v23, %v4085_v34 }
 0x1f0   : > { %v800_v3 = vadd.f32 %v799_v46, %v4065_v5  ;;  %v1017_v51 = vadd.f32 %v4579_v13, %v1016_v29  ;;  %v802_v54 = vadd.f32 %v801_v53, %v4065_v5  ;;  %v1019_v7 = vadd.f32 %v4579_v13, %v1018_v35 }
 0x1f1   : > { %v1537_v23 = vadd.f32 %v4701_v14, %v1536_v43  ;;  %v1635_v48 = vadd.f32 0.0036580483, %v1634_v24  ;;  %v1724_v37 = vadd.f32 0.001143296, %v1723_v20  ;;  %v2467_v46 = vmul.f32 %v2435_v6, %v4436_v27 }
 0x1f2   : > { %v1649_v56 = vmul.f32 %v1648_v18, %v4643_v12  ;;  %v1672_v17 = vmul.f32 2.1237322e-06, %v4648_v0  ;;  %v2466_v62 = vmul.f32 %v2434_v60, %v4324_v16  ;;  %v924_v21 = vpack.c.bf16 %v802_v54, %v800_v3  ;;  %v4792_v43 = vpop.eup %3321 }
 0x1f3   : > { %v1545_v24 = vor.u32 1.1754944e-38, %v1544_v22  ;;  %v1689_v27 = vmul.f32 %v1688_v36, %v4648_v0  ;;  %v4796_v20 = vmul.f32 0.70710677, %v4765_v42  ;;  %v2499_v57 = vmul.f32 %v2467_v46, %v1019_v7 }
 0x1f4   : > { %v1560_v6 = vmul.f32 %v1559_v63, %v4525_v26  ;;  %v1598_v53 = vmul.f32 %v1597_v47, %v4583_v55  ;;  %v4800_v35 = vadd.f32 1.0, %v1611_v45  ;;  %v2498_v18 = vmul.f32 %v2466_v62, %v1017_v51  ;;  %1060 = vmatmul.bf16.gmra.mxu2 %v924_v21 }
 0x1f5   : > { %v1501_v16 = vsel %vm4775_vm6, %v4674_v52, %v4746_v61  ;;  %v1541_v22 = vsel %vm4785_vm7, %v4701_v14, %v1537_v23  ;;  %v1636_v60 = vmul.f32 %v1635_v48, %v4643_v12  ;;  %v1725_v36 = vmul.f32 %v1724_v37, %v4735_v58  ;;  %v804_v61 = vpop.f32.mrf.mxu0 }
 0x1f6   : > { %v1574_v26 = vmul.f32 %v4792_v43, %v4733_v32  ;;  %v1650_v63 = vadd.f32 0.4994258, %v1649_v56  ;;  %v1673_v47 = vadd.f32 0.00028619796, %v1672_v17  ;;  %v2528_v45 = vpack.c.bf16 %v2499_v57, %v2498_v18  ;;  %v875_v17 = vpop.f32.mrf.mxu1  ;;  %v1021_v18 = vpop.f32.mrf.mxu2 }
 0x1f7   : > { %v4814_v3 = vmul.f32 0.5, %v4506_v2  ;;  %v4817_v51 = vmul.f32 0.5, %v4574_v33  ;;  %v1690_v52 = vadd.f32 0.4994258, %v1689_v27  ;;  %v1750_v14 = vmul.f32 %v4796_v20, %v4796_v20 }
 0x1f8   : > { %v1561_v54 = vadd.f32 1.1283791, %v1560_v6  ;;  %v1599_v7 = vadd.f32 0.18741608, %v1598_v53  ;;  %3323 = vrcp.f32 %v4800_v35  ;;  %v4823_v41 = vadd.f32 %v873_v11, %v4085_v34  ;;  %2628 = vmatmul.bf16.gmra.mxu3 %v2528_v45 }
 0x1f9   : > { %v1506_v2 = vsel %vm4754_vm3, %v4728_v49, %v1501_v16  ;;  %v1546_v33 = vsel %vm4759_vm5, %v1545_v24, %v1541_v22  ;;  %v1637_v23 = vadd.f32 0.05243302, %v1636_v60  ;;  %v1726_v48 = vadd.f32 0.014752088, %v1725_v36 }
 0x1fa   : > { %v1575_v37 = vsub.f32 1.0, %v1574_v26  ;;  %v1582_v46 = vand.u32 2147483647, %v4733_v32  ;;  %v1651_v29 = vmul.f32 %v1650_v63, %v4643_v12  ;;  %v1674_v56 = vmul.f32 %v1673_v47, %v4648_v0 }
 0x1fb   : > { %v1584_v11 = vand.u32 2147483648, %v4733_v32  ;;  %v1691_v62 = vmul.f32 %v1690_v52, %v4648_v0  ;;  %v1712_v28 = vmul.f32 2.1237322e-06, %v4735_v58  ;;  %v4836_v49 = vmin.f32 %v1750_v14, 16.0 }
 0x1fc   : > { %v4839_v19 = vmul.f32 %v1506_v2, %v4716_v39  ;;  %v4842_v21 = vmul.f32 %v1561_v54, %v4476_v40  ;;  %v1600_v24 = vmul.f32 %v1599_v7, %v4583_v55  ;;  %v4846_v27 = vmul.f32 0.70710677, %v4823_v41 }
 0x1fd   : > { %v4849_v57 = vmul.f32 %v1546_v33, %v4731_v15  ;;  %vm1578_vm8 = vweird.f32 %v4733_v32  ;;  %v1638_v6 = vmul.f32 %v1637_v23, %v4643_v12  ;;  %v1727_v53 = vmul.f32 %v1726_v48, %v4735_v58  ;;  %v806_v47 = vpop.f32.mrf.mxu0 }
 0x1fe   : > { %v4854_v39 = vpop.eup %3323  ;;  %v1576_v40 = vmul.f32 %v4792_v43, %v1575_v37  ;;  %vm4857_vm9 = vcmp.eq.f32.partialorder %v1582_v46, 8.507059e+37  ;;  %v4861_v55 = vadd.f32 1.0, %v1651_v29  ;;  %v1675_v22 = vadd.f32 0.0036580483, %v1674_v56 }
 0x1ff   : > { %v4864_v15 = vadd.f32 %v875_v17, %v4085_v34  ;;  %v1585_v60 = vor.u32 1.1754944e-38, %v1584_v11  ;;  %v4866_v36 = vadd.f32 1.0, %v1691_v62  ;;  %v1713_v26 = vadd.f32 0.00028619796, %v1712_v28  ;;  %v878_v62 = vpop.f32.mrf.mxu1 }
 0x200   : > { %v1763_v63 = vmul.f32 3.8918573e-05, %v4836_v49  ;;  %vm1579_vm10 = vweird.f32 %v4792_v43  ;;  %v1601_v45 = vadd.f32 1.1283791, %v1600_v24  ;;  %v1790_v52 = vmul.f32 %v4846_v27, %v4846_v27 }
 0x201   : > { %v807_v14 = vadd.f32 %v806_v47, %v4065_v5  ;;  %v1614_v54 = vmul.f32 %v4854_v39, %v4800_v35  ;;  %v1639_v7 = vadd.f32 0.18741608, %v1638_v6  ;;  %v1728_v2 = vadd.f32 0.112945676, %v1727_v53  ;;  %vm4884_vm11 = vmor %vm1578_vm8, %vm1579_vm10 }
 0x202   : > { %v805_v33 = vadd.f32 %v804_v61, %v4065_v5  ;;  %v1577_v23 = vadd.f32 %v4792_v43, %v1576_v40  ;;  %3325 = vrcp.f32 %v4861_v55  ;;  %v1676_v48 = vmul.f32 %v1675_v22, %v4648_v0 }
 0x203   : > { %v4880_v37 = vmul.f32 0.70710677, %v4864_v15  ;;  %3327 = vrcp.f32 %v4866_v36  ;;  %v1714_v29 = vmul.f32 %v1713_v26, %v4735_v58  ;;  %v1764_v61 = vadd.f32 0.001143296, %v1763_v63 }
 0x204   : > { %v925_v56 = vpack.c.bf16 %v807_v14, %v805_v33  ;;  %v1624_v17 = vand.u32 2147483648, %v4800_v35  ;;  %v4891_v11 = vmin.f32 %v1790_v52, 16.0  ;;  %v3102_v28 = vclamps-f32 %v4679_v10, 1.0  ;;  %v1023_v52 = vpop.f32.mrf.mxu2 }
 0x205   : > { %v3103_v24 = vclamps-f32 %v4724_v9, 1.0  ;;  %v1615_v32 = vsub.f32 1.0, %v1614_v54  ;;  %v1622_v6 = vand.u32 2147483647, %v4800_v35  ;;  %v4897_v53 = vmul.f32 0.5, %v4586_v38 }
 0x206   : > { %v1729_v40 = vmul.f32 %v1728_v2, %v4735_v58  ;;  %1065 = vmatmul.bf16.gmra.mxu2 %v925_v56  ;;  %v1581_v22 = vsel %vm4884_vm11, %v4792_v43, %v1577_v23  ;;  %v4904_v26 = vmul.f32 %v1601_v45, %v4536_v31  ;;  %v1640_v10 = vmul.f32 %v1639_v7, %v4643_v12 }
 0x207   : > { %v1830_v9 = vmul.f32 %v4880_v37, %v4880_v37  ;;  %vm1618_vm12 = vweird.f32 %v4800_v35  ;;  %v1677_v63 = vadd.f32 0.05243302, %v1676_v48  ;;  %v1715_v38 = vadd.f32 0.0036580483, %v1714_v29 }
 0x208   : > { %v1765_v47 = vmul.f32 %v1764_v61, %v4836_v49  ;;  %v4911_v14 = vpop.eup %3325  ;;  %v1625_v54 = vor.u32 1.1754944e-38, %v1624_v17  ;;  %v1803_v43 = vmul.f32 3.8918573e-05, %v4891_v11  ;;  %v2436_v2 = vadd.f32 1.0, %v3102_v28 }
 0x209   : > { %v2437_v31 = vadd.f32 1.0, %v3103_v24  ;;  %v4914_v45 = vpop.eup %3327  ;;  %v1586_v12 = vsel %vm4857_vm9, %v1585_v60, %v1581_v22  ;;  %v1616_v7 = vmul.f32 %v4854_v39, %v1615_v32  ;;  %vm1619_vm13 = vweird.f32 %v4854_v39 }
 0x20a   : > { %vm4920_vm14 = vcmp.eq.f32.partialorder %v1622_v6, 8.507059e+37  ;;  %v1730_v23 = vadd.f32 0.4994258, %v1729_v40  ;;  %v1641_v48 = vadd.f32 1.1283791, %v1640_v10  ;;  %v4924_v46 = vmin.f32 %v1830_v9, 16.0  ;;  %vm4946_vm15 = vmor %vm1618_vm12, %vm1619_vm13 }
 0x20b   : > { %v1022_v29 = vadd.f32 %v4579_v13, %v1021_v18  ;;  %v1024_v61 = vadd.f32 %v4579_v13, %v1023_v52  ;;  %v1654_v16 = vmul.f32 %v4911_v14, %v4861_v55  ;;  %v1678_v60 = vmul.f32 %v1677_v63, %v4648_v0 }
 0x20c   : > { %v1716_v56 = vmul.f32 %v1715_v38, %v4735_v58  ;;  %v1766_v17 = vadd.f32 0.014752088, %v1765_v47  ;;  %v1694_v28 = vmul.f32 %v4914_v45, %v4866_v36  ;;  %v1804_v24 = vadd.f32 0.001143296, %v1803_v43 }
 0x20d   : > { %v2468_v32 = vmul.f32 %v2436_v2, %v4450_v44  ;;  %v2469_v6 = vmul.f32 %v2437_v31, %v4540_v25  ;;  %v4937_v18 = vmul.f32 %v1586_v12, %v4842_v21  ;;  %v1617_v40 = vadd.f32 %v4854_v39, %v1616_v7  ;;  %v880_v21 = vpop.f32.mrf.mxu1 }
 0x20e   : > { %v1731_v22 = vmul.f32 %v1730_v23, %v4735_v58  ;;  %v1752_v10 = vmul.f32 2.1237322e-06, %v4836_v49  ;;  %v4951_v44 = vmul.f32 0.5, %v4689_v50  ;;  %v1843_v25 = vmul.f32 3.8918573e-05, %v4924_v46  ;;  %v4959_v23 = vpop.f32.mrf.mxu0 }
 0x20f   : > { %v2500_v63 = vmul.f32 %v2468_v32, %v1022_v29  ;;  %v2501_v38 = vmul.f32 %v2469_v6, %v1024_v61  ;;  %v1655_v47 = vsub.f32 1.0, %v1654_v16  ;;  %v1717_v52 = vadd.f32 0.05243302, %v1716_v56 }
 0x210   : > { %v1767_v43 = vmul.f32 %v1766_v17, %v4836_v49  ;;  %v4956_v2 = vadd.f32 %v878_v62, %v4085_v34  ;;  %v1679_v35 = vadd.f32 0.18741608, %v1678_v60  ;;  %v1695_v31 = vsub.f32 1.0, %v1694_v28  ;;  %v4972_v17 = vpop.f32.mrf.mxu2 }
 0x211   : > { %v1805_v12 = vmul.f32 %v1804_v24, %v4891_v11  ;;  %v2529_v7 = vpack.c.bf16 %v2501_v38, %v2500_v63  ;;  %v1621_v50 = vsel %vm4946_vm15, %v4854_v39, %v1617_v40  ;;  %v4964_v29 = vadd.f32 1.0, %v1731_v22 }
 0x212   : > { %v1753_v61 = vadd.f32 0.00028619796, %v1752_v10  ;;  %v4967_v16 = vadd.f32 %v880_v21, %v4085_v34  ;;  %vm1658_vm0 = vweird.f32 %v4861_v55  ;;  %v1662_v62 = vand.u32 2147483647, %v4861_v55 }
 0x213   : > { %v1664_v60 = vand.u32 2147483648, %v4861_v55  ;;  %v1844_v56 = vadd.f32 0.001143296, %v1843_v25  ;;  %2633 = vmatmul.bf16.gmra.mxu3 %v2529_v7  ;;  %v1656_v28 = vmul.f32 %v4911_v14, %v1655_v47  ;;  %v1718_v39 = vmul.f32 %v1717_v52, %v4735_v58 }
 0x214   : > { %v1768_v24 = vadd.f32 0.112945676, %v1767_v43  ;;  %v4977_v32 = vmul.f32 0.70710677, %v4956_v2  ;;  %v1626_v6 = vsel %vm4920_vm14, %v1625_v54, %v1621_v50  ;;  %v1680_v40 = vmul.f32 %v1679_v35, %v4648_v0 }
 0x215   : > { %v1696_v22 = vmul.f32 %v4914_v45, %v1695_v31  ;;  %v1806_v10 = vadd.f32 0.014752088, %v1805_v12  ;;  %vm1659_vm1 = vweird.f32 %v4911_v14  ;;  %3329 = vrcp.f32 %v4964_v29 }
 0x216   : > { %v1754_v9 = vmul.f32 %v1753_v61, %v4836_v49  ;;  %v4987_v25 = vmul.f32 0.70710677, %v4967_v16  ;;  %vm1698_vm2 = vweird.f32 %v4866_v36  ;;  %vm1699_vm3 = vweird.f32 %v4914_v45  ;;  %vm5000_vm4 = vmor %vm1658_vm0, %vm1659_vm1 }
 0x217   : > { %v1704_v54 = vand.u32 2147483648, %v4866_v36  ;;  %v1845_v0 = vmul.f32 %v1844_v56, %v4924_v46  ;;  %v1657_v33 = vadd.f32 %v4911_v14, %v1656_v28  ;;  %v1719_v21 = vadd.f32 0.18741608, %v1718_v39  ;;  %vm5013_vm6 = vmor %vm1698_vm2, %vm1699_vm3  ;;  %v811_v28 = vpop.f32.mrf.mxu0 }
 0x218   : > { %v1769_v63 = vmul.f32 %v1768_v24, %v4836_v49  ;;  %v1870_v38 = vmul.f32 %v4977_v32, %v4977_v32  ;;  %v1642_v47 = vmul.f32 %v1641_v48, %v4600_v30  ;;  %v1697_v43 = vadd.f32 %v4914_v45, %v1696_v22 }
 0x219   : > { %v1702_v35 = vand.u32 2147483647, %v4866_v36  ;;  %v1807_v31 = vmul.f32 %v1806_v10, %v4891_v11  ;;  %vm5007_vm5 = vcmp.eq.f32.partialorder %v1662_v62, 8.507059e+37  ;;  %v1665_v7 = vor.u32 1.1754944e-38, %v1664_v60  ;;  %v1028_v10 = vpop.f32.mrf.mxu2 }
 0x21a   : > { %v1755_v55 = vadd.f32 0.0036580483, %v1754_v9  ;;  %v1910_v48 = vmul.f32 %v4987_v25, %v4987_v25  ;;  %v5020_v50 = vmul.f32 %v1626_v6, %v4904_v26  ;;  %v1681_v61 = vadd.f32 1.1283791, %v1680_v40 }
 0x21b   : > { %v1705_v56 = vor.u32 1.1754944e-38, %v1704_v54  ;;  %v1846_v62 = vadd.f32 0.014752088, %v1845_v0  ;;  %v5022_v39 = vpop.eup %3329  ;;  %v1661_v36 = vsel %vm5000_vm4, %v4911_v14, %v1657_v33  ;;  %v1720_v60 = vmul.f32 %v1719_v21, %v4735_v58 }
 0x21c   : > { %v1770_v24 = vadd.f32 0.4994258, %v1769_v63  ;;  %v5028_v22 = vmin.f32 %v1870_v38, 16.0  ;;  %v1701_v26 = vsel %vm5013_vm6, %v4914_v45, %v1697_v43  ;;  %vm1703_vm7 = vcmp.eq.f32.partialorder %v1702_v35, 8.507059e+37 }
 0x21d   : > { %v1792_v6 = vmul.f32 2.1237322e-06, %v4891_v11  ;;  %v1808_v40 = vadd.f32 0.112945676, %v1807_v31  ;;  %v1756_v9 = vmul.f32 %v1755_v55, %v4836_v49  ;;  %v5035_v54 = vmin.f32 %v1910_v48, 16.0 }
 0x21e   : > { %v3104_v14 = vclamps-f32 %v4839_v19, 1.0  ;;  %v3105_v58 = vclamps-f32 %v4849_v57, 1.0  ;;  %v1666_v0 = vsel %vm5007_vm5, %v1665_v7, %v1661_v36  ;;  %v1682_v33 = vmul.f32 %v1681_v61, %v4608_v1  ;;  %v883_v57 = vpop.f32.mrf.mxu1 }
 0x21f   : > { %v1734_v45 = vmul.f32 %v5022_v39, %v4964_v29  ;;  %v1847_v21 = vmul.f32 %v1846_v62, %v4924_v46  ;;  %v1706_v63 = vsel %vm1703_vm7, %v1705_v56, %v1701_v26  ;;  %v1721_v38 = vadd.f32 1.1283791, %v1720_v60 }
 0x220   : > { %v1771_v52 = vmul.f32 %v1770_v24, %v4836_v49  ;;  %v1883_v43 = vmul.f32 3.8918573e-05, %v5028_v22  ;;  %v1793_v35 = vadd.f32 0.00028619796, %v1792_v6  ;;  %v1809_v19 = vmul.f32 %v1808_v40, %v4891_v11  ;;  %v814_v40 = vpop.f32.mrf.mxu0 }
 0x221   : > { %v810_v31 = vadd.f32 %v4959_v23, %v4065_v5  ;;  %v812_v1 = vadd.f32 %v811_v28, %v4065_v5  ;;  %v1757_v12 = vadd.f32 0.05243302, %v1756_v9  ;;  %v1923_v7 = vmul.f32 3.8918573e-05, %v5035_v54 }
 0x222   : > { %v2438_v30 = vadd.f32 1.0, %v3104_v14  ;;  %v2439_v55 = vadd.f32 1.0, %v3105_v58  ;;  %v5052_v48 = vmul.f32 %v1666_v0, %v1642_v47  ;;  %v1735_v61 = vsub.f32 1.0, %v1734_v45  ;;  %v6332_v14 = vld [vmem:[#allocation24_spill] sm:$0xff] }
 0x223   : > { %v1848_v56 = vadd.f32 0.112945676, %v1847_v21  ;;  %v926_v62 = vpack.c.bf16 %v812_v1, %v810_v31  ;;  %v5055_v36 = vmul.f32 0.5, %v4765_v42  ;;  %v5057_v60 = vadd.f32 1.0, %v1771_v52  ;;  %v5076_v21 = vpop.f32.mrf.mxu2 }
 0x224   : > { %v1884_v24 = vadd.f32 0.001143296, %v1883_v43  ;;  %v5060_v23 = vadd.f32 %v883_v57, %v4085_v34  ;;  %v5062_v28 = vmul.f32 %v1706_v63, %v1682_v33  ;;  %v5065_v26 = vmul.f32 %v1721_v38, %v4707_v59 }
 0x225   : > { %v1794_v47 = vmul.f32 %v1793_v35, %v4891_v11  ;;  %v1810_v6 = vadd.f32 0.4994258, %v1809_v19  ;;  %1070 = vmatmul.bf16.gmra.mxu2 %v926_v62  ;;  %v1758_v9 = vmul.f32 %v1757_v12, %v4836_v49  ;;  %v1924_v42 = vadd.f32 0.001143296, %v1923_v7 }
 0x226   : > { %v2470_v58 = vmul.f32 %v2438_v30, %v6332_v14  ;;  %v2471_v0 = vmul.f32 %v2439_v55, %v4633_v4  ;;  %v1736_v45 = vmul.f32 %v5022_v39, %v1735_v61  ;;  %vm1738_vm8 = vweird.f32 %v4964_v29  ;;  %v885_v7 = vpop.f32.mrf.mxu1 }
 0x227   : > { %v1849_v33 = vmul.f32 %v1848_v56, %v4924_v46  ;;  %v1027_v59 = vadd.f32 %v4579_v13, %v4972_v17  ;;  %3331 = vrcp.f32 %v5057_v60  ;;  %v1885_v63 = vmul.f32 %v1884_v24, %v5028_v22 }
 0x228   : > { %v5081_v38 = vmul.f32 0.70710677, %v5060_v23  ;;  %v1029_v4 = vadd.f32 %v4579_v13, %v1028_v10  ;;  %v1742_v52 = vand.u32 2147483647, %v4964_v29  ;;  %v1795_v43 = vadd.f32 0.0036580483, %v1794_v47 }
 0x229   : > { %v1811_v35 = vmul.f32 %v1810_v6, %v4891_v11  ;;  %v1832_v19 = vmul.f32 2.1237322e-06, %v4924_v46  ;;  %vm1739_vm9 = vweird.f32 %v5022_v39  ;;  %v1744_v17 = vand.u32 2147483648, %v4964_v29 }
 0x22a   : > { %v1759_v57 = vadd.f32 0.18741608, %v1758_v9  ;;  %v1925_v31 = vmul.f32 %v1924_v42, %v5035_v54  ;;  %v1850_v1 = vadd.f32 0.4994258, %v1849_v33  ;;  %v1872_v12 = vmul.f32 2.1237322e-06, %v5028_v22  ;;  %vm5097_vm10 = vmor %vm1738_vm8, %vm1739_vm9 }
 0x22b   : > { %v2502_v30 = vmul.f32 %v2470_v58, %v1027_v59  ;;  %v2503_v10 = vmul.f32 %v2471_v0, %v1029_v4  ;;  %v1737_v55 = vadd.f32 %v5022_v39, %v1736_v45  ;;  %v1886_v61 = vadd.f32 0.014752088, %v1885_v63  ;;  %v816_v4 = vpop.f32.mrf.mxu0 }
 0x22c   : > { %v1950_v56 = vmul.f32 %v5081_v38, %v5081_v38  ;;  %v3107_v62 = vclamps-f32 %v5020_v50, 1.0  ;;  %v1796_v47 = vmul.f32 %v1795_v43, %v4891_v11  ;;  %v5102_v6 = vadd.f32 1.0, %v1811_v35 }
 0x22d   : > { %v1833_v9 = vadd.f32 0.00028619796, %v1832_v19  ;;  %v2530_v42 = vpack.c.bf16 %v2503_v10, %v2502_v30  ;;  %v5104_v14 = vpop.eup %3331  ;;  %vm5106_vm11 = vcmp.eq.f32.partialorder %v1742_v52, 8.507059e+37  ;;  %v1745_v0 = vor.u32 1.1754944e-38, %v1744_v17 }
 0x22e   : > { %v1926_v50 = vadd.f32 0.014752088, %v1925_v31  ;;  %v5111_v29 = vadd.f32 %v885_v7, %v4085_v34  ;;  %v1760_v45 = vmul.f32 %v1759_v57, %v4836_v49  ;;  %v1851_v33 = vmul.f32 %v1850_v1, %v4924_v46  ;;  %v1033_v31 = vpop.f32.mrf.mxu2 }
 0x22f   : > { %v1873_v59 = vadd.f32 0.00028619796, %v1872_v12  ;;  %2638 = vmatmul.bf16.gmra.mxu3 %v2530_v42  ;;  %v3106_v63 = vclamps-f32 %v4937_v18, 1.0  ;;  %v1741_v52 = vsel %vm5097_vm10, %v5022_v39, %v1737_v55  ;;  %v1887_v43 = vmul.f32 %v1886_v61, %v5028_v22 }
 0x230   : > { %v5120_v35 = vmin.f32 %v1950_v56, 16.0  ;;  %v2441_v19 = vadd.f32 1.0, %v3107_v62  ;;  %v1774_v17 = vmul.f32 %v5104_v14, %v5057_v60  ;;  %v1797_v49 = vadd.f32 0.05243302, %v1796_v47 }
 0x231   : > { %3333 = vrcp.f32 %v5102_v6  ;;  %v1834_v57 = vmul.f32 %v1833_v9, %v4924_v46  ;;  %v1927_v18 = vmul.f32 %v1926_v50, %v5035_v54  ;;  %v5128_v1 = vmul.f32 0.70710677, %v5111_v29 }
 0x232   : > { %v815_v39 = vadd.f32 %v814_v40, %v4065_v5  ;;  %v817_v12 = vadd.f32 %v816_v4, %v4065_v5  ;;  %v1746_v7 = vsel %vm5106_vm11, %v1745_v0, %v1741_v52  ;;  %v5134_v30 = vadd.f32 1.0, %v1851_v33  ;;  %v888_v52 = vpop.f32.mrf.mxu1 }
 0x233   : > { %v1874_v10 = vmul.f32 %v1873_v59, %v5028_v22  ;;  %v2440_v55 = vadd.f32 1.0, %v3106_v63  ;;  %v1888_v61 = vadd.f32 0.112945676, %v1887_v43  ;;  %v1963_v56 = vmul.f32 3.8918573e-05, %v5120_v35 }
 0x234   : > { %v927_v62 = vpack.c.bf16 %v817_v12, %v815_v39  ;;  %v1034_v24 = vadd.f32 %v4579_v13, %v1033_v31  ;;  %v1775_v47 = vsub.f32 1.0, %v1774_v17  ;;  %v5140_v9 = vmul.f32 0.5, %v4823_v41 }
 0x235   : > { %v1798_v40 = vmul.f32 %v1797_v49, %v4891_v11  ;;  %v1835_v42 = vadd.f32 0.0036580483, %v1834_v57  ;;  %v1928_v58 = vadd.f32 0.112945676, %v1927_v18  ;;  %v1990_v0 = vmul.f32 %v5128_v1, %v5128_v1 }
 0x236   : > { %v1032_v50 = vadd.f32 %v4579_v13, %v5076_v21  ;;  %v2473_v33 = vmul.f32 %v2441_v19, %v4814_v3  ;;  %1075 = vmatmul.bf16.gmra.mxu2 %v927_v62  ;;  %v5151_v63 = vmul.f32 %v1746_v7, %v5065_v26  ;;  %v1761_v41 = vadd.f32 1.1283791, %v1760_v45 }
 0x237   : > { %v5148_v59 = vpop.eup %3333  ;;  %3335 = vrcp.f32 %v5134_v30  ;;  %v1875_v4 = vadd.f32 0.0036580483, %v1874_v10  ;;  %v1889_v43 = vmul.f32 %v1888_v61, %v5028_v22  ;;  %v1964_v17 = vadd.f32 0.001143296, %v1963_v56 }
 0x238   : > { %v2472_v49 = vmul.f32 %v2440_v55, %v4682_v8  ;;  %v2505_v57 = vmul.f32 %v2473_v33, %v1034_v24  ;;  %v1776_v13 = vmul.f32 %v5104_v14, %v1775_v47  ;;  %v1799_v3 = vadd.f32 0.18741608, %v1798_v40 }
 0x239   : > { %v1836_v21 = vmul.f32 %v1835_v42, %v4924_v46  ;;  %v1912_v19 = vmul.f32 2.1237322e-06, %v5035_v54  ;;  %v1929_v26 = vmul.f32 %v1928_v58, %v5035_v54  ;;  %v5160_v45 = vmin.f32 %v1990_v0, 16.0 }
 0x23a   : > { %v5163_v31 = vadd.f32 %v888_v52, %v4085_v34  ;;  %v2504_v18 = vmul.f32 %v2472_v49, %v1032_v50  ;;  %vm1778_vm12 = vweird.f32 %v5057_v60  ;;  %v1782_v8 = vand.u32 2147483647, %v5057_v60 }
 0x23b   : > { %v1814_v39 = vmul.f32 %v5148_v59, %v5102_v6  ;;  %v1876_v12 = vmul.f32 %v1875_v4, %v5028_v22  ;;  %vm1779_vm13 = vweird.f32 %v5104_v14  ;;  %v1890_v7 = vadd.f32 0.4994258, %v1889_v43 }
 0x23c   : > { %v1965_v10 = vmul.f32 %v1964_v17, %v5120_v35  ;;  %v2531_v55 = vpack.c.bf16 %v2505_v57, %v2504_v18  ;;  %v1784_v56 = vand.u32 2147483648, %v5057_v60  ;;  %v1800_v62 = vmul.f32 %v1799_v3, %v4891_v11  ;;  %vm5186_vm14 = vmor %vm1778_vm12, %vm1779_vm13 }
 0x23d   : > { %v5172_v61 = vpop.eup %3335  ;;  %v1837_v24 = vadd.f32 0.05243302, %v1836_v21  ;;  %v1913_v47 = vadd.f32 0.00028619796, %v1912_v19  ;;  %v1777_v40 = vadd.f32 %v5104_v14, %v1776_v13  ;;  %v1930_v42 = vadd.f32 0.4994258, %v1929_v26 }
 0x23e   : > { %v2003_v58 = vmul.f32 3.8918573e-05, %v5160_v45  ;;  %v5179_v0 = vmul.f32 0.70710677, %v5163_v31  ;;  %v5182_v50 = vmul.f32 %v1761_v41, %v4796_v20  ;;  %v1815_v11 = vsub.f32 1.0, %v1814_v39 }
 0x23f   : > { %v5191_v4 = vmul.f32 0.5, %v4864_v15  ;;  %v1877_v52 = vadd.f32 0.05243302, %v1876_v12  ;;  %2643 = vmatmul.bf16.gmra.mxu3 %v2531_v55  ;;  %vm5193_vm15 = vcmp.eq.f32.partialorder %v1782_v8, 8.507059e+37  ;;  %v1854_v20 = vmul.f32 %v5172_v61, %v5134_v30  ;;  %v890_v15 = vpop.f32.mrf.mxu1 }
 0x240   : > { %v1891_v41 = vmul.f32 %v1890_v7, %v5028_v22  ;;  %v1966_v60 = vadd.f32 0.014752088, %v1965_v10  ;;  %v1785_v17 = vor.u32 1.1754944e-38, %v1784_v56  ;;  %v1801_v49 = vadd.f32 1.1283791, %v1800_v62 }
 0x241   : > { %v1838_v57 = vmul.f32 %v1837_v24, %v4924_v46  ;;  %v1914_v13 = vmul.f32 %v1913_v47, %v5035_v54  ;;  %v1781_v3 = vsel %vm5186_vm14, %v5104_v14, %v1777_v40  ;;  %v1931_v21 = vmul.f32 %v1930_v42, %v5035_v54 }
 0x242   : > { %v2004_v19 = vadd.f32 0.001143296, %v2003_v58  ;;  %v2030_v26 = vmul.f32 %v5179_v0, %v5179_v0  ;;  %v1816_v18 = vmul.f32 %v5148_v59, %v1815_v11  ;;  %v1822_v8 = vand.u32 2147483647, %v5102_v6 }
 0x243   : > { %v1878_v39 = vmul.f32 %v1877_v52, %v5028_v22  ;;  %v1952_v12 = vmul.f32 2.1237322e-06, %v5120_v35  ;;  %v1824_v7 = vand.u32 2147483648, %v5102_v6  ;;  %v1855_v10 = vsub.f32 1.0, %v1854_v20 }
 0x244   : > { %v5213_v55 = vadd.f32 1.0, %v1891_v41  ;;  %v1967_v14 = vmul.f32 %v1966_v60, %v5120_v35  ;;  %vm1818_vm0 = vweird.f32 %v5102_v6  ;;  %vm1819_vm1 = vweird.f32 %v5148_v59 }
 0x245   : > { %v1839_v56 = vadd.f32 0.18741608, %v1838_v57  ;;  %v1915_v62 = vadd.f32 0.0036580483, %v1914_v13  ;;  %v1786_v24 = vsel %vm5193_vm15, %v1785_v17, %v1781_v3  ;;  %v5220_v47 = vadd.f32 1.0, %v1931_v21  ;;  %vm5230_vm3 = vmor %vm1818_vm0, %vm1819_vm1 }
 0x246   : > { %v2005_v40 = vmul.f32 %v2004_v19, %v5160_v45  ;;  %v5223_v42 = vmin.f32 %v2030_v26, 16.0  ;;  %v1817_v58 = vadd.f32 %v5148_v59, %v1816_v18  ;;  %vm5226_vm2 = vcmp.eq.f32.partialorder %v1822_v8, 8.507059e+37 }
 0x247   : > { %v1879_v6 = vadd.f32 0.18741608, %v1878_v39  ;;  %v1953_v11 = vadd.f32 0.00028619796, %v1952_v12  ;;  %v1825_v43 = vor.u32 1.1754944e-38, %v1824_v7  ;;  %v1856_v20 = vmul.f32 %v5172_v61, %v1855_v10  ;;  %v893_v18 = vpop.f32.mrf.mxu1 }
 0x248   : > { %3337 = vrcp.f32 %v5213_v55  ;;  %v1968_v41 = vadd.f32 0.112945676, %v1967_v14  ;;  %v1840_v60 = vmul.f32 %v1839_v56, %v4924_v46  ;;  %vm1858_vm4 = vweird.f32 %v5134_v30 }
 0x249   : > { %v1862_v17 = vand.u32 2147483647, %v5134_v30  ;;  %v1916_v57 = vmul.f32 %v1915_v62, %v5035_v54  ;;  %vm1859_vm5 = vweird.f32 %v5172_v61  ;;  %3339 = vrcp.f32 %v5220_v47 }
 0x24a   : > { %v2006_v13 = vadd.f32 0.014752088, %v2005_v40  ;;  %v2043_v3 = vmul.f32 3.8918573e-05, %v5223_v42  ;;  %v1821_v21 = vsel %vm5230_vm3, %v5148_v59, %v1817_v58  ;;  %v1864_v19 = vand.u32 2147483648, %v5134_v30  ;;  %vm5260_vm6 = vmor %vm1858_vm4, %vm1859_vm5 }
 0x24b   : > { %v1880_v46 = vmul.f32 %v1879_v6, %v5028_v22  ;;  %v1954_v26 = vmul.f32 %v1953_v11, %v5120_v35  ;;  %v1857_v8 = vadd.f32 %v5172_v61, %v1856_v20  ;;  %v1969_v39 = vmul.f32 %v1968_v41, %v5120_v35  ;;  %v5315_v22 = vpop.f32.mrf.mxu2 }
 0x24c   : > { %v1992_v12 = vmul.f32 2.1237322e-06, %v5160_v45  ;;  %v5253_v7 = vadd.f32 %v890_v15, %v4085_v34  ;;  %v1802_v10 = vmul.f32 %v1801_v49, %v4846_v27  ;;  %v1841_v14 = vadd.f32 1.1283791, %v1840_v60 }
 0x24d   : > { %v5265_v59 = vmul.f32 0.5, %v4956_v2  ;;  %v1917_v56 = vadd.f32 0.05243302, %v1916_v57  ;;  %v5270_v15 = vmul.f32 %v1786_v24, %v5182_v50  ;;  %vm5272_vm7 = vcmp.eq.f32.partialorder %v1862_v17, 8.507059e+37 }
 0x24e   : > { %v5267_v62 = vpop.eup %3337  ;;  %v2007_v49 = vmul.f32 %v2006_v13, %v5160_v45  ;;  %v2044_v30 = vadd.f32 0.001143296, %v2043_v3  ;;  %v1826_v40 = vsel %vm5226_vm2, %v1825_v43, %v1821_v21  ;;  %v1865_v58 = vor.u32 1.1754944e-38, %v1864_v19  ;;  %v819_v3 = vpop.f32.mrf.mxu0 }
 0x24f   : > { %6347 = vst [vmem:[#allocation24_spill] sm:$0xff] %v5265_v59  ;;  %v1881_v6 = vadd.f32 1.1283791, %v1880_v46  ;;  %v1955_v2 = vadd.f32 0.0036580483, %v1954_v26  ;;  %v5279_v11 = vpop.eup %3339  ;;  %v1861_v50 = vsel %vm5260_vm6, %v5172_v61, %v1857_v8  ;;  %v1842_v41 = vmul.f32 %v1841_v14, %v4880_v37  ;;  %v895_v14 = vpop.f32.mrf.mxu1 }
 0x250   : > { %v1970_v24 = vadd.f32 0.4994258, %v1969_v39  ;;  %v1993_v52 = vadd.f32 0.00028619796, %v1992_v12  ;;  %v5285_v20 = vmul.f32 0.70710677, %v5253_v7  ;;  %v1894_v33 = vmul.f32 %v5267_v62, %v5213_v55 }
 0x251   : > { %v1918_v43 = vmul.f32 %v1917_v56, %v5035_v54  ;;  %v5293_v17 = vmul.f32 0.5, %v4967_v16  ;;  %v5296_v57 = vmul.f32 0.5, %v5060_v23  ;;  %v2008_v61 = vadd.f32 0.112945676, %v2007_v49 }
 0x252   : > { %v2045_v13 = vmul.f32 %v2044_v30, %v5223_v42  ;;  %v5299_v21 = vmul.f32 %v1826_v40, %v1802_v10  ;;  %v1866_v37 = vsel %vm5272_vm7, %v1865_v58, %v1861_v50  ;;  %v1934_v19 = vmul.f32 %v5279_v11, %v5220_v47 }
 0x253   : > { %6350 = vst [vmem:[#allocation25_spill] sm:$0xff] %v5293_v17  ;;  %v1956_v46 = vmul.f32 %v1955_v2, %v5120_v35  ;;  %v5307_v16 = vmul.f32 %v1881_v6, %v4977_v32  ;;  %v1971_v23 = vmul.f32 %v1970_v24, %v5120_v35  ;;  %v1994_v26 = vmul.f32 %v1993_v52, %v5160_v45  ;;  %v1038_v60 = vpop.f32.mrf.mxu2 }
 0x254   : > { %6351 = vst [vmem:[#allocation26_spill] sm:$0xff] %v5296_v57  ;;  %v2070_v8 = vmul.f32 %v5285_v20, %v5285_v20  ;;  %v1895_v39 = vsub.f32 1.0, %v1894_v33  ;;  %vm1898_vm8 = vweird.f32 %v5213_v55  ;;  %v1902_v12 = vand.u32 2147483647, %v5213_v55 }
 0x255   : > { %v1919_v10 = vadd.f32 0.18741608, %v1918_v43  ;;  %v5317_v56 = vmul.f32 %v1866_v37, %v1842_v41  ;;  %v1904_v32 = vand.u32 2147483648, %v5213_v55  ;;  %v2009_v27 = vmul.f32 %v2008_v61, %v5160_v45 }
 0x256   : > { %v2046_v49 = vadd.f32 0.014752088, %v2045_v13  ;;  %v1935_v30 = vsub.f32 1.0, %v1934_v19  ;;  %vm1938_vm9 = vweird.f32 %v5220_v47  ;;  %v1957_v40 = vadd.f32 0.05243302, %v1956_v46 }
 0x257   : > { %v5323_v58 = vadd.f32 %v893_v18, %v4085_v34  ;;  %v1942_v6 = vand.u32 2147483647, %v5220_v47  ;;  %v5326_v2 = vadd.f32 1.0, %v1971_v23  ;;  %v1995_v50 = vadd.f32 0.0036580483, %v1994_v26  ;;  %v5375_v55 = vpop.f32.mrf.mxu1 }
 0x258   : > { %v5328_v24 = vmin.f32 %v2070_v8, 16.0  ;;  %v1896_v52 = vmul.f32 %v5267_v62, %v1895_v39  ;;  %v1920_v41 = vmul.f32 %v1919_v10, %v5035_v54  ;;  %v1944_v33 = vand.u32 2147483648, %v5220_v47 }
 0x259   : > { %v2032_v43 = vmul.f32 2.1237322e-06, %v5223_v42  ;;  %vm1899_vm10 = vweird.f32 %v5267_v62  ;;  %vm5335_vm11 = vcmp.eq.f32.partialorder %v1902_v12, 8.507059e+37  ;;  %v1905_v61 = vor.u32 1.1754944e-38, %v1904_v32  ;;  %v821_v12 = vpop.f32.mrf.mxu0 }
 0x25a   : > { %v2010_v13 = vadd.f32 0.4994258, %v2009_v27  ;;  %v2047_v37 = vmul.f32 %v2046_v49, %v5223_v42  ;;  %v1936_v19 = vmul.f32 %v5279_v11, %v1935_v30  ;;  %v1958_v46 = vmul.f32 %v1957_v40, %v5120_v35  ;;  %vm5362_vm14 = vmor %vm1898_vm8, %vm1899_vm10 }
 0x25b   : > { %v5343_v54 = vmul.f32 0.70710677, %v5323_v58  ;;  %v5346_v23 = vadd.f32 %v895_v14, %v4085_v34  ;;  %vm5348_vm12 = vcmp.eq.f32.partialorder %v1942_v6, 8.507059e+37  ;;  %3341 = vrcp.f32 %v5326_v2 }
 0x25c   : > { %v1996_v8 = vmul.f32 %v1995_v50, %v5160_v45  ;;  %v2083_v39 = vmul.f32 3.8918573e-05, %v5328_v24  ;;  %v3109_v10 = vclamps-f32 %v5062_v28, 1.0  ;;  %v1897_v32 = vadd.f32 %v5267_v62, %v1896_v52 }
 0x25d   : > { %6354 = vst [vmem:[#allocation27_spill] sm:$0xff] %v5346_v23  ;;  %v1921_v27 = vadd.f32 1.1283791, %v1920_v41  ;;  %vm1939_vm13 = vweird.f32 %v5279_v11  ;;  %v2033_v14 = vadd.f32 0.00028619796, %v2032_v43  ;;  %v2011_v30 = vmul.f32 %v2010_v13, %v5160_v45 }
 0x25e   : > { %v2048_v40 = vadd.f32 0.112945676, %v2047_v37  ;;  %v820_v6 = vadd.f32 %v819_v3, %v4065_v5  ;;  %v822_v28 = vadd.f32 %v821_v12, %v4065_v5  ;;  %v1937_v50 = vadd.f32 %v5279_v11, %v1936_v19  ;;  %vm5379_vm15 = vmor %vm1938_vm9, %vm1939_vm13 }
 0x25f   : > { %v1959_v52 = vadd.f32 0.18741608, %v1958_v46  ;;  %v2110_v41 = vmul.f32 %v5343_v54, %v5343_v54  ;;  %v5373_v43 = vmul.f32 0.70710677, %v5346_v23  ;;  %v1997_v3 = vadd.f32 0.05243302, %v1996_v8  ;;  %v900_v26 = vpop.f32.mrf.mxu1 }
 0x260   : > { %v2084_v5 = vadd.f32 0.001143296, %v2083_v39  ;;  %v928_v37 = vpack.c.bf16 %v822_v28, %v820_v6  ;;  %v2443_v19 = vadd.f32 1.0, %v3109_v10  ;;  %v1901_v46 = vsel %vm5362_vm14, %v5267_v62, %v1897_v32  ;;  %v5398_v10 = vld [vmem:[%s6242_s5] ss:$0 sm:$0xff] }
 0x261   : > { %v1922_v12 = vmul.f32 %v1921_v27, %v4987_v25  ;;  %v1945_v23 = vor.u32 1.1754944e-38, %v1944_v33  ;;  %v2034_v57 = vmul.f32 %v2033_v14, %v5223_v42  ;;  %v5388_v59 = vpop.eup %3341  ;;  %v5390_v47 = vadd.f32 1.0, %v2011_v30 }
 0x262   : > { %v2049_v17 = vmul.f32 %v2048_v40, %v5223_v42  ;;  %v6361_v8 = vclamps-f32 %v5052_v48, 1.0  ;;  %v1039_v62 = vadd.f32 %v5398_v10, %v1038_v60  ;;  %1080 = vmatmul.bf16.gmra.mxu2 %v928_v37  ;;  %v1941_v25 = vsel %vm5379_vm15, %v5279_v11, %v1937_v50 }
 0x263   : > { %v1960_v33 = vmul.f32 %v1959_v52, %v5120_v35  ;;  %v5405_v32 = vmin.f32 %v2110_v41, 16.0  ;;  %v2150_v48 = vmul.f32 %v5373_v43, %v5373_v43  ;;  %v1998_v27 = vmul.f32 %v1997_v3, %v5160_v45 }
 0x264   : > { %v2442_v39 = vadd.f32 1.0, %v6361_v8  ;;  %v2085_v14 = vmul.f32 %v2084_v5, %v5328_v24  ;;  %v1037_v49 = vadd.f32 %v5398_v10, %v5315_v22  ;;  %v2475_v60 = vmul.f32 %v2443_v19, %v4897_v53 }
 0x265   : > { %v1906_v30 = vsel %vm5335_vm11, %v1905_v61, %v1901_v46  ;;  %v1974_v35 = vmul.f32 %v5388_v59, %v5326_v2  ;;  %v2035_v11 = vadd.f32 0.0036580483, %v2034_v57  ;;  %v2072_v40 = vmul.f32 2.1237322e-06, %v5328_v24 }
 0x266   : > { %3343 = vrcp.f32 %v5390_v47  ;;  %v2050_v6 = vadd.f32 0.4994258, %v2049_v17  ;;  %v2474_v28 = vmul.f32 %v2442_v39, %v4817_v51  ;;  %v2507_v50 = vmul.f32 %v2475_v60, %v1039_v62 }
 0x267   : > { %v1946_v22 = vsel %vm5348_vm12, %v1945_v23, %v1941_v25  ;;  %v1961_v52 = vadd.f32 1.1283791, %v1960_v33  ;;  %v2123_v53 = vmul.f32 3.8918573e-05, %v5405_v32  ;;  %v5424_v18 = vmin.f32 %v2150_v48, 16.0 }
 0x268   : > { %v5427_v61 = vmul.f32 0.5, %v5111_v29  ;;  %v1999_v57 = vadd.f32 0.18741608, %v1998_v27  ;;  %v2086_v41 = vadd.f32 0.014752088, %v2085_v14  ;;  %v2506_v13 = vmul.f32 %v2474_v28, %v1037_v49  ;;  %v1041_v14 = vpop.f32.mrf.mxu2 }
 0x269   : > { %v1975_v3 = vsub.f32 1.0, %v1974_v35  ;;  %v5430_v17 = vmul.f32 0.5, %v5163_v31  ;;  %v2036_v51 = vmul.f32 %v2035_v11, %v5223_v42  ;;  %v2073_v5 = vadd.f32 0.00028619796, %v2072_v40 }
 0x26a   : > { %v5434_v23 = vmul.f32 %v1906_v30, %v5307_v16  ;;  %v5436_v37 = vmul.f32 %v1946_v22, %v1922_v12  ;;  %v2051_v19 = vmul.f32 %v2050_v6, %v5223_v42  ;;  %v2532_v29 = vpack.c.bf16 %v2507_v50, %v2506_v13 }
 0x26b   : > { %v5440_v46 = vmul.f32 %v1961_v52, %v5081_v38  ;;  %vm1978_vm0 = vweird.f32 %v5326_v2  ;;  %v2124_v8 = vadd.f32 0.001143296, %v2123_v53  ;;  %v2163_v31 = vmul.f32 3.8918573e-05, %v5424_v18 }
 0x26c   : > { %v5444_v39 = vpop.eup %3343  ;;  %v1982_v62 = vand.u32 2147483647, %v5326_v2  ;;  %v1984_v16 = vand.u32 2147483648, %v5326_v2  ;;  %v2000_v12 = vmul.f32 %v1999_v57, %v5160_v45  ;;  %v2087_v25 = vmul.f32 %v2086_v41, %v5328_v24  ;;  %2648 = vmatmul.bf16.gmra.mxu3 %v2532_v29 }
 0x26d   : > { %v1976_v33 = vmul.f32 %v5388_v59, %v1975_v3  ;;  %v2037_v38 = vadd.f32 0.05243302, %v2036_v51  ;;  %v2074_v48 = vmul.f32 %v2073_v5, %v5328_v24  ;;  %v2112_v27 = vmul.f32 2.1237322e-06, %v5405_v32 }
 0x26e   : > { %v5453_v49 = vadd.f32 1.0, %v2051_v19  ;;  %v5457_v60 = vadd.f32 %v5375_v55, %v4085_v34  ;;  %v3110_v30 = vclamps-f32 %v5151_v63, 1.0  ;;  %v3111_v45 = vclamps-f32 %v5270_v15, 1.0  ;;  %v5483_v19 = vpop.f32.mrf.mxu1 }
 0x26f   : > { %vm1979_vm1 = vweird.f32 %v5388_v59  ;;  %v2014_v35 = vmul.f32 %v5444_v39, %v5390_v47  ;;  %v2125_v11 = vmul.f32 %v2124_v8, %v5405_v32  ;;  %v2164_v40 = vadd.f32 0.001143296, %v2163_v31 }
 0x270   : > { %vm5465_vm2 = vcmp.eq.f32.partialorder %v1982_v62, 8.507059e+37  ;;  %v1985_v28 = vor.u32 1.1754944e-38, %v1984_v16  ;;  %v2001_v50 = vadd.f32 1.1283791, %v2000_v12  ;;  %v2088_v55 = vadd.f32 0.112945676, %v2087_v25  ;;  %vm5473_vm3 = vmor %vm1978_vm0, %vm1979_vm1 }
 0x271   : > { %v1977_v22 = vadd.f32 %v5388_v59, %v1976_v33  ;;  %v2038_v63 = vmul.f32 %v2037_v38, %v5223_v42  ;;  %v2075_v15 = vadd.f32 0.0036580483, %v2074_v48  ;;  %v2113_v52 = vadd.f32 0.00028619796, %v2112_v27  ;;  %v1043_v33 = vpop.f32.mrf.mxu2 }
 0x272   : > { %3345 = vrcp.f32 %v5453_v49  ;;  %v5479_v57 = vmul.f32 0.70710677, %v5457_v60  ;;  %v2444_v41 = vadd.f32 1.0, %v3110_v30  ;;  %v2445_v13 = vadd.f32 1.0, %v3111_v45 }
 0x273   : > { %v2015_v3 = vsub.f32 1.0, %v2014_v35  ;;  %vm2018_vm4 = vweird.f32 %v5390_v47  ;;  %v2126_v51 = vadd.f32 0.014752088, %v2125_v11  ;;  %v2165_v5 = vmul.f32 %v2164_v40, %v5424_v18 }
 0x274   : > { %v2022_v2 = vand.u32 2147483647, %v5390_v47  ;;  %v2089_v29 = vmul.f32 %v2088_v55, %v5328_v24  ;;  %v5488_v8 = vadd.f32 %v900_v26, %v4085_v34  ;;  %v1042_v31 = vadd.f32 %v5398_v10, %v1041_v14 }
 0x275   : > { %v1981_v62 = vsel %vm5473_vm3, %v5388_v59, %v1977_v22  ;;  %v2039_v16 = vadd.f32 0.18741608, %v2038_v63  ;;  %v2076_v12 = vmul.f32 %v2075_v15, %v5328_v24  ;;  %v2114_v25 = vmul.f32 %v2113_v52, %v5405_v32 }
 0x276   : > { %v2190_v38 = vmul.f32 %v5479_v57, %v5479_v57  ;;  %v2476_v48 = vmul.f32 %v2444_v41, %v4951_v44  ;;  %v1044_v26 = vadd.f32 %v5398_v10, %v1043_v33  ;;  %v2477_v27 = vmul.f32 %v2445_v13, %v5055_v36 }
 0x277   : > { %v2016_v14 = vmul.f32 %v5444_v39, %v2015_v3  ;;  %v2127_v30 = vmul.f32 %v2126_v51, %v5405_v32  ;;  %v2152_v59 = vmul.f32 2.1237322e-06, %v5424_v18  ;;  %v2166_v45 = vadd.f32 0.014752088, %v2165_v5 }
 0x278   : > { %v5504_v35 = vpop.eup %3345  ;;  %v2090_v11 = vadd.f32 0.4994258, %v2089_v29  ;;  %v5507_v40 = vmul.f32 0.70710677, %v5488_v8  ;;  %v2508_v55 = vmul.f32 %v2476_v48, %v1042_v31  ;;  %v2509_v22 = vmul.f32 %v2477_v27, %v1044_v26 }
 0x279   : > { %v2024_v44 = vand.u32 2147483648, %v5390_v47  ;;  %v5511_v63 = vmul.f32 0.5, %v5253_v7  ;;  %v2077_v36 = vadd.f32 0.05243302, %v2076_v12  ;;  %v2115_v15 = vadd.f32 0.0036580483, %v2114_v25  ;;  %v1046_v33 = vpop.f32.mrf.mxu2 }
 0x27a   : > { %v1986_v52 = vsel %vm5465_vm2, %v1985_v28, %v1981_v62  ;;  %vm2019_vm5 = vweird.f32 %v5444_v39  ;;  %v5516_v53 = vmin.f32 %v2190_v38, 16.0  ;;  %v2533_v41 = vpack.c.bf16 %v2509_v22, %v2508_v55 }
 0x27b   : > { %v2054_v13 = vmul.f32 %v5504_v35, %v5453_v49  ;;  %v2128_v3 = vadd.f32 0.112945676, %v2127_v30  ;;  %v2153_v51 = vadd.f32 0.00028619796, %v2152_v59  ;;  %v2167_v5 = vmul.f32 %v2166_v45, %v5424_v18  ;;  %vm5531_vm6 = vmor %vm2018_vm4, %vm2019_vm5 }
 0x27c   : > { %v2017_v7 = vadd.f32 %v5444_v39, %v2016_v14  ;;  %v2040_v29 = vmul.f32 %v2039_v16, %v5223_v42  ;;  %v2091_v31 = vmul.f32 %v2090_v11, %v5328_v24  ;;  %v2230_v6 = vmul.f32 %v5507_v40, %v5507_v40  ;;  %2653 = vmatmul.bf16.gmra.mxu3 %v2533_v41  ;;  %v905_v16 = vpop.f32.mrf.mxu1 }
 0x27d   : > { %v5527_v28 = vmul.f32 %v2001_v50, %v5128_v1  ;;  %v2025_v12 = vor.u32 1.1754944e-38, %v2024_v44  ;;  %v2078_v25 = vmul.f32 %v2077_v36, %v5328_v24  ;;  %v2116_v42 = vmul.f32 %v2115_v15, %v5405_v32 }
 0x27e   : > { %v5538_v38 = vmul.f32 %v1986_v52, %v5440_v46  ;;  %vm5540_vm7 = vcmp.eq.f32.partialorder %v2022_v2, 8.507059e+37  ;;  %v2203_v1 = vmul.f32 3.8918573e-05, %v5516_v53  ;;  %v3112_v47 = vclamps-f32 %v5299_v21, 1.0 }
 0x27f   : > { %v3113_v50 = vclamps-f32 %v5317_v56, 1.0  ;;  %v2055_v26 = vsub.f32 1.0, %v2054_v13  ;;  %v2129_v27 = vmul.f32 %v2128_v3, %v5405_v32  ;;  %v2154_v14 = vmul.f32 %v2153_v51, %v5424_v18 }
 0x280   : > { %v2168_v30 = vadd.f32 0.112945676, %v2167_v5  ;;  %v2021_v46 = vsel %vm5531_vm6, %v5444_v39, %v2017_v7  ;;  %v2041_v2 = vadd.f32 1.1283791, %v2040_v29  ;;  %v5552_v59 = vadd.f32 1.0, %v2091_v31 }
 0x281   : > { %v5554_v45 = vmin.f32 %v2230_v6, 16.0  ;;  %vm2058_vm8 = vweird.f32 %v5453_v49  ;;  %v2062_v21 = vand.u32 2147483647, %v5453_v49  ;;  %v2079_v56 = vadd.f32 0.18741608, %v2078_v25  ;;  %v1048_v31 = vpop.f32.mrf.mxu2 }
 0x282   : > { %v2117_v11 = vadd.f32 0.05243302, %v2116_v42  ;;  %v2064_v55 = vand.u32 2147483648, %v5453_v49  ;;  %v2204_v22 = vadd.f32 0.001143296, %v2203_v1  ;;  %v2446_v44 = vadd.f32 1.0, %v3112_v47 }
 0x283   : > { %v2447_v36 = vadd.f32 1.0, %v3113_v50  ;;  %v2056_v15 = vmul.f32 %v5504_v35, %v2055_v26  ;;  %v2130_v52 = vadd.f32 0.4994258, %v2129_v27  ;;  %v2155_v39 = vadd.f32 0.0036580483, %v2154_v14 }
 0x284   : > { %v2169_v41 = vmul.f32 %v2168_v30, %v5424_v18  ;;  %3347 = vrcp.f32 %v5552_v59  ;;  %v2243_v13 = vmul.f32 3.8918573e-05, %v5554_v45  ;;  %v5564_v3 = vadd.f32 %v905_v16, %v4085_v34  ;;  %v5581_v47 = vpop.f32.mrf.mxu1 }
 0x285   : > { %v1047_v51 = vadd.f32 %v5398_v10, %v1046_v33  ;;  %vm2059_vm9 = vweird.f32 %v5504_v35  ;;  %v2080_v5 = vmul.f32 %v2079_v56, %v5328_v24  ;;  %v2118_v7 = vmul.f32 %v2117_v11, %v5405_v32 }
 0x286   : > { %v5572_v29 = vadd.f32 %v5483_v19, %v4085_v34  ;;  %v2205_v6 = vmul.f32 %v2204_v22, %v5516_v53  ;;  %v2478_v62 = vmul.f32 %v2446_v44, %v5140_v9  ;;  %v1049_v25 = vadd.f32 %v5398_v10, %v1048_v31  ;;  %vm5585_vm10 = vmor %vm2058_vm8, %vm2059_vm9 }
 0x287   : > { %v2479_v42 = vmul.f32 %v2447_v36, %v5191_v4  ;;  %v2057_v16 = vadd.f32 %v5504_v35, %v2056_v15  ;;  %v2131_v33 = vmul.f32 %v2130_v52, %v5405_v32  ;;  %v2156_v24 = vmul.f32 %v2155_v39, %v5424_v18 }
 0x288   : > { %v2170_v1 = vadd.f32 0.4994258, %v2169_v41  ;;  %v2244_v9 = vadd.f32 0.001143296, %v2243_v13  ;;  %v5590_v50 = vmul.f32 0.70710677, %v5564_v3  ;;  %v2510_v4 = vmul.f32 %v2478_v62, %v1047_v51 }
 0x289   : > { %v2511_v26 = vmul.f32 %v2479_v42, %v1049_v25  ;;  %v2026_v27 = vsel %vm5540_vm7, %v2025_v12, %v2021_v46  ;;  %vm5594_vm11 = vcmp.eq.f32.partialorder %v2062_v21, 8.507059e+37  ;;  %v5599_v30 = vmul.f32 0.5, %v5323_v58  ;;  %v1051_v51 = vpop.f32.mrf.mxu2  ;;  %v2619_v25 = vpop.f32.mrf.mxu3 }
 0x28a   : > { %v5602_v49 = vmul.f32 0.70710677, %v5572_v29  ;;  %v5604_v56 = vpop.eup %3347  ;;  %v2081_v11 = vadd.f32 1.1283791, %v2080_v5  ;;  %v2119_v22 = vadd.f32 0.18741608, %v2118_v7  ;;  %v2061_v12 = vsel %vm5585_vm10, %v5504_v35, %v2057_v16 }
 0x28b   : > { %v2206_v44 = vadd.f32 0.014752088, %v2205_v6  ;;  %v2534_v36 = vpack.c.bf16 %v2511_v26, %v2510_v4  ;;  %v2065_v48 = vor.u32 1.1754944e-38, %v2064_v55  ;;  %v2104_v46 = vand.u32 2147483648, %v5552_v59 }
 0x28c   : > { %v2157_v21 = vadd.f32 0.05243302, %v2156_v24  ;;  %v5610_v15 = vadd.f32 1.0, %v2131_v33  ;;  %v2171_v58 = vmul.f32 %v2170_v1, %v5424_v18  ;;  %v2245_v52 = vmul.f32 %v2244_v9, %v5554_v45  ;;  %v910_v1 = vpop.f32.mrf.mxu1 }
 0x28d   : > { %v2310_v39 = vmul.f32 %v5590_v50, %v5590_v50  ;;  %2658 = vmatmul.bf16.gmra.mxu3 %v2534_v36  ;;  %v5617_v41 = vmul.f32 %v2026_v27, %v5527_v28  ;;  %v2042_v13 = vmul.f32 %v2041_v2, %v5179_v0  ;;  %v2094_v35 = vmul.f32 %v5604_v56, %v5552_v59  ;;  %v5633_v0 = vld [vmem:[%s6244_s7] ss:$0 sm:$0xff] }
 0x28e   : > { %v2270_v55 = vmul.f32 %v5602_v49, %v5602_v49  ;;  %v5625_v5 = vmul.f32 %v2081_v11, %v5285_v20  ;;  %v2102_v7 = vand.u32 2147483647, %v5552_v59  ;;  %v2120_v31 = vmul.f32 %v2119_v22, %v5405_v32  ;;  %v3366_v36 = vld [vmem:[%s3963_s24] sm:$0xff] }
 0x28f   : > { %v2207_v6 = vmul.f32 %v2206_v44, %v5516_v53  ;;  %v2066_v28 = vsel %vm5594_vm11, %v2065_v48, %v2061_v12  ;;  %vm2098_vm12 = vweird.f32 %v5552_v59  ;;  %v5638_v2 = vor.u32 1.1754944e-38, %v2104_v46 }
 0x290   : > { %v2158_v20 = vmul.f32 %v2157_v21, %v5424_v18  ;;  %v2192_v62 = vmul.f32 2.1237322e-06, %v5516_v53  ;;  %3349 = vrcp.f32 %v5610_v15  ;;  %v5643_v32 = vadd.f32 1.0, %v2171_v58 }
 0x291   : > { %v2246_v42 = vadd.f32 0.014752088, %v2245_v52  ;;  %v5645_v16 = vmin.f32 %v2310_v39, 16.0  ;;  %v2095_v33 = vsub.f32 1.0, %v2094_v35  ;;  %v5647_v24 = vmin.f32 %v2270_v55, 16.0 }
 0x292   : > { %v2620_v19 = vadd.f32 %v5633_v0, %v2619_v25  ;;  %v3115_v9 = vclamps-f32 %v5436_v37, 1.0  ;;  %v5651_v4 = vmul.f32 %v2066_v28, %v2042_v13  ;;  %v2121_v26 = vadd.f32 1.1283791, %v2120_v31  ;;  %v2621_v25 = vpop.f32.mrf.mxu3 }
 0x293   : > { %v2144_v27 = vand.u32 2147483648, %v5610_v15  ;;  %v2208_v14 = vadd.f32 0.112945676, %v2207_v6  ;;  %v2159_v11 = vadd.f32 0.18741608, %v2158_v20  ;;  %v3114_v44 = vclamps-f32 %v5434_v23, 1.0  ;;  %v1053_v23 = vpop.f32.mrf.mxu2 }
 0x294   : > { %v2193_v22 = vadd.f32 0.00028619796, %v2192_v62  ;;  %v2699_v12 = vadd.f32 %v3366_v36, %v2620_v19  ;;  %3351 = vrcp.f32 %v5643_v32  ;;  %v2247_v48 = vmul.f32 %v2246_v42, %v5554_v45  ;;  %v6380_v36 = vld [vmem:[#allocation24_spill] sm:$0xff] }
 0x295   : > { %v2323_v46 = vmul.f32 3.8918573e-05, %v5645_v16  ;;  %v5660_v37 = vadd.f32 %v910_v1, %v4085_v34  ;;  %v2096_v21 = vmul.f32 %v5604_v56, %v2095_v33  ;;  %vm2099_vm13 = vweird.f32 %v5604_v56 }
 0x296   : > { %v2283_v58 = vmul.f32 3.8918573e-05, %v5647_v24  ;;  %2731 = vst [vmem:[%s5666_s25] sm:$0xff] %v2699_v12  ;;  %v2449_v52 = vadd.f32 1.0, %v3115_v9  ;;  %v5669_v39 = vpop.eup %3349  ;;  %vm5671_vm14 = vcmp.eq.f32.partialorder %v2102_v7, 8.507059e+37  ;;  %v5676_v35 = vmul.f32 %v2121_v26, %v5343_v54  ;;  %vm5701_vm15 = vmor %vm2098_vm12, %vm2099_vm13 }
 0x297   : > { %v2209_v31 = vmul.f32 %v2208_v14, %v5516_v53  ;;  %v5682_v6 = vadd.f32 %v5581_v47, %v4085_v34  ;;  %v5684_v28 = vor.u32 1.1754944e-38, %v2144_v27  ;;  %v2194_v20 = vmul.f32 %v2193_v22, %v5516_v53  ;;  %v6377_v47 = vld [vmem:[#allocation25_spill] sm:$0xff] }
 0x298   : > { %v2448_v62 = vadd.f32 1.0, %v3114_v44  ;;  %v1054_v7 = vadd.f32 %v5398_v10, %v1053_v23  ;;  %v2160_v42 = vmul.f32 %v2159_v11, %v5424_v18  ;;  %v2248_v54 = vadd.f32 0.112945676, %v2247_v48 }
 0x299   : > { %6376 = vst [vmem:[#allocation28_spill] sm:$0xff] %v5682_v6  ;;  %v2324_v33 = vadd.f32 0.001143296, %v2323_v46  ;;  %v5690_v1 = vmul.f32 0.70710677, %v5660_v37  ;;  %v2097_v19 = vadd.f32 %v5604_v56, %v2096_v21  ;;  %v1052_v34 = vadd.f32 %v5398_v10, %v1051_v51 }
 0x29a   : > { %v2284_v9 = vadd.f32 0.001143296, %v2283_v58  ;;  %v2481_v26 = vmul.f32 %v2449_v52, %v6377_v47  ;;  %v5695_v27 = vpop.eup %3351  ;;  %v2134_v14 = vmul.f32 %v5669_v39, %v5610_v15  ;;  %v2210_v11 = vadd.f32 0.4994258, %v2209_v31 }
 0x29b   : > { %v2232_v22 = vmul.f32 2.1237322e-06, %v5554_v45  ;;  %v5709_v51 = vmul.f32 0.70710677, %v5682_v6  ;;  %v2195_v44 = vadd.f32 0.0036580483, %v2194_v20  ;;  %v2480_v12 = vmul.f32 %v2448_v62, %v6380_v36 }
 0x29c   : > { %v2513_v48 = vmul.f32 %v2481_v26, %v1054_v7  ;;  %v2622_v46 = vadd.f32 %v5633_v0, %v2621_v25  ;;  %v5713_v59 = vadd.f32 1.1283791, %v2160_v42  ;;  %v2249_v21 = vmul.f32 %v2248_v54, %v5554_v45  ;;  %v1056_v7 = vpop.f32.mrf.mxu2 }
 0x29d   : > { %v2325_v58 = vmul.f32 %v2324_v33, %v5645_v16  ;;  %v2390_v23 = vmul.f32 %v5690_v1, %v5690_v1  ;;  %v2101_v52 = vsel %vm5701_vm15, %v5604_v56, %v2097_v19  ;;  %v2174_v31 = vmul.f32 %v5695_v27, %v5643_v32  ;;  %v3367_v19 = vld [vmem:[%s3963_s24 + $0x8] sm:$0xff] }
 0x29e   : > { %v2285_v20 = vmul.f32 %v2284_v9, %v5647_v24  ;;  %v2512_v62 = vmul.f32 %v2480_v12, %v1052_v34  ;;  %v2135_v25 = vsub.f32 1.0, %v2134_v14  ;;  %v2211_v42 = vmul.f32 %v2210_v11, %v5516_v53  ;;  %v2624_v9 = vpop.f32.mrf.mxu3 }
 0x29f   : > { %v2233_v54 = vadd.f32 0.00028619796, %v2232_v22  ;;  %v2350_v33 = vmul.f32 %v5709_v51, %v5709_v51  ;;  %vm2138_vm0 = vweird.f32 %v5610_v15  ;;  %vm2139_vm1 = vweird.f32 %v5669_v39 }
 0x2a0   : > { %v2196_v56 = vmul.f32 %v2195_v44, %v5516_v53  ;;  %v2700_v47 = vadd.f32 %v3367_v19, %v2622_v46  ;;  %v2535_v26 = vpack.c.bf16 %v2513_v48, %v2512_v62  ;;  %v3117_v34 = vclamps-f32 %v5617_v41, 1.0  ;;  %vm5780_vm5 = vmor %vm2138_vm0, %vm2139_vm1 }
 0x2a1   : > { %v2250_v18 = vadd.f32 0.4994258, %v2249_v21  ;;  %v2326_v14 = vadd.f32 0.014752088, %v2325_v58  ;;  %v5733_v11 = vmin.f32 %v2390_v23, 16.0  ;;  %v2625_v22 = vadd.f32 %v5633_v0, %v2624_v9  ;;  %v3368_v21 = vld [vmem:[%s3963_s24 + $0x10] sm:$0xff] }
 0x2a2   : > { %v2106_v36 = vsel %vm5671_vm14, %v5638_v2, %v2101_v52  ;;  %v2175_v12 = vsub.f32 1.0, %v2174_v31  ;;  %v2286_v55 = vadd.f32 0.014752088, %v2285_v20  ;;  %2732 = vst [vmem:[%s5666_s25 + $0x8] sm:$0xff] %v2700_v47  ;;  %2663 = vmatmul.bf16.gmra.mxu3 %v2535_v26  ;;  %v3116_v44 = vclamps-f32 %v5538_v38, 1.0 }
 0x2a3   : > { %v5741_v48 = vadd.f32 1.0, %v2211_v42  ;;  %v2234_v41 = vmul.f32 %v2233_v54, %v5554_v45  ;;  %v5744_v46 = vmin.f32 %v2350_v33, 16.0  ;;  %v2701_v58 = vadd.f32 %v3368_v21, %v2625_v22 }
 0x2a4   : > { %v2136_v23 = vmul.f32 %v5669_v39, %v2135_v25  ;;  %vm2178_vm2 = vweird.f32 %v5643_v32  ;;  %v2197_v2 = vadd.f32 0.05243302, %v2196_v56  ;;  %v2451_v13 = vadd.f32 1.0, %v3117_v34  ;;  %v1058_v33 = vpop.f32.mrf.mxu2 }
 0x2a5   : > { %v2182_v52 = vand.u32 2147483647, %v5643_v32  ;;  %v2251_v31 = vmul.f32 %v2250_v18, %v5554_v45  ;;  %v2327_v38 = vmul.f32 %v2326_v14, %v5645_v16  ;;  %v2403_v20 = vmul.f32 3.8918573e-05, %v5733_v11  ;;  %2733 = vst [vmem:[%s5666_s25 + $0x10] sm:$0xff] %v2701_v58  ;;  %v6384_v58 = vld [vmem:[#allocation26_spill] sm:$0xff] }
 0x2a6   : > { %v2176_v62 = vmul.f32 %v5695_v27, %v2175_v12  ;;  %v2184_v42 = vand.u32 2147483648, %v5643_v32  ;;  %v2287_v54 = vmul.f32 %v2286_v55, %v5647_v24  ;;  %v2450_v25 = vadd.f32 1.0, %v3116_v44  ;;  %v2626_v22 = vpop.f32.mrf.mxu3 }
 0x2a7   : > { %v6381_v56 = vand.u32 2147483647, %v5610_v15  ;;  %3353 = vrcp.f32 %v5741_v48  ;;  %v2235_v47 = vadd.f32 0.0036580483, %v2234_v41  ;;  %v2363_v26 = vmul.f32 3.8918573e-05, %v5744_v46 }
 0x2a8   : > { %v1059_v9 = vadd.f32 %v5398_v10, %v1058_v33  ;;  %v2137_v34 = vadd.f32 %v5669_v39, %v2136_v23  ;;  %v2198_v18 = vmul.f32 %v2197_v2, %v5516_v53  ;;  %v1057_v55 = vadd.f32 %v5398_v10, %v1056_v7 }
 0x2a9   : > { %vm5759_vm3 = vcmp.eq.f32.partialorder %v6381_v56, 8.507059e+37  ;;  %v2483_v14 = vmul.f32 %v2451_v13, %v5427_v61  ;;  %vm2179_vm4 = vweird.f32 %v5695_v27  ;;  %v5771_v12 = vadd.f32 1.0, %v2251_v31 }
 0x2aa   : > { %v2328_v44 = vadd.f32 0.112945676, %v2327_v38  ;;  %v2404_v21 = vadd.f32 0.001143296, %v2403_v20  ;;  %v2288_v41 = vadd.f32 0.112945676, %v2287_v54  ;;  %v2482_v56 = vmul.f32 %v2450_v25, %v6384_v58  ;;  %vm5788_vm6 = vmor %vm2178_vm2, %vm2179_vm4 }
 0x2ab   : > { %v2515_v6 = vmul.f32 %v2483_v14, %v1059_v9  ;;  %v2627_v33 = vadd.f32 %v5633_v0, %v2626_v22  ;;  %v2107_v23 = vmul.f32 %v2106_v36, %v5625_v5  ;;  %v2177_v7 = vadd.f32 %v5695_v27, %v2176_v62 }
 0x2ac   : > { %v2236_v2 = vmul.f32 %v2235_v47, %v5554_v45  ;;  %v2364_v13 = vadd.f32 0.001143296, %v2363_v26  ;;  %vm5792_vm7 = vcmp.eq.f32.partialorder %v2182_v52, 8.507059e+37  ;;  %v2185_v15 = vor.u32 1.1754944e-38, %v2184_v42  ;;  %v3369_v42 = vld [vmem:[%s3963_s24 + $0x18] sm:$0xff]  ;;  %v1061_v9 = vpop.f32.mrf.mxu2 }
 0x2ad   : > { %v2199_v36 = vadd.f32 0.18741608, %v2198_v18  ;;  %v2514_v38 = vmul.f32 %v2482_v56, %v1057_v55  ;;  %v5796_v20 = vpop.eup %3353  ;;  %3355 = vrcp.f32 %v5771_v12  ;;  %v2272_v62 = vmul.f32 2.1237322e-06, %v5647_v24 }
 0x2ae   : > { %v2329_v32 = vmul.f32 %v2328_v44, %v5645_v16  ;;  %v2405_v54 = vmul.f32 %v2404_v21, %v5733_v11  ;;  %v2141_v52 = vsel %vm5780_vm5, %v5669_v39, %v2137_v34  ;;  %v2289_v25 = vmul.f32 %v2288_v41, %v5647_v24 }
 0x2af   : > { %v2702_v47 = vadd.f32 %v3369_v42, %v2627_v33  ;;  %v2536_v26 = vpack.c.bf16 %v2515_v6, %v2514_v38  ;;  %v2181_v18 = vsel %vm5788_vm6, %v5695_v27, %v2177_v7  ;;  %v2237_v55 = vadd.f32 0.05243302, %v2236_v2  ;;  %v2629_v6 = vpop.f32.mrf.mxu3 }
 0x2b0   : > { %v2312_v14 = vmul.f32 2.1237322e-06, %v5645_v16  ;;  %v2365_v22 = vmul.f32 %v2364_v13, %v5744_v46  ;;  %v2162_v44 = vmul.f32 %v5713_v59, %v5373_v43  ;;  %v2200_v39 = vmul.f32 %v2199_v36, %v5516_v53  ;;  %v3370_v13 = vld [vmem:[%s3963_s24 + $0x20] sm:$0xff]  ;;  %v6391_v36 = vld [vmem:[#allocation27_spill] sm:$0xff] }
 0x2b1   : > { %v2214_v34 = vmul.f32 %v5796_v20, %v5741_v48  ;;  %2734 = vst [vmem:[%s5666_s25 + $0x18] sm:$0xff] %v2702_v47  ;;  %v3119_v21 = vclamps-f32 %v2107_v23, 1.0  ;;  %v2273_v41 = vadd.f32 0.00028619796, %v2272_v62  ;;  %v2330_v58 = vadd.f32 0.4994258, %v2329_v32 }
 0x2b2   : > { %v2406_v27 = vadd.f32 0.014752088, %v2405_v54  ;;  %v2630_v56 = vadd.f32 %v5633_v0, %v2629_v6  ;;  %v2146_v33 = vsel %vm5759_vm3, %v5684_v28, %v2141_v52  ;;  %v2186_v43 = vsel %vm5792_vm7, %v2185_v15, %v2181_v18  ;;  %2668 = vmatmul.bf16.gmra.mxu3 %v2536_v26 }
 0x2b3   : > { %v2290_v53 = vadd.f32 0.4994258, %v2289_v25  ;;  %v3118_v59 = vclamps-f32 %v5651_v4, 1.0  ;;  %v5825_v61 = vpop.eup %3355  ;;  %v2238_v23 = vmul.f32 %v2237_v55, %v5554_v45  ;;  %v2313_v7 = vadd.f32 0.00028619796, %v2312_v14 }
 0x2b4   : > { %v2366_v2 = vadd.f32 0.014752088, %v2365_v22  ;;  %v2703_v31 = vadd.f32 %v3370_v13, %v2630_v56  ;;  %v5830_v38 = vmul.f32 0.5, %v6391_v36  ;;  %v2201_v28 = vadd.f32 1.1283791, %v2200_v39  ;;  %v1063_v47 = vpop.f32.mrf.mxu2 }
 0x2b5   : > { %v2215_v19 = vsub.f32 1.0, %v2214_v34  ;;  %v2453_v5 = vadd.f32 1.0, %v3119_v21  ;;  %v5833_v15 = vmul.f32 %v2146_v33, %v5676_v35  ;;  %v2274_v62 = vmul.f32 %v2273_v41, %v5647_v24 }
 0x2b6   : > { %v2331_v4 = vmul.f32 %v2330_v58, %v5645_v16  ;;  %v2407_v32 = vmul.f32 %v2406_v27, %v5733_v11  ;;  %2735 = vst [vmem:[%s5666_s25 + $0x20] sm:$0xff] %v2703_v31  ;;  %v5839_v54 = vmul.f32 %v2186_v43, %v2162_v44  ;;  %v2254_v52 = vmul.f32 %v5825_v61, %v5771_v12 }
 0x2b7   : > { %v2291_v25 = vmul.f32 %v2290_v53, %v5647_v24  ;;  %v2452_v42 = vadd.f32 1.0, %v3118_v59  ;;  %v2239_v26 = vadd.f32 0.18741608, %v2238_v23  ;;  %v2314_v35 = vmul.f32 %v2313_v7, %v5645_v16  ;;  %v2631_v34 = vpop.f32.mrf.mxu3  ;;  %v3371_v59 = vld [vmem:[%s3963_s24 + $0x28] sm:$0xff] }
 0x2b8   : > { %v2367_v18 = vmul.f32 %v2366_v2, %v5744_v46  ;;  %v1064_v55 = vadd.f32 %v5398_v10, %v1063_v47  ;;  %v5848_v14 = vmul.f32 %v2201_v28, %v5479_v57  ;;  %v2216_v22 = vmul.f32 %v5796_v20, %v2215_v19 }
 0x2b9   : > { %v1062_v44 = vadd.f32 %v5398_v10, %v1061_v9  ;;  %v2485_v39 = vmul.f32 %v2453_v5, %v5511_v63  ;;  %v2275_v6 = vadd.f32 0.0036580483, %v2274_v62  ;;  %v5853_v21 = vadd.f32 1.0, %v2331_v4 }
 0x2ba   : > { %v2408_v41 = vadd.f32 0.112945676, %v2407_v32  ;;  %v2632_v58 = vadd.f32 %v5633_v0, %v2631_v34  ;;  %v2255_v27 = vsub.f32 1.0, %v2254_v52  ;;  %v5856_v56 = vadd.f32 1.0, %v2291_v25 }
 0x2bb   : > { %v2484_v57 = vmul.f32 %v2452_v42, %v5430_v17  ;;  %v2517_v33 = vmul.f32 %v2485_v39, %v1064_v55  ;;  %v2240_v43 = vmul.f32 %v2239_v26, %v5554_v45  ;;  %v2315_v53 = vadd.f32 0.0036580483, %v2314_v35 }
 0x2bc   : > { %v2368_v9 = vadd.f32 0.112945676, %v2367_v18  ;;  %v2704_v63 = vadd.f32 %v3371_v59, %v2632_v58  ;;  %vm2218_vm8 = vweird.f32 %v5741_v48  ;;  %v2222_v23 = vand.u32 2147483647, %v5741_v48  ;;  %v1066_v28 = vpop.f32.mrf.mxu2  ;;  %v3372_v58 = vld [vmem:[%s3963_s24 + $0x30] sm:$0xff] }
 0x2bd   : > { %v2224_v7 = vand.u32 2147483648, %v5741_v48  ;;  %v2516_v2 = vmul.f32 %v2484_v57, %v1062_v44  ;;  %v2217_v13 = vadd.f32 %v5796_v20, %v2216_v22  ;;  %vm2219_vm9 = vweird.f32 %v5796_v20 }
 0x2be   : > { %3357 = vrcp.f32 %v5853_v21  ;;  %v2409_v17 = vmul.f32 %v2408_v41, %v5733_v11  ;;  %2736 = vst [vmem:[%s5666_s25 + $0x28] sm:$0xff] %v2704_v63  ;;  %v2256_v45 = vmul.f32 %v5825_v61, %v2255_v27  ;;  %v2276_v31 = vmul.f32 %v2275_v6, %v5647_v24  ;;  %vm5883_vm12 = vmor %vm2218_vm8, %vm2219_vm9 }
 0x2bf   : > { %3359 = vrcp.f32 %v5856_v56  ;;  %v2537_v36 = vpack.c.bf16 %v2517_v33, %v2516_v2  ;;  %v2241_v19 = vadd.f32 1.1283791, %v2240_v43  ;;  %vm2258_vm10 = vweird.f32 %v5771_v12  ;;  %v2634_v52 = vpop.f32.mrf.mxu3 }
 0x2c0   : > { %v2316_v5 = vmul.f32 %v2315_v53, %v5645_v16  ;;  %v2369_v62 = vmul.f32 %v2368_v9, %v5744_v46  ;;  %vm2259_vm11 = vweird.f32 %v5825_v61  ;;  %v2262_v4 = vand.u32 2147483647, %v5771_v12 }
 0x2c1   : > { %v2392_v32 = vmul.f32 2.1237322e-06, %v5733_v11  ;;  %v3121_v25 = vclamps-f32 %v5839_v54, 1.0  ;;  %v2264_v47 = vand.u32 2147483648, %v5771_v12  ;;  %v2352_v26 = vmul.f32 2.1237322e-06, %v5744_v46  ;;  %vm5902_vm14 = vmor %vm2258_vm10, %vm2259_vm11 }
 0x2c2   : > { %v2410_v35 = vadd.f32 0.4994258, %v2409_v17  ;;  %v2635_v18 = vadd.f32 %v5633_v0, %v2634_v52  ;;  %vm5890_vm13 = vcmp.eq.f32.partialorder %v2222_v23, 8.507059e+37  ;;  %v2257_v54 = vadd.f32 %v5825_v61, %v2256_v45  ;;  %2673 = vmatmul.bf16.gmra.mxu3 %v2537_v36 }
 0x2c3   : > { %v2277_v22 = vadd.f32 0.05243302, %v2276_v31  ;;  %v3120_v48 = vclamps-f32 %v5833_v15, 1.0  ;;  %v2225_v39 = vor.u32 1.1754944e-38, %v2224_v7  ;;  %v2317_v6 = vadd.f32 0.05243302, %v2316_v5 }
 0x2c4   : > { %v5896_v44 = vpop.eup %3357  ;;  %v2370_v41 = vadd.f32 0.4994258, %v2369_v62  ;;  %v2705_v27 = vadd.f32 %v3372_v58, %v2635_v18  ;;  %v2221_v15 = vsel %vm5883_vm12, %v5796_v20, %v2217_v13  ;;  %v2242_v33 = vmul.f32 %v2241_v19, %v5507_v40  ;;  %v1068_v2 = vpop.f32.mrf.mxu2 }
 0x2c5   : > { %v5907_v57 = vpop.eup %3359  ;;  %v2393_v43 = vadd.f32 0.00028619796, %v2392_v32  ;;  %v2455_v53 = vadd.f32 1.0, %v3121_v25  ;;  %vm5913_vm15 = vcmp.eq.f32.partialorder %v2262_v4, 8.507059e+37  ;;  %v2265_v9 = vor.u32 1.1754944e-38, %v2264_v47 }
 0x2c6   : > { %v2353_v59 = vadd.f32 0.00028619796, %v2352_v26  ;;  %v2411_v63 = vmul.f32 %v2410_v35, %v5733_v11  ;;  %2737 = vst [vmem:[%s5666_s25 + $0x30] sm:$0xff] %v2705_v27  ;;  %v2261_v23 = vsel %vm5902_vm14, %v5825_v61, %v2257_v54  ;;  %v2278_v7 = vmul.f32 %v2277_v22, %v5647_v24 }
 0x2c7   : > { %v2334_v40 = vmul.f32 %v5896_v44, %v5853_v21  ;;  %v2454_v20 = vadd.f32 1.0, %v3120_v48  ;;  %v2294_v13 = vmul.f32 %v5907_v57, %v5856_v56  ;;  %v2318_v17 = vmul.f32 %v2317_v6, %v5645_v16  ;;  %v2636_v62 = vpop.f32.mrf.mxu3 }
 0x2c8   : > { %v2371_v45 = vmul.f32 %v2370_v41, %v5744_v46  ;;  %v1069_v31 = vadd.f32 %v5398_v10, %v1068_v2  ;;  %v2226_v36 = vsel %vm5890_vm13, %v2225_v39, %v2221_v15  ;;  %v2394_v61 = vmul.f32 %v2393_v43, %v5733_v11 }
 0x2c9   : > { %v1067_v19 = vadd.f32 %v5398_v10, %v1066_v28  ;;  %v2487_v5 = vmul.f32 %v2455_v53, %v5830_v38  ;;  %v2266_v4 = vsel %vm5913_vm15, %v2265_v9, %v2261_v23  ;;  %v2354_v32 = vmul.f32 %v2353_v59, %v5744_v46  ;;  %v3373_v38 = vld [vmem:[%s3963_s24 + $0x38] sm:$0xff] }
 0x2ca   : > { %v5938_v52 = vadd.f32 1.0, %v2411_v63  ;;  %v2637_v25 = vadd.f32 %v5633_v0, %v2636_v62  ;;  %v2279_v42 = vadd.f32 0.18741608, %v2278_v7  ;;  %v2335_v47 = vsub.f32 1.0, %v2334_v40 }
 0x2cb   : > { %v2486_v26 = vmul.f32 %v2454_v20, %v5599_v30  ;;  %v2519_v35 = vmul.f32 %v2487_v5, %v1069_v31  ;;  %v2295_v18 = vsub.f32 1.0, %v2294_v13  ;;  %v2319_v10 = vadd.f32 0.18741608, %v2318_v17  ;;  %v3374_v13 = vld [vmem:[%s3963_s24 + $0x40] sm:$0xff] }
 0x2cc   : > { %v5942_v28 = vadd.f32 1.0, %v2371_v45  ;;  %v2706_v55 = vadd.f32 %v3373_v38, %v2637_v25  ;;  %v2267_v54 = vmul.f32 %v2266_v4, %v2242_v33  ;;  %v2395_v22 = vadd.f32 0.0036580483, %v2394_v61  ;;  %v1071_v58 = vpop.f32.mrf.mxu2 }
 0x2cd   : > { %v2518_v48 = vmul.f32 %v2486_v26, %v1067_v19  ;;  %v2227_v39 = vmul.f32 %v2226_v36, %v5848_v14  ;;  %v2355_v34 = vadd.f32 0.0036580483, %v2354_v32  ;;  %3361 = vrcp.f32 %v5938_v52 }
 0x2ce   : > { %2738 = vst [vmem:[%s5666_s25 + $0x38] sm:$0xff] %v2706_v55  ;;  %v2280_v6 = vmul.f32 %v2279_v42, %v5647_v24  ;;  %vm2298_vm0 = vweird.f32 %v5856_v56  ;;  %v2336_v30 = vmul.f32 %v5896_v44, %v2335_v47  ;;  %v2296_v27 = vmul.f32 %v5907_v57, %v2295_v18 }
 0x2cf   : > { %v2538_v41 = vpack.c.bf16 %v2519_v35, %v2518_v48  ;;  %v2302_v15 = vand.u32 2147483647, %v5856_v56  ;;  %v2320_v33 = vmul.f32 %v2319_v10, %v5645_v16  ;;  %3363 = vrcp.f32 %v5942_v28  ;;  %v2639_v14 = vpop.f32.mrf.mxu3  ;;  %v6006_v35 = vld [vmem:[%s6242_s5] ss:$0 sm:$0xff] }
 0x2d0   : > { %vm2338_vm1 = vweird.f32 %v5853_v21  ;;  %vm2339_vm2 = vweird.f32 %v5896_v44  ;;  %v2396_v24 = vmul.f32 %v2395_v22, %v5733_v11  ;;  %v3123_v43 = vclamps-f32 %v2267_v54, 1.0 }
 0x2d1   : > { %vm2299_vm3 = vweird.f32 %v5907_v57  ;;  %v2344_v53 = vand.u32 2147483648, %v5853_v21  ;;  %v2356_v12 = vmul.f32 %v2355_v34, %v5744_v46  ;;  %v2640_v9 = vadd.f32 %v5633_v0, %v2639_v14  ;;  %vm5972_vm4 = vmor %vm2338_vm1, %vm2339_vm2 }
 0x2d2   : > { %v2337_v16 = vadd.f32 %v5896_v44, %v2336_v30  ;;  %v2342_v59 = vand.u32 2147483647, %v5853_v21  ;;  %2678 = vmatmul.bf16.gmra.mxu3 %v2538_v41  ;;  %v3122_v63 = vclamps-f32 %v2227_v39, 1.0  ;;  %v2297_v7 = vadd.f32 %v5907_v57, %v2296_v27  ;;  %vm5982_vm5 = vmor %vm2298_vm0, %vm2299_vm3  ;;  %v3376_v41 = vld [vmem:[%s3963_s24 + $0x48] sm:$0xff] }
 0x2d3   : > { %v5964_v23 = vpop.eup %3361  ;;  %v2304_v40 = vand.u32 2147483648, %v5856_v56  ;;  %v2321_v20 = vadd.f32 1.1283791, %v2320_v33  ;;  %v2707_v17 = vadd.f32 %v3374_v13, %v2640_v9  ;;  %v1113_v45 = vmul.f32 0.5, %v5488_v8 }
 0x2d4   : > { %v2281_v31 = vadd.f32 1.1283791, %v2280_v6  ;;  %v2397_v61 = vadd.f32 0.05243302, %v2396_v24  ;;  %v2457_v19 = vadd.f32 1.0, %v3123_v43  ;;  %v1112_v5 = vmul.f32 0.5, %v5457_v60  ;;  %v1073_v42 = vpop.f32.mrf.mxu2 }
 0x2d5   : > { %v5986_v21 = vpop.eup %3363  ;;  %vm5989_vm6 = vcmp.eq.f32.partialorder %v2302_v15, 8.507059e+37  ;;  %v2345_v8 = vor.u32 1.1754944e-38, %v2344_v53  ;;  %v2357_v4 = vadd.f32 0.05243302, %v2356_v12  ;;  %2739 = vst [vmem:[%s5666_s25 + $0x40] sm:$0xff] %v2707_v17  ;;  %v2341_v56 = vsel %vm5972_vm4, %v5896_v44, %v2337_v16 }
 0x2d6   : > { %vm2343_vm7 = vcmp.eq.f32.partialorder %v2342_v59, 8.507059e+37  ;;  %v2414_v32 = vmul.f32 %v5964_v23, %v5938_v52  ;;  %v2456_v25 = vadd.f32 1.0, %v3122_v63  ;;  %v2301_v60 = vsel %vm5982_vm5, %v5907_v57, %v2297_v7 }
 0x2d7   : > { %v2305_v47 = vor.u32 1.1754944e-38, %v2304_v40  ;;  %v2322_v26 = vmul.f32 %v2321_v20, %v5590_v50  ;;  %v1074_v44 = vadd.f32 %v6006_v35, %v1073_v42  ;;  %v2374_v18 = vmul.f32 %v5986_v21, %v5942_v28  ;;  %v2641_v57 = vpop.f32.mrf.mxu3 }
 0x2d8   : > { %v2398_v10 = vmul.f32 %v2397_v61, %v5733_v11  ;;  %v1072_v38 = vadd.f32 %v6006_v35, %v1071_v58  ;;  %v2489_v55 = vmul.f32 %v2457_v19, %v1113_v45  ;;  %v2346_v54 = vsel %vm2343_vm7, %v2345_v8, %v2341_v56 }
 0x2d9   : > { %v2358_v50 = vmul.f32 %v2357_v4, %v5744_v46  ;;  %v2642_v22 = vadd.f32 %v5633_v0, %v2641_v57  ;;  %v2282_v48 = vmul.f32 %v2281_v31, %v5602_v49  ;;  %v2415_v39 = vsub.f32 1.0, %v2414_v32  ;;  %v3377_v31 = vld [vmem:[%s3963_s24 + $0x50] sm:$0xff] }
 0x2da   : > { %v2488_v34 = vmul.f32 %v2456_v25, %v1112_v5  ;;  %v2521_v6 = vmul.f32 %v2489_v55, %v1074_v44  ;;  %v2306_v30 = vsel %vm5989_vm6, %v2305_v47, %v2301_v60  ;;  %v2347_v15 = vmul.f32 %v2346_v54, %v2322_v26  ;;  %v3378_v54 = vld [vmem:[%s3963_s24 + $0x58] sm:$0xff] }
 0x2db   : > { %v2708_v27 = vadd.f32 %v3376_v41, %v2642_v22  ;;  %v2375_v58 = vsub.f32 1.0, %v2374_v18  ;;  %v2399_v33 = vadd.f32 0.18741608, %v2398_v10  ;;  %v2359_v14 = vadd.f32 0.18741608, %v2358_v50 }
 0x2dc   : > { %v2520_v24 = vmul.f32 %v2488_v34, %v1072_v38  ;;  %v2307_v43 = vmul.f32 %v2306_v30, %v2282_v48  ;;  %v2416_v53 = vmul.f32 %v5964_v23, %v2415_v39  ;;  %v1076_v9 = vpop.f32.mrf.mxu2  ;;  %vm2418_vm8 = vweird.f32 %v5938_v52 }
 0x2dd   : > { %2740 = vst [vmem:[%s5666_s25 + $0x48] sm:$0xff] %v2708_v27  ;;  %v2376_v49 = vmul.f32 %v5986_v21, %v2375_v58  ;;  %v2400_v16 = vmul.f32 %v2399_v33, %v5733_v11  ;;  %vm2419_vm9 = vweird.f32 %v5964_v23  ;;  %v3125_v63 = vclamps-f32 %v2347_v15, 1.0  ;;  %v6410_v33 = vld [vmem:[#allocation28_spill] sm:$0xff] }
 0x2de   : > { %v2539_v12 = vpack.c.bf16 %v2521_v6, %v2520_v24  ;;  %v2360_v7 = vmul.f32 %v2359_v14, %v5744_v46  ;;  %vm2378_vm10 = vweird.f32 %v5942_v28  ;;  %v2424_v40 = vand.u32 2147483648, %v5938_v52  ;;  %vm6036_vm12 = vmor %vm2418_vm8, %vm2419_vm9  ;;  %v3382_v46 = vld [vmem:[%s3963_s24 + $0x78] sm:$0xff] }
 0x2df   : > { %v2644_v59 = vpop.f32.mrf.mxu3  ;;  %vm2379_vm11 = vweird.f32 %v5986_v21  ;;  %v2417_v2 = vadd.f32 %v5964_v23, %v2416_v53  ;;  %v2422_v11 = vand.u32 2147483647, %v5938_v52  ;;  %v3124_v13 = vclamps-f32 %v2307_v43, 1.0  ;;  %v3384_v52 = vld [vmem:[%s3963_s24 + $0x88] sm:$0xff] }
 0x2e0   : > { %v2645_v20 = vadd.f32 %v5633_v0, %v2644_v59  ;;  %v2382_v17 = vand.u32 2147483647, %v5942_v28  ;;  %v2384_v45 = vand.u32 2147483648, %v5942_v28  ;;  %v1115_v61 = vmul.f32 0.5, %v5564_v3  ;;  %vm6048_vm13 = vmor %vm2378_vm10, %vm2379_vm11 }
 0x2e1   : > { %v2377_v19 = vadd.f32 %v5986_v21, %v2376_v49  ;;  %v2401_v5 = vadd.f32 1.1283791, %v2400_v16  ;;  %v2459_v62 = vadd.f32 1.0, %v3125_v63  ;;  %v1114_v8 = vmul.f32 0.5, %v5572_v29  ;;  %v3380_v63 = vld [vmem:[%s3963_s24 + $0x68] sm:$0xff] }
 0x2e2   : > { %2683 = vmatmul.bf16.gmra.mxu3 %v2539_v12  ;;  %v2709_v36 = vadd.f32 %v3377_v31, %v2645_v20  ;;  %v2425_v4 = vor.u32 1.1754944e-38, %v2424_v40  ;;  %v2361_v56 = vadd.f32 1.1283791, %v2360_v7  ;;  %v2421_v3 = vsel %vm6036_vm12, %v5964_v23, %v2417_v2 }
 0x2e3   : > { %vm2423_vm14 = vcmp.eq.f32.partialorder %v2422_v11, 8.507059e+37  ;;  %v2458_v32 = vadd.f32 1.0, %v3124_v13  ;;  %vm2383_vm15 = vcmp.eq.f32.partialorder %v2382_v17, 8.507059e+37  ;;  %v2385_v29 = vor.u32 1.1754944e-38, %v2384_v45 }
 0x2e4   : > { %2741 = vst [vmem:[%s5666_s25 + $0x50] sm:$0xff] %v2709_v36  ;;  %v1078_v25 = vpop.f32.mrf.mxu2  ;;  %v2381_v28 = vsel %vm6048_vm13, %v5986_v21, %v2377_v19  ;;  %v2402_v60 = vmul.f32 %v2401_v5, %v5690_v1  ;;  %v1077_v47 = vadd.f32 %v6006_v35, %v1076_v9  ;;  %v2491_v26 = vmul.f32 %v2459_v62, %v1115_v61  ;;  %v3383_v19 = vld [vmem:[%s3963_s24 + $0x80] sm:$0xff] }
 0x2e5   : > { %v1079_v42 = vadd.f32 %v6006_v35, %v1078_v25  ;;  %v2426_v23 = vsel %vm2423_vm14, %v2425_v4, %v2421_v3  ;;  %v2362_v10 = vmul.f32 %v2361_v56, %v5709_v51  ;;  %v2490_v38 = vmul.f32 %v2458_v32, %v1114_v8  ;;  %v3379_v51 = vld [vmem:[%s3963_s24 + $0x60] sm:$0xff]  ;;  %v3385_v32 = vld [vmem:[%s3963_s24 + $0x90] sm:$0xff] }
 0x2e6   : > { %v2386_v57 = vsel %vm2383_vm15, %v2385_v29, %v2381_v28  ;;  %v2427_v22 = vmul.f32 %v2426_v23, %v2402_v60  ;;  %v1117_v15 = vmul.f32 0.5, %v5660_v37  ;;  %v1116_v24 = vmul.f32 0.5, %v6410_v33  ;;  %v3386_v28 = vld [vmem:[%s3963_s24 + $0x98] sm:$0xff] }
 0x2e7   : > { %v2646_v44 = vpop.f32.mrf.mxu3  ;;  %v2523_v55 = vmul.f32 %v2491_v26, %v1079_v42  ;;  %v2522_v21 = vmul.f32 %v2490_v38, %v1077_v47  ;;  %v2387_v1 = vmul.f32 %v2386_v57, %v2362_v10  ;;  %v3388_v38 = vld [vmem:[%s3963_s24 + $0xa8] sm:$0xff] }
 0x2e8   : > { %v2647_v18 = vadd.f32 %v5633_v0, %v2646_v44  ;;  %v3127_v6 = vclamps-f32 %v2427_v22, 1.0  ;;  %v3387_v44 = vld [vmem:[%s3963_s24 + $0xa0] sm:$0xff] }
 0x2e9   : > { %v2540_v48 = vpack.c.bf16 %v2523_v55, %v2522_v21  ;;  %v3126_v41 = vclamps-f32 %v2387_v1, 1.0 }
 0x2ea   : > { %v2710_v50 = vadd.f32 %v3378_v54, %v2647_v18  ;;  %v2461_v58 = vadd.f32 1.0, %v3127_v6 }
 0x2eb   : > { %v2460_v14 = vadd.f32 1.0, %v3126_v41 }
 0x2ec   : > { %2742 = vst [vmem:[%s5666_s25 + $0x58] sm:$0xff] %v2710_v50  ;;  %v1081_v39 = vpop.f32.mrf.mxu2  ;;  %v2493_v9 = vmul.f32 %v2461_v58, %v1117_v15  ;;  %v3389_v50 = vld [vmem:[%s3963_s24 + $0xb0] sm:$0xff]  ;;  %v3392_v15 = vld [vmem:[%s3963_s24 + $0xc8] sm:$0xff] }
 0x2ed   : > { %v1082_v12 = vadd.f32 %v6006_v35, %v1081_v39  ;;  %v2492_v59 = vmul.f32 %v2460_v14, %v1116_v24  ;;  %v3393_v14 = vld [vmem:[%s3963_s24 + $0xd0] sm:$0xff] }
 0x2ef   : > { %v2649_v34 = vpop.f32.mrf.mxu3  ;;  %v2524_v40 = vmul.f32 %v2492_v59, %v1082_v12 }
 0x2f0   : > { %v2650_v30 = vadd.f32 %v5633_v0, %v2649_v34 }
 0x2f2   : > { %2688 = vmatmul.bf16.gmra.mxu3 %v2540_v48  ;;  %v2711_v27 = vadd.f32 %v3379_v51, %v2650_v30  ;;  %v3390_v48 = vld [vmem:[%s3963_s24 + $0xb8] sm:$0xff]  ;;  %v3391_v30 = vld [vmem:[%s3963_s24 + $0xc0] sm:$0xff] }
 0x2f4   : > { %2743 = vst [vmem:[%s5666_s25 + $0x60] sm:$0xff] %v2711_v27  ;;  %v1083_v43 = vpop.f32.mrf.mxu2 }
 0x2f5   : > { %v1084_v53 = vadd.f32 %v6006_v35, %v1083_v43  ;;  %v3381_v35 = vld [vmem:[%s3963_s24 + $0x70] sm:$0xff] }
 0x2f7   : > { %v2651_v49 = vpop.f32.mrf.mxu3  ;;  %v2525_v37 = vmul.f32 %v2493_v9, %v1084_v53  ;;  %v3394_v9 = vld [vmem:[%s3963_s24 + $0xd8] sm:$0xff] }
 0x2f8   : > { %v2652_v16 = vadd.f32 %v5633_v0, %v2651_v49 }
 0x2f9   : > { %v2541_v20 = vpack.c.bf16 %v2525_v37, %v2524_v40  ;;  %v3395_v37 = vld [vmem:[%s3963_s24 + $0xe0] sm:$0xff] }
 0x2fa   : > { %v2712_v7 = vadd.f32 %v3380_v63, %v2652_v16 }
 0x2fc   : > { %2744 = vst [vmem:[%s5666_s25 + $0x68] sm:$0xff] %v2712_v7 }
 0x2ff   : > { %v2654_v2 = vpop.f32.mrf.mxu3 }
 0x300   : > { %v2655_v11 = vadd.f32 %v5633_v0, %v2654_v2 }
 0x302   : > { %2693 = vmatmul.bf16.gmra.mxu3 %v2541_v20  ;;  %v2713_v13 = vadd.f32 %v3381_v35, %v2655_v11  ;;  %v3396_v20 = vld [vmem:[%s3963_s24 + $0xe8] sm:$0xff] }
 0x304   : > { %2745 = vst [vmem:[%s5666_s25 + $0x70] sm:$0xff] %v2713_v13  ;;  %v3397_v13 = vld [vmem:[%s3963_s24 + $0xf0] sm:$0xff] }
 0x307   : > { %v2656_v17 = vpop.f32.mrf.mxu3 }
 0x308   : > { %v2657_v45 = vadd.f32 %v5633_v0, %v2656_v17 }
 0x30a   : > { %v2714_v31 = vadd.f32 %v3382_v46, %v2657_v45 }
 0x30c   : > { %2746 = vst [vmem:[%s5666_s25 + $0x78] sm:$0xff] %v2714_v31  ;;  %v3398_v31 = vld [vmem:[%s3963_s24 + $0xf8] sm:$0xff] }
 0x310   : > { %v2659_v36 = vpop.f32.mrf.mxu3 }
 0x311   : > { %v2660_v61 = vadd.f32 %v5633_v0, %v2659_v36 }
 0x313   : > { %v2715_v5 = vadd.f32 %v3383_v19, %v2660_v61 }
 0x315   : > { %2747 = vst [vmem:[%s5666_s25 + $0x80] sm:$0xff] %v2715_v5 }
 0x318   : > { %v2661_v62 = vpop.f32.mrf.mxu3 }
 0x319   : > { %v2662_v8 = vadd.f32 %v5633_v0, %v2661_v62 }
 0x31b   : > { %v2716_v4 = vadd.f32 %v3384_v52, %v2662_v8 }
 0x31d   : > { %2748 = vst [vmem:[%s5666_s25 + $0x88] sm:$0xff] %v2716_v4 }
 0x325   : > { %v2664_v56 = vpop.f32.mrf.mxu3 }
 0x326   : > { %v2665_v3 = vadd.f32 %v5633_v0, %v2664_v56 }
 0x328   : > { %v2717_v25 = vadd.f32 %v3385_v32, %v2665_v3 }
 0x32a   : > { %2749 = vst [vmem:[%s5666_s25 + $0x90] sm:$0xff] %v2717_v25 }
 0x32d   : > { %v2666_v29 = vpop.f32.mrf.mxu3 }
 0x32e   : > { %v2667_v42 = vadd.f32 %v5633_v0, %v2666_v29 }
 0x330   : > { %v2718_v60 = vadd.f32 %v3386_v28, %v2667_v42 }
 0x332   : > { %2750 = vst [vmem:[%s5666_s25 + $0x98] sm:$0xff] %v2718_v60 }
 0x335   : > { %v2669_v47 = vpop.f32.mrf.mxu3 }
 0x336   : > { %v2670_v26 = vadd.f32 %v5633_v0, %v2669_v47 }
 0x338   : > { %v2719_v23 = vadd.f32 %v3387_v44, %v2670_v26 }
 0x33a   : > { %2751 = vst [vmem:[%s5666_s25 + $0xa0] sm:$0xff] %v2719_v23 }
 0x33d   : > { %v2671_v18 = vpop.f32.mrf.mxu3 }
 0x33e   : > { %v2672_v10 = vadd.f32 %v5633_v0, %v2671_v18 }
 0x340   : > { %v2720_v55 = vadd.f32 %v3388_v38, %v2672_v10 }
 0x342   : > { %2752 = vst [vmem:[%s5666_s25 + $0xa8] sm:$0xff] %v2720_v55 }
 0x345   : > { %v2674_v57 = vpop.f32.mrf.mxu3 }
 0x346   : > { %v2675_v54 = vadd.f32 %v5633_v0, %v2674_v57 }
 0x348   : > { %v2721_v22 = vadd.f32 %v3389_v50, %v2675_v54 }
 0x34a   : > { %2753 = vst [vmem:[%s5666_s25 + $0xb0] sm:$0xff] %v2721_v22 }
 0x34d   : > { %v2676_v21 = vpop.f32.mrf.mxu3 }
 0x34e   : > { %v2677_v1 = vadd.f32 %v5633_v0, %v2676_v21 }
 0x350   : > { %v2722_v39 = vadd.f32 %v3390_v48, %v2677_v1 }
 0x352   : > { %2754 = vst [vmem:[%s5666_s25 + $0xb8] sm:$0xff] %v2722_v39 }
 0x355   : > { %v2679_v34 = vpop.f32.mrf.mxu3 }
 0x356   : > { %v2680_v6 = vadd.f32 %v5633_v0, %v2679_v34 }
 0x358   : > { %v2723_v41 = vadd.f32 %v3391_v30, %v2680_v6 }
 0x35a   : > { %2755 = vst [vmem:[%s5666_s25 + $0xc0] sm:$0xff] %v2723_v41 }
 0x35d   : > { %v2681_v51 = vpop.f32.mrf.mxu3 }
 0x35e   : > { %v2682_v27 = vadd.f32 %v5633_v0, %v2681_v51 }
 0x360   : > { %v2724_v58 = vadd.f32 %v3392_v15, %v2682_v27 }
 0x362   : > { %2756 = vst [vmem:[%s5666_s25 + $0xc8] sm:$0xff] %v2724_v58 }
 0x365   : > { %v2684_v33 = vpop.f32.mrf.mxu3 }
 0x366   : > { %v2685_v24 = vadd.f32 %v5633_v0, %v2684_v33 }
 0x368   : > { %v2725_v43 = vadd.f32 %v3393_v14, %v2685_v24 }
 0x36a   : > { %2757 = vst [vmem:[%s5666_s25 + $0xd0] sm:$0xff] %v2725_v43 }
 0x36d   : > { %v2686_v53 = vpop.f32.mrf.mxu3 }
 0x36e   : > { %v2687_v12 = vadd.f32 %v5633_v0, %v2686_v53 }
 0x370   : > { %v2726_v49 = vadd.f32 %v3394_v9, %v2687_v12 }
 0x372   : > { %2758 = vst [vmem:[%s5666_s25 + $0xd8] sm:$0xff] %v2726_v49 }
 0x375   : > { %v2689_v16 = vpop.f32.mrf.mxu3 }
 0x376   : > { %v2690_v59 = vadd.f32 %v5633_v0, %v2689_v16 }
 0x378   : > { %v2727_v63 = vadd.f32 %v3395_v37, %v2690_v59 }
 0x37a   : > { %2759 = vst [vmem:[%s5666_s25 + $0xe0] sm:$0xff] %v2727_v63 }
 0x37d   : > { %v2691_v7 = vpop.f32.mrf.mxu3 }
 0x37e   : > { %v2692_v40 = vadd.f32 %v5633_v0, %v2691_v7 }
 0x380   : > { %v2728_v2 = vadd.f32 %v3396_v20, %v2692_v40 }
 0x382   : > { %2760 = vst [vmem:[%s5666_s25 + $0xe8] sm:$0xff] %v2728_v2 }
 0x385   : > { %v2694_v11 = vpop.f32.mrf.mxu3 }
 0x386   : > { %v2695_v35 = vadd.f32 %v5633_v0, %v2694_v11 }
 0x388   : > { %v2729_v17 = vadd.f32 %v3397_v13, %v2695_v35 }
 0x38a   : > { %2761 = vst [vmem:[%s5666_s25 + $0xf0] sm:$0xff] %v2729_v17 }
 0x38d   : > { %v2696_v45 = vpop.f32.mrf.mxu3 }
 0x38e   : > { %v2697_v46 = vadd.f32 %v5633_v0, %v2696_v45  ;;  %2775 = sbr.rel (!%p6411_p6) target bundleno = 947 (0x3b3), region = 76 }
 0x390   : > { %v2730_v36 = vadd.f32 %v3398_v31, %v2697_v46 }
 0x392   : > { %2762 = vst [vmem:[%s5666_s25 + $0xf8] sm:$0xff] %v2730_v36 }
 0x393   : > { %s6432_s22 = smov (!%p2778_p10, %s2777_s22), 32 }
 0x394   : > { %s3163_s16 = sshll.u32 %s6432_s22, 3 }
 0x395   : > { %s2781_s29 = ssub.s32 256, %s3163_s16 }
 0x396   : > { %s2782_s15 = sshll.u32 %s2781_s29, 4 }
 0x397   : > { %2783 = vsyncadd %s2764_s4, %s2782_s15  ;;  %p6140_p1 = scmp.ne.s32.totalorder %s3163_s16, 0  ;;  %s3210_s9 = sshll.u32 %s3791_s13, 8 }
 0x398   : > { %s2786_s28 = scalar_lea.hbm %s6245_s8, %s3210_s9  ;;  %s2788_s26 = sshll.u32 %s5666_s25, 4  ;;  %s6149_s26 = int_to_ptr.vmem [resolvable:$true] %s2788_s26 }
 0x399   : > { %s2790_s17 = sshll.u32 %s2786_s28, 4  ;;  %s6256_s19 = sshll.u32 %s6432_s22, 7  ;;  %s6151_s17 = int_to_ptr.hbm [resolvable:$true] %s2790_s17 }
 0x39a   : > { %s3567_s14 = sshra.s32 %s6149_s26, 4  ;;  %s3569_s16 = sshrl.u32 %s6256_s19, 4  ;;  %s3568_s14 = int_to_ptr.vmem [resolvable:$true] %s3567_s14 }
 0x39b   : > { %s3574_s29 = scalar_lea.vmem %s3568_s14, %s3569_s16  ;;  %s3714_s15 = smov [#allocation11]  }
 0x39c   : > { %p3575_p0 = scmp.ne.s32.totalorder %s3568_s14, %s3574_s29  ;;  %s3578_s18 = scalar_lea.vmem %s3714_s15, 512 }
 0x39d   : > { %p3580_p8 = scmp.lt.s32.totalorder %s3578_s18, %s3574_s29 }
 0x39e   : > { %p3576_p2 = pnand %p3575_p0, %p6140_p1 }
 0x3a0   : > { %p3577_p3 = pneg %p3576_p2 }
 0x3a2   : > { %p3582_p9 = pnand %p3580_p8, %p3577_p3 }
 0x3a4   : > { %3585 = shalt.err (!%p3582_p9)
}
 0x3a5   : > { %s3586_s25 = sshra.s32 %s6151_s17, 4  ;;  %s3597_s14 = scalar_lea.hbm %s6245_s8, 1000  ;;  %s3587_s25 = int_to_ptr.hbm [resolvable:$true] %s3586_s25 }
 0x3a6   : > { %s3593_s9 = scalar_lea.hbm %s3587_s25, %s3569_s16  ;;  %p3598_p5 = scmp.lt.s32.totalorder %s3587_s25, %s6245_s8 }
 0x3a7   : > { %p3594_p4 = scmp.ne.s32.totalorder %s3587_s25, %s3593_s9  ;;  %p3599_p12 = scmp.lt.s32.totalorder %s3597_s14, %s3593_s9 }
 0x3a9   : > { %p3595_p11 = pnand %p3594_p4, %p6140_p1  ;;  %p3600_p7 = por %p3599_p12, %p3598_p5 }
 0x3ab   : > { %p3596_p13 = pneg %p3595_p11 }
 0x3ad   : > { %p3601_p6 = pnand %p3600_p7, %p3596_p13 }
 0x3af   : > { %3604 = shalt.err (!%p3601_p6)
}
 0x3b0   : > { %s3715_s29 = smov 128   ;;  %s3716_s16 = smov 8  }
 0x3b1   : > { %s6413_s15 = sshll.u32 %s6432_s22, 7 }
 0x3b2   : > { %2796 = dma.vmem_to_hbm [thread:$0]  (%p6140_p1), %s6149_s26, %s6413_s15, %s6151_s17, %s2764_s4, %s3715_s29, %s3715_s29, %s3716_s16  }
 0x3b3 PF: > { %p6414_p10 = scmp.ne.s32.totalorder %s6264_s21, 0 }
 0x3b4   : > { %s3168_s23 = sshll.u32 (%p6414_p10), %s3791_s13, 5  ;;  %s6415_s30 = scalar_lea.sflag (%p6414_p10), [#allocation13], %s3956_s27 }
 0x3b5   : > { %2799 = sbr.rel (!%p6414_p10) target bundleno = 986 (0x3da), region = 80  ;;  %s2801_s19 = ssub.s32 (%p6414_p10), 125, %s3168_s23 }
 0x3b6   : > { %p2802_p0 = scmp.lt.s32.totalorder (%p6414_p10), %s2801_s19, 32 }
 0x3ba   : > { %s6434_s19 = smov (!%p2802_p0, %s2801_s19), 32 }
 0x3bb   : > { %s3169_s18 = sshll.u32 %s6434_s19, 3 }
 0x3bc   : > { %s2805_s25 = ssub.s32 256, %s3169_s18 }
 0x3bd   : > { %s2806_s9 = sshll.u32 %s2805_s25, 4 }
 0x3be   : > { %2807 = vsyncadd %s6415_s30, %s2806_s9  ;;  %p6184_p1 = scmp.ne.s32.totalorder %s3169_s18, 0  ;;  %s3211_s4 = sshll.u32 %s3791_s13, 8 }
 0x3bf   : > { %s6417_s26 = sld [smem:[#allocation30_spill]]  ;;  %s2812_s28 = sshll.u32 %s3993_s20, 4  ;;  %s6193_s28 = int_to_ptr.vmem [resolvable:$true] %s2812_s28 }
 0x3c0   : > { %s3173_s29 = sshll.u32 %s6434_s19, 7  ;;  %s3606_s16 = sshra.s32 %s6193_s28, 4  ;;  %s3607_s16 = int_to_ptr.vmem [resolvable:$true] %s3606_s16 }
 0x3c1   : > { %s3608_s15 = sshrl.u32 %s3173_s29, 4  ;;  %s3717_s13 = smov [#allocation12]  }
 0x3c2   : > { %s3613_s23 = scalar_lea.vmem %s3607_s16, %s3608_s15  ;;  %s3617_s18 = scalar_lea.vmem %s3717_s13, 512 }
 0x3c3   : > { %p3614_p2 = scmp.ne.s32.totalorder %s3607_s16, %s3613_s23  ;;  %p3619_p9 = scmp.lt.s32.totalorder %s3617_s18, %s3613_s23 }
 0x3c5   : > { %s2810_s17 = scalar_lea.hbm %s6417_s26, %s3211_s4  ;;  %p3615_p3 = pnand %p3614_p2, %p6184_p1 }
 0x3c6   : > { %s2814_s14 = sshll.u32 %s2810_s17, 4  ;;  %s6195_s14 = int_to_ptr.hbm [resolvable:$true] %s2814_s14 }
 0x3c7   : > { %p3616_p8 = pneg %p3615_p3 }
 0x3c9   : > { %p3621_p4 = pnand %p3619_p9, %p3616_p8 }
 0x3cb   : > { %3624 = shalt.err (!%p3621_p4)
}
 0x3cc   : > { %s3625_s20 = sshra.s32 %s6195_s14, 4  ;;  %s3636_s4 = scalar_lea.hbm %s6417_s26, 1000  ;;  %s3626_s20 = int_to_ptr.hbm [resolvable:$true] %s3625_s20 }
 0x3cd   : > { %s3632_s25 = scalar_lea.hbm %s3626_s20, %s3608_s15  ;;  %p3637_p12 = scmp.lt.s32.totalorder %s3626_s20, %s6417_s26 }
 0x3ce   : > { %p3633_p11 = scmp.ne.s32.totalorder %s3626_s20, %s3632_s25  ;;  %p3638_p7 = scmp.lt.s32.totalorder %s3636_s4, %s3632_s25 }
 0x3d0   : > { %p3634_p13 = pnand %p3633_p11, %p6184_p1  ;;  %p3639_p6 = por %p3638_p7, %p3637_p12 }
 0x3d2   : > { %p3635_p5 = pneg %p3634_p13 }
 0x3d4   : > { %p3640_p10 = pnand %p3639_p6, %p3635_p5 }
 0x3d6   : > { %3643 = shalt.err (!%p3640_p10)
}
 0x3d7   : > { %s3718_s17 = smov 128   ;;  %s3719_s16 = smov 8  }
 0x3d8   : > { %s6418_s15 = scalar_lea.sflag [#allocation13], %s3956_s27 }
 0x3d9   : > { %2820 = dma.vmem_to_hbm [thread:$0]  (%p6184_p1), %s6193_s28, %s3173_s29, %s6195_s14, %s6418_s15, %s3718_s17, %s3718_s17, %s3719_s16  }
 0x3da PF: > { %s6419_s23 = sld [smem:[#allocation20_spill]]  ;;  %p3251_p0 = scmp.ge.s32.totalorder %s3699_s12, 2 }
 0x3db   : > { %s6420_s13 = sld [smem:[#allocation23_spill]] }
 0x3e0   : > { %s2829_s18 = sand.u32 1, %s6419_s23  }
 0x3e1   : > { %p6421_p2 = scmp.ne.s32.totalorder %s6420_s13, 0  ;;  %s2830_s20 = scalar_lea.sflag [#allocation4], %s2829_s18 }
 0x3e3   : > { %p3239_p3 = pnand %p3251_p0, %p6421_p2 }
 0x3e5   : > { %p3240_p8 = pneg %p3239_p3 }
 0x3e7   : > { %3678 = dma.done.wait (%p3240_p8), %s2830_s20, 4096  }
 0x3e8   : > { %3680 = vsyncadd (%p3240_p8), %s2830_s20, 4294963200  ;;  %s2840_s25 = scalar_lea.sflag [#allocation13], %s2829_s18 }
 0x3e9   : > { %3682 = dma.done.wait (%p3240_p8), %s2840_s25, 4096  }
 0x3ea   : > { %3684 = vsyncadd (%p3240_p8), %s2840_s25, 4294963200  ;;  %s6422_s12 = sld [smem:[#allocation21_spill]]  ;;  %s6424_s30 = smov %s3691_s10 }
 0x3eb   : > { %s6423_s27 = sld [smem:[#allocation22_spill]]  ;;  %s6425_s10 = smov %s3695_s11 }
 0x3f0   : > { %p30_p1 = scmp.ge.s32.totalorder %s6422_s12, 6  }
 0x3f1   : > { %s6426_s11 = smov %s6423_s27 }
 0x3f2   :  { %32 = sbr.rel (!%p30_p1) target bundleno = 13 (0xd), region = 139 }
 0x3f7   :  { %2846 = vsyncpa [#allocation3], 1 }
 0x3f8   :  { %2848 = vsyncpa [#allocation3 + $0x1], 1 }
 0x3f9   :  { %2849 = vsyncpa [#allocation6], 1 }
 0x3fa   :  { %2851 = vsyncpa [#allocation6 + $0x1], 1 }
 0x3fb   :  { %2852 = vsyncpa [#allocation9], 1 }
 0x3fc   :  { %2853 = vsyncpa [#allocation4], 1 }
 0x3fd   :  { %2855 = vsyncpa [#allocation4 + $0x1], 1 }
 0x3fe   :  { %2856 = vsyncpa [#allocation13], 1 }
 0x3ff   :  { %2858 = vsyncpa [#allocation13 + $0x1], 1 }

</bundles_post_ra>
